<compile_context>
chip_gen: v7x
topology: tpu7x:2x2x1
jax: 0.10.0
libtpu: 0.0.40
codegen_flags: <defaults>
</compile_context>

<pallas_src>
import functools
import math

import jax
import jax.numpy as jnp
from jax import lax
from jax.experimental import pallas as pl
from jax.experimental.pallas import tpu as pltpu


def bilstm_kernel(
    xf_ref, xr_ref,                          # (T, Bt, I) forward / time-reversed input
    w0f_ref, w0b_ref, b0_ref, whh0_ref,      # layer-0 fused weights
    w1_ref, b1_ref, whh1_ref,                # layer-1 fused weights (merged K=4H)
    bn_scale_ref, bn_shift_ref,              # folded BatchNorm1d (eval mode)
    fc1_w_ref, fc1_b_ref,
    fc2_w_ref, fc2_b_ref,
    out_ref,                                 # (Bt, num_classes)
    xp_s,                                    # (T*Bt, 8H) hoisted x-projection (shared L0/L1)
    ha_s, hb_s,                              # (T*Bt, 2H) layer-0 outputs (fwd/bwd aligned)
    l1cat_s,                                 # (T*Bt, 4H) [l1(t) | l1(T-1-t)]
    *, T, Bt, H, I,
):
    H2 = 2 * H
    f32 = jnp.float32
    bf16 = jnp.bfloat16

    # ---- layer-0 hoisted input projection, fwd/bwd pre-combined ------------
    #   xp[t] = x(t) @ W_ih_f + x(T-1-t) @ W_ih_b + (b_f + b_b)
    for t in range(T):
        rows = slice(t * Bt, (t + 1) * Bt)
        xf_t = xf_ref[t]                                     # (Bt, I)
        xr_t = xr_ref[t]                                     # (Bt, I) == x(T-1-t)
        if I == 1:
            # input_size == 1: VPU broadcast-multiply, no K=1 matmul.
            xp_s[rows, :] = (xf_t * w0f_ref[...]
                             + xr_t * w0b_ref[...]
                             + b0_ref[...])
        else:
            xp_s[rows, :] = (
                jnp.dot(xf_t.astype(bf16), w0f_ref[...].astype(bf16),
                        preferred_element_type=f32)
                + jnp.dot(xr_t.astype(bf16), w0b_ref[...].astype(bf16),
                          preferred_element_type=f32)
                + b0_ref[...])

    def lstm_step(h, c, xgates, whh_ref):
        # fused gate-major layout [i_f i_b | f_f f_b | o_f o_b | g_f g_b];
        # every block is H=64 lanes, so slices sit on 128-lane boundaries.
        gates = xgates + jnp.dot(h.astype(bf16), whh_ref[...],
                                 preferred_element_type=f32)
        # logistic via single-EUP-pass tanh identity (exact)
        sig = 0.5 * jnp.tanh(0.5 * gates[:, :3 * H2]) + 0.5
        i_g = sig[:, 0 * H2:1 * H2]
        f_g = sig[:, 1 * H2:2 * H2]
        o_g = sig[:, 2 * H2:3 * H2]
        g_g = jnp.tanh(gates[:, 3 * H2:4 * H2])
        c_new = f_g * c + i_g * g_g
        h_new = o_g * jnp.tanh(c_new)
        return h_new, c_new

    zeros_state = jnp.zeros((Bt, H2), f32)

    # ---- layer 0: fused fwd/bwd recurrence (fully unrolled, T static) ------
    h = zeros_state
    c = zeros_state
    for i in range(T):
        rf = slice(i * Bt, (i + 1) * Bt)             # forward time i
        rb = slice((T - 1 - i) * Bt, (T - i) * Bt)   # backward time T-1-i
        h, c = lstm_step(h, c, xp_s[rf, :], whh0_ref)
        ha_s[rf, :] = h          # lanes [0:H)  hold h_fwd at time i
        hb_s[rb, :] = h          # lanes [H:2H) hold h_bwd at time T-1-i

    # ---- bulk combine + merged (K=4H) layer-1 input projection -------------
    lane = lax.broadcasted_iota(jnp.int32, (T * Bt, H2), 1)
    l1 = jnp.where(lane < H, ha_s[...], hb_s[...])   # (T*Bt, 2H) = [h_f(t) | h_b(t)]
    l1cat_s[:, 0:H2] = l1
    for t in range(T):                               # time-reversed copy, bulk
        l1cat_s[t * Bt:(t + 1) * Bt, H2:2 * H2] = \
            l1[(T - 1 - t) * Bt:(T - t) * Bt, :]
    xp_s[...] = (jnp.dot(l1cat_s[...].astype(bf16), w1_ref[...],
                         preferred_element_type=f32)
                 + b1_ref[...])

    # ---- layer 1: fused fwd/bwd recurrence ----------------------------------
    h = zeros_state
    c = zeros_state
    for i in range(T):
        rf = slice(i * Bt, (i + 1) * Bt)
        h, c = lstm_step(h, c, xp_s[rf, :], whh1_ref)

    # h = [h_fwd(T-1) | h_bwd(0)] == torch.cat((final_forward, final_backward), 1)
    combined = h * bn_scale_ref[...] + bn_shift_ref[...]     # eval BatchNorm1d

    z = (jnp.dot(combined, fc1_w_ref[...], preferred_element_type=f32)
         + fc1_b_ref[...])
    # exact (erf-based) GELU, matching torch.nn.GELU default
    z = 0.5 * z * (1.0 + lax.erf(z * (1.0 / math.sqrt(2.0))))
    out = (jnp.dot(z, fc2_w_ref[...], preferred_element_type=f32)
           + fc2_b_ref[...])
    out_ref[...] = out.astype(out_ref.dtype)


# destination gate blocks [i | f | o | g] built from PyTorch source order [i,f,g,o]
_GATE_PERM = (0, 1, 3, 2)


def _scatter_gates(w, H, direction):
    """(..., 4H) PyTorch-ordered [i,f,g,o] -> (..., 8H) fused gate-major layout
    [i_f i_b | f_f f_b | o_f o_b | g_f g_b]; direction 0 = fwd cols, 1 = bwd."""
    zeros = jnp.zeros(w.shape[:-1] + (H,), w.dtype)
    parts = []
    for src in _GATE_PERM:
        blk = w[..., src * H:(src + 1) * H]
        parts.extend([blk, zeros] if direction == 0 else [zeros, blk])
    return jnp.concatenate(parts, axis=-1)


def init_params(key, input_size=1, hidden_size=64, num_classes=13):
    """Deterministic init mirroring BiLSTMDetector._init_weights(), fused into
    the gate-major / block-diagonal layout consumed by the kernel."""
    H = hidden_size
    ks = jax.random.split(key, 6)
    ortho = jax.nn.initializers.orthogonal()

    def lstm_weights(k, in_dim):
        k1, k2 = jax.random.split(k)
        w_ih = ortho(k1, (4 * H, in_dim), jnp.float32).T        # (in_dim, 4H)
        w_hh = ortho(k2, (4 * H, H), jnp.float32).T             # (H, 4H)
        b = jnp.zeros((1, 4 * H), jnp.float32)                  # bias_ih + bias_hh
        return w_ih, w_hh, b

    wih0f, whh0f, b0f = lstm_weights(ks[0], input_size)
    wih0b, whh0b, b0b = lstm_weights(ks[1], input_size)
    wih1f, whh1f, b1f = lstm_weights(ks[2], 2 * H)
    wih1b, whh1b, b1b = lstm_weights(ks[3], 2 * H)

    def xavier(k, out_dim, in_dim):
        bound = math.sqrt(6.0 / (in_dim + out_dim))
        w = jax.random.uniform(k, (out_dim, in_dim), jnp.float32, -bound, bound)
        return w.T                                              # stored (in, out)

    fc1_w = xavier(ks[4], H, 2 * H)
    fc1_b = jnp.zeros((1, H), jnp.float32)
    fc2_w = xavier(ks[5], num_classes, H)
    fc2_b = jnp.zeros((1, num_classes), jnp.float32)

    # BatchNorm1d (eval): weight = 0.0894 (1-D "weight" branch of _init_weights),
    # bias = 0, running_mean = 0, running_var = 1, eps = 1e-5.
    eps = 1e-5
    bn_scale = jnp.full((1, 2 * H), 0.0894 / math.sqrt(1.0 + eps), jnp.float32)
    bn_shift = jnp.zeros((1, 2 * H), jnp.float32)

    # NOTE: loading real trained weights requires bias_ih + bias_hh to be summed
    # and the same gate-major column permutation applied; BN must use the
    # trained running stats.
    return dict(
        # layer 0 (input -> H), fused fwd/bwd, gate-major columns
        w0f=_scatter_gates(wih0f, H, 0),                              # (I, 8H)
        w0b=_scatter_gates(wih0b, H, 1),                              # (I, 8H)
        b0=_scatter_gates(b0f, H, 0) + _scatter_gates(b0b, H, 1),     # (1, 8H)
        whh0=jnp.concatenate([_scatter_gates(whh0f, H, 0),
                              _scatter_gates(whh0b, H, 1)], axis=0),  # (2H, 8H)
        # layer 1 (2H -> H): merged fwd/bwd input weights (rows [0:2H)=fwd,
        # rows [2H:4H)=bwd) so the projection is one K=4H matmul
        w1=jnp.concatenate([_scatter_gates(wih1f, H, 0),
                            _scatter_gates(wih1b, H, 1)], axis=0),    # (4H, 8H)
        b1=_scatter_gates(b1f, H, 0) + _scatter_gates(b1b, H, 1),     # (1, 8H)
        whh1=jnp.concatenate([_scatter_gates(whh1f, H, 0),
                              _scatter_gates(whh1b, H, 1)], axis=0),  # (2H, 8H)
        bn_scale=bn_scale, bn_shift=bn_shift,
        fc1_w=fc1_w, fc1_b=fc1_b, fc2_w=fc2_w, fc2_b=fc2_b,
    )


@jax.jit
def bilstm_detector_forward(x, params):
    """x: (B, T, input_size) batch-first, as in the PyTorch module."""
    B, T, I = x.shape
    H = params["fc1_w"].shape[1]          # fc1_w: (2H, H)
    C = params["fc2_w"].shape[1]
    bf16 = jnp.bfloat16

    # pad batch to the 8-sublane boundary, then to a multiple of the batch tile
    Bp8 = max(8, ((B + 7) // 8) * 8)
    Bt = min(Bp8, 256)                    # cap per-tile scratch (v7x: 64 MiB VMEM)
    Bp = ((Bp8 + Bt - 1) // Bt) * Bt
    n_tiles = Bp // Bt

    x = x.astype(jnp.float32)
    x_pad = jnp.pad(x, ((0, Bp - B), (0, 0), (0, 0)))       # (Bp, T, I)
    x_tm = jnp.transpose(x_pad, (1, 0, 2))                  # (T, Bp, I) time-major
    x_rev = x_tm[::-1]                                      # time-reversed stream

    inputs = (
        x_tm, x_rev,
        params["w0f"], params["w0b"], params["b0"], params["whh0"].astype(bf16),
        params["w1"].astype(bf16), params["b1"], params["whh1"].astype(bf16),
        params["bn_scale"], params["bn_shift"],
        params["fc1_w"], params["fc1_b"],
        params["fc2_w"], params["fc2_b"],
    )

    def const_spec(a):                     # weights resident across the batch grid
        return pl.BlockSpec(a.shape, lambda b: (0, 0))

    in_specs = [
        pl.BlockSpec((T, Bt, I), lambda b: (0, b, 0)),      # x forward stream
        pl.BlockSpec((T, Bt, I), lambda b: (0, b, 0)),      # x reversed stream
    ] + [const_spec(a) for a in inputs[2:]]
    out_specs = pl.BlockSpec((Bt, C), lambda b: (b, 0))

    # advisory cost model (tiny kernel: dominated by launch + serial recurrence)
    flops = int(
        2 * T * Bp * (2 * I) * (8 * H)          # layer-0 input projections
        + 2 * T * Bp * (4 * H) * (8 * H)        # merged layer-1 projection (K=4H)
        + 2 * (2 * T) * Bp * (2 * H) * (8 * H)  # 2 layers x T recurrence steps
        + 2 * Bp * (2 * H) * H                  # fc1
        + 2 * Bp * H * C                        # fc2
    )
    transcendentals = int(2 * T * Bp * 10 * H + Bp * H)
    bytes_accessed = int(
        4 * (2 * T * Bp * I + Bp * C)
        + sum(math.prod(a.shape) * jnp.dtype(a.dtype).itemsize for a in inputs[2:])
    )

    kernel = functools.partial(bilstm_kernel, T=T, Bt=Bt, H=H, I=I)

    out = pl.pallas_call(
        kernel,
        out_shape=jax.ShapeDtypeStruct((Bp, C), jnp.float32),
        grid=(n_tiles,),
        in_specs=in_specs,
        out_specs=out_specs,
        scratch_shapes=[
            pltpu.VMEM((T * Bt, 8 * H), jnp.float32),   # x-projection (layer 0 & 1)
            pltpu.VMEM((T * Bt, 2 * H), jnp.float32),   # layer-0 h, fwd-time-aligned
            pltpu.VMEM((T * Bt, 2 * H), jnp.float32),   # layer-0 h, bwd-time-aligned
            pltpu.VMEM((T * Bt, 4 * H), jnp.float32),   # [l1(t) | l1(T-1-t)]
        ],
        compiler_params=pltpu.CompilerParams(
            dimension_semantics=("parallel",)),
        cost_estimate=pl.CostEstimate(
            flops=flops, transcendentals=transcendentals,
            bytes_accessed=bytes_accessed),
    )(*inputs)
    return out[:B]


if __name__ == "__main__":
    B, T, I = 4, 8, 1          # batch, seq_len, input_size (module default input_size=1)
    H, C = 64, 13              # hidden_size, num_classes (module defaults)

    key = jax.random.PRNGKey(0)
    k_param, k_x = jax.random.split(key)
    params = init_params(k_param, input_size=I, hidden_size=H, num_classes=C)
    x = jax.random.normal(k_x, (B, T, I), jnp.float32)

    out = bilstm_detector_forward(x, params)
    out = jax.block_until_ready(out)

    assert out.shape == (B, C), out.shape
    assert bool(jnp.all(jnp.isfinite(out)))
    print("KERNEL_OK")
</pallas_src>

<mosaic_0001>
module attributes {stable_mosaic.version = 11 : i64} {
  func.func @bilstm_kernel(%arg0: i32, %arg1: memref<8x8x1xf32, #tpu.memory_space<vmem>>, %arg2: memref<8x8x1xf32, #tpu.memory_space<vmem>>, %arg3: memref<1x512xf32, #tpu.memory_space<vmem>>, %arg4: memref<1x512xf32, #tpu.memory_space<vmem>>, %arg5: memref<1x512xf32, #tpu.memory_space<vmem>>, %arg6: memref<128x512xbf16, #tpu.memory_space<vmem>>, %arg7: memref<256x512xbf16, #tpu.memory_space<vmem>>, %arg8: memref<1x512xf32, #tpu.memory_space<vmem>>, %arg9: memref<128x512xbf16, #tpu.memory_space<vmem>>, %arg10: memref<1x128xf32, #tpu.memory_space<vmem>>, %arg11: memref<1x128xf32, #tpu.memory_space<vmem>>, %arg12: memref<128x64xf32, #tpu.memory_space<vmem>>, %arg13: memref<1x64xf32, #tpu.memory_space<vmem>>, %arg14: memref<64x13xf32, #tpu.memory_space<vmem>>, %arg15: memref<1x13xf32, #tpu.memory_space<vmem>>, %arg16: memref<8x13xf32, #tpu.memory_space<vmem>>, %arg17: memref<64x512xf32, #tpu.memory_space<vmem>>, %arg18: memref<64x128xf32, #tpu.memory_space<vmem>>, %arg19: memref<64x128xf32, #tpu.memory_space<vmem>>, %arg20: memref<64x256xf32, #tpu.memory_space<vmem>>) attributes {dimension_semantics = [#tpu.dimension_semantics<parallel>], iteration_bounds = array<i64: 1>, scalar_prefetch = 0 : i64, scratch_operands = 4 : i64, tpu.core_type = #tpu.core_type<tc>, window_params = [{transform_indices = @transform_0, window_bounds = array<i64: 8, 8, 1>}, {transform_indices = @transform_1, window_bounds = array<i64: 8, 8, 1>}, {pipeline_mode = #tpu.pipeline_mode<synchronous>, transform_indices = @transform_2, window_bounds = array<i64: 1, 512>}, {pipeline_mode = #tpu.pipeline_mode<synchronous>, transform_indices = @transform_3, window_bounds = array<i64: 1, 512>}, {pipeline_mode = #tpu.pipeline_mode<synchronous>, transform_indices = @transform_4, window_bounds = array<i64: 1, 512>}, {pipeline_mode = #tpu.pipeline_mode<synchronous>, transform_indices = @transform_5, window_bounds = array<i64: 128, 512>}, {pipeline_mode = #tpu.pipeline_mode<synchronous>, transform_indices = @transform_6, window_bounds = array<i64: 256, 512>}, {pipeline_mode = #tpu.pipeline_mode<synchronous>, transform_indices = @transform_7, window_bounds = array<i64: 1, 512>}, {pipeline_mode = #tpu.pipeline_mode<synchronous>, transform_indices = @transform_8, window_bounds = array<i64: 128, 512>}, {pipeline_mode = #tpu.pipeline_mode<synchronous>, transform_indices = @transform_9, window_bounds = array<i64: 1, 128>}, {pipeline_mode = #tpu.pipeline_mode<synchronous>, transform_indices = @transform_10, window_bounds = array<i64: 1, 128>}, {pipeline_mode = #tpu.pipeline_mode<synchronous>, transform_indices = @transform_11, window_bounds = array<i64: 128, 64>}, {pipeline_mode = #tpu.pipeline_mode<synchronous>, transform_indices = @transform_12, window_bounds = array<i64: 1, 64>}, {pipeline_mode = #tpu.pipeline_mode<synchronous>, transform_indices = @transform_13, window_bounds = array<i64: 64, 13>}, {pipeline_mode = #tpu.pipeline_mode<synchronous>, transform_indices = @transform_14, window_bounds = array<i64: 1, 13>}, {transform_indices = @transform_15, window_bounds = array<i64: 8, 13>}]} {
    %c0 = arith.constant 0 : index
    %c0_0 = arith.constant 0 : index
    %c0_1 = arith.constant 0 : index
    %0 = vector.load %arg1[%c0, %c0_0, %c0_1] : memref<8x8x1xf32, #tpu.memory_space<vmem>>, vector<1x8x1xf32>
    %1 = vector.shape_cast %0 : vector<1x8x1xf32> to vector<8x1xf32>
    %c0_2 = arith.constant 0 : index
    %c0_3 = arith.constant 0 : index
    %c0_4 = arith.constant 0 : index
    %2 = vector.load %arg2[%c0_2, %c0_3, %c0_4] : memref<8x8x1xf32, #tpu.memory_space<vmem>>, vector<1x8x1xf32>
    %3 = vector.shape_cast %2 : vector<1x8x1xf32> to vector<8x1xf32>
    %c0_5 = arith.constant 0 : index
    %c0_6 = arith.constant 0 : index
    %4 = vector.load %arg3[%c0_5, %c0_6] : memref<1x512xf32, #tpu.memory_space<vmem>>, vector<1x512xf32>
    %5 = vector.broadcast %1 : vector<8x1xf32> to vector<8x512xf32>
    %6 = vector.broadcast %4 : vector<1x512xf32> to vector<8x512xf32>
    %7 = arith.mulf %5, %6 : vector<8x512xf32>
    %c0_7 = arith.constant 0 : index
    %c0_8 = arith.constant 0 : index
    %8 = vector.load %arg4[%c0_7, %c0_8] : memref<1x512xf32, #tpu.memory_space<vmem>>, vector<1x512xf32>
    %9 = vector.broadcast %3 : vector<8x1xf32> to vector<8x512xf32>
    %10 = vector.broadcast %8 : vector<1x512xf32> to vector<8x512xf32>
    %11 = arith.mulf %9, %10 : vector<8x512xf32>
    %12 = arith.addf %7, %11 : vector<8x512xf32>
    %c0_9 = arith.constant 0 : index
    %c0_10 = arith.constant 0 : index
    %13 = vector.load %arg5[%c0_9, %c0_10] : memref<1x512xf32, #tpu.memory_space<vmem>>, vector<1x512xf32>
    %14 = vector.broadcast %13 : vector<1x512xf32> to vector<8x512xf32>
    %15 = arith.addf %12, %14 : vector<8x512xf32>
    %c0_11 = arith.constant 0 : index
    %c0_12 = arith.constant 0 : index
    %16 = vector.load %arg17[%c0_11, %c0_12] : memref<64x512xf32, #tpu.memory_space<vmem>>, vector<8x512xf32>
    tpu.vector_store %arg17[%c0_11, %c0_12], %15 {strides = array<i32>} : memref<64x512xf32, #tpu.memory_space<vmem>>, vector<8x512xf32>,
    %c1 = arith.constant 1 : index
    %c0_13 = arith.constant 0 : index
    %c0_14 = arith.constant 0 : index
    %17 = vector.load %arg1[%c1, %c0_13, %c0_14] : memref<8x8x1xf32, #tpu.memory_space<vmem>>, vector<1x8x1xf32>
    %18 = vector.shape_cast %17 : vector<1x8x1xf32> to vector<8x1xf32>
    %c1_15 = arith.constant 1 : index
    %c0_16 = arith.constant 0 : index
    %c0_17 = arith.constant 0 : index
    %19 = vector.load %arg2[%c1_15, %c0_16, %c0_17] : memref<8x8x1xf32, #tpu.memory_space<vmem>>, vector<1x8x1xf32>
    %20 = vector.shape_cast %19 : vector<1x8x1xf32> to vector<8x1xf32>
    %c0_18 = arith.constant 0 : index
    %c0_19 = arith.constant 0 : index
    %21 = vector.load %arg3[%c0_18, %c0_19] : memref<1x512xf32, #tpu.memory_space<vmem>>, vector<1x512xf32>
    %22 = vector.broadcast %18 : vector<8x1xf32> to vector<8x512xf32>
    %23 = vector.broadcast %21 : vector<1x512xf32> to vector<8x512xf32>
    %24 = arith.mulf %22, %23 : vector<8x512xf32>
    %c0_20 = arith.constant 0 : index
    %c0_21 = arith.constant 0 : index
    %25 = vector.load %arg4[%c0_20, %c0_21] : memref<1x512xf32, #tpu.memory_space<vmem>>, vector<1x512xf32>
    %26 = vector.broadcast %20 : vector<8x1xf32> to vector<8x512xf32>
    %27 = vector.broadcast %25 : vector<1x512xf32> to vector<8x512xf32>
    %28 = arith.mulf %26, %27 : vector<8x512xf32>
    %29 = arith.addf %24, %28 : vector<8x512xf32>
    %c0_22 = arith.constant 0 : index
    %c0_23 = arith.constant 0 : index
    %30 = vector.load %arg5[%c0_22, %c0_23] : memref<1x512xf32, #tpu.memory_space<vmem>>, vector<1x512xf32>
    %31 = vector.broadcast %30 : vector<1x512xf32> to vector<8x512xf32>
    %32 = arith.addf %29, %31 : vector<8x512xf32>
    %c8 = arith.constant 8 : index
    %c0_24 = arith.constant 0 : index
    %33 = vector.load %arg17[%c8, %c0_24] : memref<64x512xf32, #tpu.memory_space<vmem>>, vector<8x512xf32>
    tpu.vector_store %arg17[%c8, %c0_24], %32 {strides = array<i32>} : memref<64x512xf32, #tpu.memory_space<vmem>>, vector<8x512xf32>,
    %c2 = arith.constant 2 : index
    %c0_25 = arith.constant 0 : index
    %c0_26 = arith.constant 0 : index
    %34 = vector.load %arg1[%c2, %c0_25, %c0_26] : memref<8x8x1xf32, #tpu.memory_space<vmem>>, vector<1x8x1xf32>
    %35 = vector.shape_cast %34 : vector<1x8x1xf32> to vector<8x1xf32>
    %c2_27 = arith.constant 2 : index
    %c0_28 = arith.constant 0 : index
    %c0_29 = arith.constant 0 : index
    %36 = vector.load %arg2[%c2_27, %c0_28, %c0_29] : memref<8x8x1xf32, #tpu.memory_space<vmem>>, vector<1x8x1xf32>
    %37 = vector.shape_cast %36 : vector<1x8x1xf32> to vector<8x1xf32>
    %c0_30 = arith.constant 0 : index
    %c0_31 = arith.constant 0 : index
    %38 = vector.load %arg3[%c0_30, %c0_31] : memref<1x512xf32, #tpu.memory_space<vmem>>, vector<1x512xf32>
    %39 = vector.broadcast %35 : vector<8x1xf32> to vector<8x512xf32>
    %40 = vector.broadcast %38 : vector<1x512xf32> to vector<8x512xf32>
    %41 = arith.mulf %39, %40 : vector<8x512xf32>
    %c0_32 = arith.constant 0 : index
    %c0_33 = arith.constant 0 : index
    %42 = vector.load %arg4[%c0_32, %c0_33] : memref<1x512xf32, #tpu.memory_space<vmem>>, vector<1x512xf32>
    %43 = vector.broadcast %37 : vector<8x1xf32> to vector<8x512xf32>
    %44 = vector.broadcast %42 : vector<1x512xf32> to vector<8x512xf32>
    %45 = arith.mulf %43, %44 : vector<8x512xf32>
    %46 = arith.addf %41, %45 : vector<8x512xf32>
    %c0_34 = arith.constant 0 : index
    %c0_35 = arith.constant 0 : index
    %47 = vector.load %arg5[%c0_34, %c0_35] : memref<1x512xf32, #tpu.memory_space<vmem>>, vector<1x512xf32>
    %48 = vector.broadcast %47 : vector<1x512xf32> to vector<8x512xf32>
    %49 = arith.addf %46, %48 : vector<8x512xf32>
    %c16 = arith.constant 16 : index
    %c0_36 = arith.constant 0 : index
    %50 = vector.load %arg17[%c16, %c0_36] : memref<64x512xf32, #tpu.memory_space<vmem>>, vector<8x512xf32>
    tpu.vector_store %arg17[%c16, %c0_36], %49 {strides = array<i32>} : memref<64x512xf32, #tpu.memory_space<vmem>>, vector<8x512xf32>,
    %c3 = arith.constant 3 : index
    %c0_37 = arith.constant 0 : index
    %c0_38 = arith.constant 0 : index
    %51 = vector.load %arg1[%c3, %c0_37, %c0_38] : memref<8x8x1xf32, #tpu.memory_space<vmem>>, vector<1x8x1xf32>
    %52 = vector.shape_cast %51 : vector<1x8x1xf32> to vector<8x1xf32>
    %c3_39 = arith.constant 3 : index
    %c0_40 = arith.constant 0 : index
    %c0_41 = arith.constant 0 : index
    %53 = vector.load %arg2[%c3_39, %c0_40, %c0_41] : memref<8x8x1xf32, #tpu.memory_space<vmem>>, vector<1x8x1xf32>
    %54 = vector.shape_cast %53 : vector<1x8x1xf32> to vector<8x1xf32>
    %c0_42 = arith.constant 0 : index
    %c0_43 = arith.constant 0 : index
    %55 = vector.load %arg3[%c0_42, %c0_43] : memref<1x512xf32, #tpu.memory_space<vmem>>, vector<1x512xf32>
    %56 = vector.broadcast %52 : vector<8x1xf32> to vector<8x512xf32>
    %57 = vector.broadcast %55 : vector<1x512xf32> to vector<8x512xf32>
    %58 = arith.mulf %56, %57 : vector<8x512xf32>
    %c0_44 = arith.constant 0 : index
    %c0_45 = arith.constant 0 : index
    %59 = vector.load %arg4[%c0_44, %c0_45] : memref<1x512xf32, #tpu.memory_space<vmem>>, vector<1x512xf32>
    %60 = vector.broadcast %54 : vector<8x1xf32> to vector<8x512xf32>
    %61 = vector.broadcast %59 : vector<1x512xf32> to vector<8x512xf32>
    %62 = arith.mulf %60, %61 : vector<8x512xf32>
    %63 = arith.addf %58, %62 : vector<8x512xf32>
    %c0_46 = arith.constant 0 : index
    %c0_47 = arith.constant 0 : index
    %64 = vector.load %arg5[%c0_46, %c0_47] : memref<1x512xf32, #tpu.memory_space<vmem>>, vector<1x512xf32>
    %65 = vector.broadcast %64 : vector<1x512xf32> to vector<8x512xf32>
    %66 = arith.addf %63, %65 : vector<8x512xf32>
    %c24 = arith.constant 24 : index
    %c0_48 = arith.constant 0 : index
    %67 = vector.load %arg17[%c24, %c0_48] : memref<64x512xf32, #tpu.memory_space<vmem>>, vector<8x512xf32>
    tpu.vector_store %arg17[%c24, %c0_48], %66 {strides = array<i32>} : memref<64x512xf32, #tpu.memory_space<vmem>>, vector<8x512xf32>,
    %c4 = arith.constant 4 : index
    %c0_49 = arith.constant 0 : index
    %c0_50 = arith.constant 0 : index
    %68 = vector.load %arg1[%c4, %c0_49, %c0_50] : memref<8x8x1xf32, #tpu.memory_space<vmem>>, vector<1x8x1xf32>
    %69 = vector.shape_cast %68 : vector<1x8x1xf32> to vector<8x1xf32>
    %c4_51 = arith.constant 4 : index
    %c0_52 = arith.constant 0 : index
    %c0_53 = arith.constant 0 : index
    %70 = vector.load %arg2[%c4_51, %c0_52, %c0_53] : memref<8x8x1xf32, #tpu.memory_space<vmem>>, vector<1x8x1xf32>
    %71 = vector.shape_cast %70 : vector<1x8x1xf32> to vector<8x1xf32>
    %c0_54 = arith.constant 0 : index
    %c0_55 = arith.constant 0 : index
    %72 = vector.load %arg3[%c0_54, %c0_55] : memref<1x512xf32, #tpu.memory_space<vmem>>, vector<1x512xf32>
    %73 = vector.broadcast %69 : vector<8x1xf32> to vector<8x512xf32>
    %74 = vector.broadcast %72 : vector<1x512xf32> to vector<8x512xf32>
    %75 = arith.mulf %73, %74 : vector<8x512xf32>
    %c0_56 = arith.constant 0 : index
    %c0_57 = arith.constant 0 : index
    %76 = vector.load %arg4[%c0_56, %c0_57] : memref<1x512xf32, #tpu.memory_space<vmem>>, vector<1x512xf32>
    %77 = vector.broadcast %71 : vector<8x1xf32> to vector<8x512xf32>
    %78 = vector.broadcast %76 : vector<1x512xf32> to vector<8x512xf32>
    %79 = arith.mulf %77, %78 : vector<8x512xf32>
    %80 = arith.addf %75, %79 : vector<8x512xf32>
    %c0_58 = arith.constant 0 : index
    %c0_59 = arith.constant 0 : index
    %81 = vector.load %arg5[%c0_58, %c0_59] : memref<1x512xf32, #tpu.memory_space<vmem>>, vector<1x512xf32>
    %82 = vector.broadcast %81 : vector<1x512xf32> to vector<8x512xf32>
    %83 = arith.addf %80, %82 : vector<8x512xf32>
    %c32 = arith.constant 32 : index
    %c0_60 = arith.constant 0 : index
    %84 = vector.load %arg17[%c32, %c0_60] : memref<64x512xf32, #tpu.memory_space<vmem>>, vector<8x512xf32>
    tpu.vector_store %arg17[%c32, %c0_60], %83 {strides = array<i32>} : memref<64x512xf32, #tpu.memory_space<vmem>>, vector<8x512xf32>,
    %c5 = arith.constant 5 : index
    %c0_61 = arith.constant 0 : index
    %c0_62 = arith.constant 0 : index
    %85 = vector.load %arg1[%c5, %c0_61, %c0_62] : memref<8x8x1xf32, #tpu.memory_space<vmem>>, vector<1x8x1xf32>
    %86 = vector.shape_cast %85 : vector<1x8x1xf32> to vector<8x1xf32>
    %c5_63 = arith.constant 5 : index
    %c0_64 = arith.constant 0 : index
    %c0_65 = arith.constant 0 : index
    %87 = vector.load %arg2[%c5_63, %c0_64, %c0_65] : memref<8x8x1xf32, #tpu.memory_space<vmem>>, vector<1x8x1xf32>
    %88 = vector.shape_cast %87 : vector<1x8x1xf32> to vector<8x1xf32>
    %c0_66 = arith.constant 0 : index
    %c0_67 = arith.constant 0 : index
    %89 = vector.load %arg3[%c0_66, %c0_67] : memref<1x512xf32, #tpu.memory_space<vmem>>, vector<1x512xf32>
    %90 = vector.broadcast %86 : vector<8x1xf32> to vector<8x512xf32>
    %91 = vector.broadcast %89 : vector<1x512xf32> to vector<8x512xf32>
    %92 = arith.mulf %90, %91 : vector<8x512xf32>
    %c0_68 = arith.constant 0 : index
    %c0_69 = arith.constant 0 : index
    %93 = vector.load %arg4[%c0_68, %c0_69] : memref<1x512xf32, #tpu.memory_space<vmem>>, vector<1x512xf32>
    %94 = vector.broadcast %88 : vector<8x1xf32> to vector<8x512xf32>
    %95 = vector.broadcast %93 : vector<1x512xf32> to vector<8x512xf32>
    %96 = arith.mulf %94, %95 : vector<8x512xf32>
    %97 = arith.addf %92, %96 : vector<8x512xf32>
    %c0_70 = arith.constant 0 : index
    %c0_71 = arith.constant 0 : index
    %98 = vector.load %arg5[%c0_70, %c0_71] : memref<1x512xf32, #tpu.memory_space<vmem>>, vector<1x512xf32>
    %99 = vector.broadcast %98 : vector<1x512xf32> to vector<8x512xf32>
    %100 = arith.addf %97, %99 : vector<8x512xf32>
    %c40 = arith.constant 40 : index
    %c0_72 = arith.constant 0 : index
    %101 = vector.load %arg17[%c40, %c0_72] : memref<64x512xf32, #tpu.memory_space<vmem>>, vector<8x512xf32>
    tpu.vector_store %arg17[%c40, %c0_72], %100 {strides = array<i32>} : memref<64x512xf32, #tpu.memory_space<vmem>>, vector<8x512xf32>,
    %c6 = arith.constant 6 : index
    %c0_73 = arith.constant 0 : index
    %c0_74 = arith.constant 0 : index
    %102 = vector.load %arg1[%c6, %c0_73, %c0_74] : memref<8x8x1xf32, #tpu.memory_space<vmem>>, vector<1x8x1xf32>
    %103 = vector.shape_cast %102 : vector<1x8x1xf32> to vector<8x1xf32>
    %c6_75 = arith.constant 6 : index
    %c0_76 = arith.constant 0 : index
    %c0_77 = arith.constant 0 : index
    %104 = vector.load %arg2[%c6_75, %c0_76, %c0_77] : memref<8x8x1xf32, #tpu.memory_space<vmem>>, vector<1x8x1xf32>
    %105 = vector.shape_cast %104 : vector<1x8x1xf32> to vector<8x1xf32>
    %c0_78 = arith.constant 0 : index
    %c0_79 = arith.constant 0 : index
    %106 = vector.load %arg3[%c0_78, %c0_79] : memref<1x512xf32, #tpu.memory_space<vmem>>, vector<1x512xf32>
    %107 = vector.broadcast %103 : vector<8x1xf32> to vector<8x512xf32>
    %108 = vector.broadcast %106 : vector<1x512xf32> to vector<8x512xf32>
    %109 = arith.mulf %107, %108 : vector<8x512xf32>
    %c0_80 = arith.constant 0 : index
    %c0_81 = arith.constant 0 : index
    %110 = vector.load %arg4[%c0_80, %c0_81] : memref<1x512xf32, #tpu.memory_space<vmem>>, vector<1x512xf32>
    %111 = vector.broadcast %105 : vector<8x1xf32> to vector<8x512xf32>
    %112 = vector.broadcast %110 : vector<1x512xf32> to vector<8x512xf32>
    %113 = arith.mulf %111, %112 : vector<8x512xf32>
    %114 = arith.addf %109, %113 : vector<8x512xf32>
    %c0_82 = arith.constant 0 : index
    %c0_83 = arith.constant 0 : index
    %115 = vector.load %arg5[%c0_82, %c0_83] : memref<1x512xf32, #tpu.memory_space<vmem>>, vector<1x512xf32>
    %116 = vector.broadcast %115 : vector<1x512xf32> to vector<8x512xf32>
    %117 = arith.addf %114, %116 : vector<8x512xf32>
    %c48 = arith.constant 48 : index
    %c0_84 = arith.constant 0 : index
    %118 = vector.load %arg17[%c48, %c0_84] : memref<64x512xf32, #tpu.memory_space<vmem>>, vector<8x512xf32>
    tpu.vector_store %arg17[%c48, %c0_84], %117 {strides = array<i32>} : memref<64x512xf32, #tpu.memory_space<vmem>>, vector<8x512xf32>,
    %c7 = arith.constant 7 : index
    %c0_85 = arith.constant 0 : index
    %c0_86 = arith.constant 0 : index
    %119 = vector.load %arg1[%c7, %c0_85, %c0_86] : memref<8x8x1xf32, #tpu.memory_space<vmem>>, vector<1x8x1xf32>
    %120 = vector.shape_cast %119 : vector<1x8x1xf32> to vector<8x1xf32>
    %c7_87 = arith.constant 7 : index
    %c0_88 = arith.constant 0 : index
    %c0_89 = arith.constant 0 : index
    %121 = vector.load %arg2[%c7_87, %c0_88, %c0_89] : memref<8x8x1xf32, #tpu.memory_space<vmem>>, vector<1x8x1xf32>
    %122 = vector.shape_cast %121 : vector<1x8x1xf32> to vector<8x1xf32>
    %c0_90 = arith.constant 0 : index
    %c0_91 = arith.constant 0 : index
    %123 = vector.load %arg3[%c0_90, %c0_91] : memref<1x512xf32, #tpu.memory_space<vmem>>, vector<1x512xf32>
    %124 = vector.broadcast %120 : vector<8x1xf32> to vector<8x512xf32>
    %125 = vector.broadcast %123 : vector<1x512xf32> to vector<8x512xf32>
    %126 = arith.mulf %124, %125 : vector<8x512xf32>
    %c0_92 = arith.constant 0 : index
    %c0_93 = arith.constant 0 : index
    %127 = vector.load %arg4[%c0_92, %c0_93] : memref<1x512xf32, #tpu.memory_space<vmem>>, vector<1x512xf32>
    %128 = vector.broadcast %122 : vector<8x1xf32> to vector<8x512xf32>
    %129 = vector.broadcast %127 : vector<1x512xf32> to vector<8x512xf32>
    %130 = arith.mulf %128, %129 : vector<8x512xf32>
    %131 = arith.addf %126, %130 : vector<8x512xf32>
    %c0_94 = arith.constant 0 : index
    %c0_95 = arith.constant 0 : index
    %132 = vector.load %arg5[%c0_94, %c0_95] : memref<1x512xf32, #tpu.memory_space<vmem>>, vector<1x512xf32>
    %133 = vector.broadcast %132 : vector<1x512xf32> to vector<8x512xf32>
    %134 = arith.addf %131, %133 : vector<8x512xf32>
    %c56 = arith.constant 56 : index
    %c0_96 = arith.constant 0 : index
    %135 = vector.load %arg17[%c56, %c0_96] : memref<64x512xf32, #tpu.memory_space<vmem>>, vector<8x512xf32>
    tpu.vector_store %arg17[%c56, %c0_96], %134 {strides = array<i32>} : memref<64x512xf32, #tpu.memory_space<vmem>>, vector<8x512xf32>,
    %cst = arith.constant 0.000000e+00 : f32
    %136 = vector.broadcast %cst : f32 to vector<8x128xf32>
    %c0_97 = arith.constant 0 : index
    %c0_98 = arith.constant 0 : index
    %137 = vector.load %arg17[%c0_97, %c0_98] : memref<64x512xf32, #tpu.memory_space<vmem>>, vector<8x512xf32>
    %138 = arith.truncf %136 : vector<8x128xf32> to vector<8x128xbf16>
    %c0_99 = arith.constant 0 : index
    %c0_100 = arith.constant 0 : index
    %139 = vector.load %arg6[%c0_99, %c0_100] : memref<128x512xbf16, #tpu.memory_space<vmem>>, vector<128x512xbf16>
    %cst_101 = arith.constant dense<0.000000e+00> : vector<8x512xf32>
    %140 = tpu.matmul %138, %139, %cst_101 {dimension_numbers = #tpu.dot_dimension_numbers<[1], [0], [0], [1], [0, 0, 1, 1], [], []>} : vector<8x128xbf16>, vector<128x512xbf16>, vector<8x512xf32> -> vector<8x512xf32>
    %141 = arith.addf %137, %140 : vector<8x512xf32>
    %142 = vector.extract_strided_slice %141 {offsets = [0, 0], sizes = [8, 384], strides = [1, 1]} : vector<8x512xf32> to vector<8x384xf32>
    %cst_102 = arith.constant 5.000000e-01 : f32
    %143 = vector.broadcast %cst_102 : f32 to vector<8x384xf32>
    %144 = arith.mulf %143, %142 : vector<8x384xf32>
    %145 = math.tanh %144 : vector<8x384xf32>
    %cst_103 = arith.constant 5.000000e-01 : f32
    %146 = vector.broadcast %cst_103 : f32 to vector<8x384xf32>
    %147 = arith.mulf %146, %145 : vector<8x384xf32>
    %cst_104 = arith.constant 5.000000e-01 : f32
    %148 = vector.broadcast %cst_104 : f32 to vector<8x384xf32>
    %149 = arith.addf %147, %148 : vector<8x384xf32>
    %150 = vector.extract_strided_slice %149 {offsets = [0, 0], sizes = [8, 128], strides = [1, 1]} : vector<8x384xf32> to vector<8x128xf32>
    %151 = vector.extract_strided_slice %149 {offsets = [0, 128], sizes = [8, 128], strides = [1, 1]} : vector<8x384xf32> to vector<8x128xf32>
    %152 = vector.extract_strided_slice %149 {offsets = [0, 256], sizes = [8, 128], strides = [1, 1]} : vector<8x384xf32> to vector<8x128xf32>
    %153 = vector.extract_strided_slice %141 {offsets = [0, 384], sizes = [8, 128], strides = [1, 1]} : vector<8x512xf32> to vector<8x128xf32>
    %154 = math.tanh %153 : vector<8x128xf32>
    %155 = arith.mulf %151, %136 : vector<8x128xf32>
    %156 = arith.mulf %150, %154 : vector<8x128xf32>
    %157 = arith.addf %155, %156 : vector<8x128xf32>
    %158 = math.tanh %157 : vector<8x128xf32>
    %159 = arith.mulf %152, %158 : vector<8x128xf32>
    %c0_105 = arith.constant 0 : index
    %c0_106 = arith.constant 0 : index
    %160 = vector.load %arg18[%c0_105, %c0_106] : memref<64x128xf32, #tpu.memory_space<vmem>>, vector<8x128xf32>
    tpu.vector_store %arg18[%c0_105, %c0_106], %159 {strides = array<i32>} : memref<64x128xf32, #tpu.memory_space<vmem>>, vector<8x128xf32>,
    %c56_107 = arith.constant 56 : index
    %c0_108 = arith.constant 0 : index
    %161 = vector.load %arg19[%c56_107, %c0_108] : memref<64x128xf32, #tpu.memory_space<vmem>>, vector<8x128xf32>
    tpu.vector_store %arg19[%c56_107, %c0_108], %159 {strides = array<i32>} : memref<64x128xf32, #tpu.memory_space<vmem>>, vector<8x128xf32>,
    %c8_109 = arith.constant 8 : index
    %c0_110 = arith.constant 0 : index
    %162 = vector.load %arg17[%c8_109, %c0_110] : memref<64x512xf32, #tpu.memory_space<vmem>>, vector<8x512xf32>
    %163 = arith.truncf %159 : vector<8x128xf32> to vector<8x128xbf16>
    %c0_111 = arith.constant 0 : index
    %c0_112 = arith.constant 0 : index
    %164 = vector.load %arg6[%c0_111, %c0_112] : memref<128x512xbf16, #tpu.memory_space<vmem>>, vector<128x512xbf16>
    %cst_113 = arith.constant dense<0.000000e+00> : vector<8x512xf32>
    %165 = tpu.matmul %163, %164, %cst_113 {dimension_numbers = #tpu.dot_dimension_numbers<[1], [0], [0], [1], [0, 0, 1, 1], [], []>} : vector<8x128xbf16>, vector<128x512xbf16>, vector<8x512xf32> -> vector<8x512xf32>
    %166 = arith.addf %162, %165 : vector<8x512xf32>
    %167 = vector.extract_strided_slice %166 {offsets = [0, 0], sizes = [8, 384], strides = [1, 1]} : vector<8x512xf32> to vector<8x384xf32>
    %cst_114 = arith.constant 5.000000e-01 : f32
    %168 = vector.broadcast %cst_114 : f32 to vector<8x384xf32>
    %169 = arith.mulf %168, %167 : vector<8x384xf32>
    %170 = math.tanh %169 : vector<8x384xf32>
    %cst_115 = arith.constant 5.000000e-01 : f32
    %171 = vector.broadcast %cst_115 : f32 to vector<8x384xf32>
    %172 = arith.mulf %171, %170 : vector<8x384xf32>
    %cst_116 = arith.constant 5.000000e-01 : f32
    %173 = vector.broadcast %cst_116 : f32 to vector<8x384xf32>
    %174 = arith.addf %172, %173 : vector<8x384xf32>
    %175 = vector.extract_strided_slice %174 {offsets = [0, 0], sizes = [8, 128], strides = [1, 1]} : vector<8x384xf32> to vector<8x128xf32>
    %176 = vector.extract_strided_slice %174 {offsets = [0, 128], sizes = [8, 128], strides = [1, 1]} : vector<8x384xf32> to vector<8x128xf32>
    %177 = vector.extract_strided_slice %174 {offsets = [0, 256], sizes = [8, 128], strides = [1, 1]} : vector<8x384xf32> to vector<8x128xf32>
    %178 = vector.extract_strided_slice %166 {offsets = [0, 384], sizes = [8, 128], strides = [1, 1]} : vector<8x512xf32> to vector<8x128xf32>
    %179 = math.tanh %178 : vector<8x128xf32>
    %180 = arith.mulf %176, %157 : vector<8x128xf32>
    %181 = arith.mulf %175, %179 : vector<8x128xf32>
    %182 = arith.addf %180, %181 : vector<8x128xf32>
    %183 = math.tanh %182 : vector<8x128xf32>
    %184 = arith.mulf %177, %183 : vector<8x128xf32>
    %c8_117 = arith.constant 8 : index
    %c0_118 = arith.constant 0 : index
    %185 = vector.load %arg18[%c8_117, %c0_118] : memref<64x128xf32, #tpu.memory_space<vmem>>, vector<8x128xf32>
    tpu.vector_store %arg18[%c8_117, %c0_118], %184 {strides = array<i32>} : memref<64x128xf32, #tpu.memory_space<vmem>>, vector<8x128xf32>,
    %c48_119 = arith.constant 48 : index
    %c0_120 = arith.constant 0 : index
    %186 = vector.load %arg19[%c48_119, %c0_120] : memref<64x128xf32, #tpu.memory_space<vmem>>, vector<8x128xf32>
    tpu.vector_store %arg19[%c48_119, %c0_120], %184 {strides = array<i32>} : memref<64x128xf32, #tpu.memory_space<vmem>>, vector<8x128xf32>,
    %c16_121 = arith.constant 16 : index
    %c0_122 = arith.constant 0 : index
    %187 = vector.load %arg17[%c16_121, %c0_122] : memref<64x512xf32, #tpu.memory_space<vmem>>, vector<8x512xf32>
    %188 = arith.truncf %184 : vector<8x128xf32> to vector<8x128xbf16>
    %c0_123 = arith.constant 0 : index
    %c0_124 = arith.constant 0 : index
    %189 = vector.load %arg6[%c0_123, %c0_124] : memref<128x512xbf16, #tpu.memory_space<vmem>>, vector<128x512xbf16>
    %cst_125 = arith.constant dense<0.000000e+00> : vector<8x512xf32>
    %190 = tpu.matmul %188, %189, %cst_125 {dimension_numbers = #tpu.dot_dimension_numbers<[1], [0], [0], [1], [0, 0, 1, 1], [], []>} : vector<8x128xbf16>, vector<128x512xbf16>, vector<8x512xf32> -> vector<8x512xf32>
    %191 = arith.addf %187, %190 : vector<8x512xf32>
    %192 = vector.extract_strided_slice %191 {offsets = [0, 0], sizes = [8, 384], strides = [1, 1]} : vector<8x512xf32> to vector<8x384xf32>
    %cst_126 = arith.constant 5.000000e-01 : f32
    %193 = vector.broadcast %cst_126 : f32 to vector<8x384xf32>
    %194 = arith.mulf %193, %192 : vector<8x384xf32>
    %195 = math.tanh %194 : vector<8x384xf32>
    %cst_127 = arith.constant 5.000000e-01 : f32
    %196 = vector.broadcast %cst_127 : f32 to vector<8x384xf32>
    %197 = arith.mulf %196, %195 : vector<8x384xf32>
    %cst_128 = arith.constant 5.000000e-01 : f32
    %198 = vector.broadcast %cst_128 : f32 to vector<8x384xf32>
    %199 = arith.addf %197, %198 : vector<8x384xf32>
    %200 = vector.extract_strided_slice %199 {offsets = [0, 0], sizes = [8, 128], strides = [1, 1]} : vector<8x384xf32> to vector<8x128xf32>
    %201 = vector.extract_strided_slice %199 {offsets = [0, 128], sizes = [8, 128], strides = [1, 1]} : vector<8x384xf32> to vector<8x128xf32>
    %202 = vector.extract_strided_slice %199 {offsets = [0, 256], sizes = [8, 128], strides = [1, 1]} : vector<8x384xf32> to vector<8x128xf32>
    %203 = vector.extract_strided_slice %191 {offsets = [0, 384], sizes = [8, 128], strides = [1, 1]} : vector<8x512xf32> to vector<8x128xf32>
    %204 = math.tanh %203 : vector<8x128xf32>
    %205 = arith.mulf %201, %182 : vector<8x128xf32>
    %206 = arith.mulf %200, %204 : vector<8x128xf32>
    %207 = arith.addf %205, %206 : vector<8x128xf32>
    %208 = math.tanh %207 : vector<8x128xf32>
    %209 = arith.mulf %202, %208 : vector<8x128xf32>
    %c16_129 = arith.constant 16 : index
    %c0_130 = arith.constant 0 : index
    %210 = vector.load %arg18[%c16_129, %c0_130] : memref<64x128xf32, #tpu.memory_space<vmem>>, vector<8x128xf32>
    tpu.vector_store %arg18[%c16_129, %c0_130], %209 {strides = array<i32>} : memref<64x128xf32, #tpu.memory_space<vmem>>, vector<8x128xf32>,
    %c40_131 = arith.constant 40 : index
    %c0_132 = arith.constant 0 : index
    %211 = vector.load %arg19[%c40_131, %c0_132] : memref<64x128xf32, #tpu.memory_space<vmem>>, vector<8x128xf32>
    tpu.vector_store %arg19[%c40_131, %c0_132], %209 {strides = array<i32>} : memref<64x128xf32, #tpu.memory_space<vmem>>, vector<8x128xf32>,
    %c24_133 = arith.constant 24 : index
    %c0_134 = arith.constant 0 : index
    %212 = vector.load %arg17[%c24_133, %c0_134] : memref<64x512xf32, #tpu.memory_space<vmem>>, vector<8x512xf32>
    %213 = arith.truncf %209 : vector<8x128xf32> to vector<8x128xbf16>
    %c0_135 = arith.constant 0 : index
    %c0_136 = arith.constant 0 : index
    %214 = vector.load %arg6[%c0_135, %c0_136] : memref<128x512xbf16, #tpu.memory_space<vmem>>, vector<128x512xbf16>
    %cst_137 = arith.constant dense<0.000000e+00> : vector<8x512xf32>
    %215 = tpu.matmul %213, %214, %cst_137 {dimension_numbers = #tpu.dot_dimension_numbers<[1], [0], [0], [1], [0, 0, 1, 1], [], []>} : vector<8x128xbf16>, vector<128x512xbf16>, vector<8x512xf32> -> vector<8x512xf32>
    %216 = arith.addf %212, %215 : vector<8x512xf32>
    %217 = vector.extract_strided_slice %216 {offsets = [0, 0], sizes = [8, 384], strides = [1, 1]} : vector<8x512xf32> to vector<8x384xf32>
    %cst_138 = arith.constant 5.000000e-01 : f32
    %218 = vector.broadcast %cst_138 : f32 to vector<8x384xf32>
    %219 = arith.mulf %218, %217 : vector<8x384xf32>
    %220 = math.tanh %219 : vector<8x384xf32>
    %cst_139 = arith.constant 5.000000e-01 : f32
    %221 = vector.broadcast %cst_139 : f32 to vector<8x384xf32>
    %222 = arith.mulf %221, %220 : vector<8x384xf32>
    %cst_140 = arith.constant 5.000000e-01 : f32
    %223 = vector.broadcast %cst_140 : f32 to vector<8x384xf32>
    %224 = arith.addf %222, %223 : vector<8x384xf32>
    %225 = vector.extract_strided_slice %224 {offsets = [0, 0], sizes = [8, 128], strides = [1, 1]} : vector<8x384xf32> to vector<8x128xf32>
    %226 = vector.extract_strided_slice %224 {offsets = [0, 128], sizes = [8, 128], strides = [1, 1]} : vector<8x384xf32> to vector<8x128xf32>
    %227 = vector.extract_strided_slice %224 {offsets = [0, 256], sizes = [8, 128], strides = [1, 1]} : vector<8x384xf32> to vector<8x128xf32>
    %228 = vector.extract_strided_slice %216 {offsets = [0, 384], sizes = [8, 128], strides = [1, 1]} : vector<8x512xf32> to vector<8x128xf32>
    %229 = math.tanh %228 : vector<8x128xf32>
    %230 = arith.mulf %226, %207 : vector<8x128xf32>
    %231 = arith.mulf %225, %229 : vector<8x128xf32>
    %232 = arith.addf %230, %231 : vector<8x128xf32>
    %233 = math.tanh %232 : vector<8x128xf32>
    %234 = arith.mulf %227, %233 : vector<8x128xf32>
    %c24_141 = arith.constant 24 : index
    %c0_142 = arith.constant 0 : index
    %235 = vector.load %arg18[%c24_141, %c0_142] : memref<64x128xf32, #tpu.memory_space<vmem>>, vector<8x128xf32>
    tpu.vector_store %arg18[%c24_141, %c0_142], %234 {strides = array<i32>} : memref<64x128xf32, #tpu.memory_space<vmem>>, vector<8x128xf32>,
    %c32_143 = arith.constant 32 : index
    %c0_144 = arith.constant 0 : index
    %236 = vector.load %arg19[%c32_143, %c0_144] : memref<64x128xf32, #tpu.memory_space<vmem>>, vector<8x128xf32>
    tpu.vector_store %arg19[%c32_143, %c0_144], %234 {strides = array<i32>} : memref<64x128xf32, #tpu.memory_space<vmem>>, vector<8x128xf32>,
    %c32_145 = arith.constant 32 : index
    %c0_146 = arith.constant 0 : index
    %237 = vector.load %arg17[%c32_145, %c0_146] : memref<64x512xf32, #tpu.memory_space<vmem>>, vector<8x512xf32>
    %238 = arith.truncf %234 : vector<8x128xf32> to vector<8x128xbf16>
    %c0_147 = arith.constant 0 : index
    %c0_148 = arith.constant 0 : index
    %239 = vector.load %arg6[%c0_147, %c0_148] : memref<128x512xbf16, #tpu.memory_space<vmem>>, vector<128x512xbf16>
    %cst_149 = arith.constant dense<0.000000e+00> : vector<8x512xf32>
    %240 = tpu.matmul %238, %239, %cst_149 {dimension_numbers = #tpu.dot_dimension_numbers<[1], [0], [0], [1], [0, 0, 1, 1], [], []>} : vector<8x128xbf16>, vector<128x512xbf16>, vector<8x512xf32> -> vector<8x512xf32>
    %241 = arith.addf %237, %240 : vector<8x512xf32>
    %242 = vector.extract_strided_slice %241 {offsets = [0, 0], sizes = [8, 384], strides = [1, 1]} : vector<8x512xf32> to vector<8x384xf32>
    %cst_150 = arith.constant 5.000000e-01 : f32
    %243 = vector.broadcast %cst_150 : f32 to vector<8x384xf32>
    %244 = arith.mulf %243, %242 : vector<8x384xf32>
    %245 = math.tanh %244 : vector<8x384xf32>
    %cst_151 = arith.constant 5.000000e-01 : f32
    %246 = vector.broadcast %cst_151 : f32 to vector<8x384xf32>
    %247 = arith.mulf %246, %245 : vector<8x384xf32>
    %cst_152 = arith.constant 5.000000e-01 : f32
    %248 = vector.broadcast %cst_152 : f32 to vector<8x384xf32>
    %249 = arith.addf %247, %248 : vector<8x384xf32>
    %250 = vector.extract_strided_slice %249 {offsets = [0, 0], sizes = [8, 128], strides = [1, 1]} : vector<8x384xf32> to vector<8x128xf32>
    %251 = vector.extract_strided_slice %249 {offsets = [0, 128], sizes = [8, 128], strides = [1, 1]} : vector<8x384xf32> to vector<8x128xf32>
    %252 = vector.extract_strided_slice %249 {offsets = [0, 256], sizes = [8, 128], strides = [1, 1]} : vector<8x384xf32> to vector<8x128xf32>
    %253 = vector.extract_strided_slice %241 {offsets = [0, 384], sizes = [8, 128], strides = [1, 1]} : vector<8x512xf32> to vector<8x128xf32>
    %254 = math.tanh %253 : vector<8x128xf32>
    %255 = arith.mulf %251, %232 : vector<8x128xf32>
    %256 = arith.mulf %250, %254 : vector<8x128xf32>
    %257 = arith.addf %255, %256 : vector<8x128xf32>
    %258 = math.tanh %257 : vector<8x128xf32>
    %259 = arith.mulf %252, %258 : vector<8x128xf32>
    %c32_153 = arith.constant 32 : index
    %c0_154 = arith.constant 0 : index
    %260 = vector.load %arg18[%c32_153, %c0_154] : memref<64x128xf32, #tpu.memory_space<vmem>>, vector<8x128xf32>
    tpu.vector_store %arg18[%c32_153, %c0_154], %259 {strides = array<i32>} : memref<64x128xf32, #tpu.memory_space<vmem>>, vector<8x128xf32>,
    %c24_155 = arith.constant 24 : index
    %c0_156 = arith.constant 0 : index
    %261 = vector.load %arg19[%c24_155, %c0_156] : memref<64x128xf32, #tpu.memory_space<vmem>>, vector<8x128xf32>
    tpu.vector_store %arg19[%c24_155, %c0_156], %259 {strides = array<i32>} : memref<64x128xf32, #tpu.memory_space<vmem>>, vector<8x128xf32>,
    %c40_157 = arith.constant 40 : index
    %c0_158 = arith.constant 0 : index
    %262 = vector.load %arg17[%c40_157, %c0_158] : memref<64x512xf32, #tpu.memory_space<vmem>>, vector<8x512xf32>
    %263 = arith.truncf %259 : vector<8x128xf32> to vector<8x128xbf16>
    %c0_159 = arith.constant 0 : index
    %c0_160 = arith.constant 0 : index
    %264 = vector.load %arg6[%c0_159, %c0_160] : memref<128x512xbf16, #tpu.memory_space<vmem>>, vector<128x512xbf16>
    %cst_161 = arith.constant dense<0.000000e+00> : vector<8x512xf32>
    %265 = tpu.matmul %263, %264, %cst_161 {dimension_numbers = #tpu.dot_dimension_numbers<[1], [0], [0], [1], [0, 0, 1, 1], [], []>} : vector<8x128xbf16>, vector<128x512xbf16>, vector<8x512xf32> -> vector<8x512xf32>
    %266 = arith.addf %262, %265 : vector<8x512xf32>
    %267 = vector.extract_strided_slice %266 {offsets = [0, 0], sizes = [8, 384], strides = [1, 1]} : vector<8x512xf32> to vector<8x384xf32>
    %cst_162 = arith.constant 5.000000e-01 : f32
    %268 = vector.broadcast %cst_162 : f32 to vector<8x384xf32>
    %269 = arith.mulf %268, %267 : vector<8x384xf32>
    %270 = math.tanh %269 : vector<8x384xf32>
    %cst_163 = arith.constant 5.000000e-01 : f32
    %271 = vector.broadcast %cst_163 : f32 to vector<8x384xf32>
    %272 = arith.mulf %271, %270 : vector<8x384xf32>
    %cst_164 = arith.constant 5.000000e-01 : f32
    %273 = vector.broadcast %cst_164 : f32 to vector<8x384xf32>
    %274 = arith.addf %272, %273 : vector<8x384xf32>
    %275 = vector.extract_strided_slice %274 {offsets = [0, 0], sizes = [8, 128], strides = [1, 1]} : vector<8x384xf32> to vector<8x128xf32>
    %276 = vector.extract_strided_slice %274 {offsets = [0, 128], sizes = [8, 128], strides = [1, 1]} : vector<8x384xf32> to vector<8x128xf32>
    %277 = vector.extract_strided_slice %274 {offsets = [0, 256], sizes = [8, 128], strides = [1, 1]} : vector<8x384xf32> to vector<8x128xf32>
    %278 = vector.extract_strided_slice %266 {offsets = [0, 384], sizes = [8, 128], strides = [1, 1]} : vector<8x512xf32> to vector<8x128xf32>
    %279 = math.tanh %278 : vector<8x128xf32>
    %280 = arith.mulf %276, %257 : vector<8x128xf32>
    %281 = arith.mulf %275, %279 : vector<8x128xf32>
    %282 = arith.addf %280, %281 : vector<8x128xf32>
    %283 = math.tanh %282 : vector<8x128xf32>
    %284 = arith.mulf %277, %283 : vector<8x128xf32>
    %c40_165 = arith.constant 40 : index
    %c0_166 = arith.constant 0 : index
    %285 = vector.load %arg18[%c40_165, %c0_166] : memref<64x128xf32, #tpu.memory_space<vmem>>, vector<8x128xf32>
    tpu.vector_store %arg18[%c40_165, %c0_166], %284 {strides = array<i32>} : memref<64x128xf32, #tpu.memory_space<vmem>>, vector<8x128xf32>,
    %c16_167 = arith.constant 16 : index
    %c0_168 = arith.constant 0 : index
    %286 = vector.load %arg19[%c16_167, %c0_168] : memref<64x128xf32, #tpu.memory_space<vmem>>, vector<8x128xf32>
    tpu.vector_store %arg19[%c16_167, %c0_168], %284 {strides = array<i32>} : memref<64x128xf32, #tpu.memory_space<vmem>>, vector<8x128xf32>,
    %c48_169 = arith.constant 48 : index
    %c0_170 = arith.constant 0 : index
    %287 = vector.load %arg17[%c48_169, %c0_170] : memref<64x512xf32, #tpu.memory_space<vmem>>, vector<8x512xf32>
    %288 = arith.truncf %284 : vector<8x128xf32> to vector<8x128xbf16>
    %c0_171 = arith.constant 0 : index
    %c0_172 = arith.constant 0 : index
    %289 = vector.load %arg6[%c0_171, %c0_172] : memref<128x512xbf16, #tpu.memory_space<vmem>>, vector<128x512xbf16>
    %cst_173 = arith.constant dense<0.000000e+00> : vector<8x512xf32>
    %290 = tpu.matmul %288, %289, %cst_173 {dimension_numbers = #tpu.dot_dimension_numbers<[1], [0], [0], [1], [0, 0, 1, 1], [], []>} : vector<8x128xbf16>, vector<128x512xbf16>, vector<8x512xf32> -> vector<8x512xf32>
    %291 = arith.addf %287, %290 : vector<8x512xf32>
    %292 = vector.extract_strided_slice %291 {offsets = [0, 0], sizes = [8, 384], strides = [1, 1]} : vector<8x512xf32> to vector<8x384xf32>
    %cst_174 = arith.constant 5.000000e-01 : f32
    %293 = vector.broadcast %cst_174 : f32 to vector<8x384xf32>
    %294 = arith.mulf %293, %292 : vector<8x384xf32>
    %295 = math.tanh %294 : vector<8x384xf32>
    %cst_175 = arith.constant 5.000000e-01 : f32
    %296 = vector.broadcast %cst_175 : f32 to vector<8x384xf32>
    %297 = arith.mulf %296, %295 : vector<8x384xf32>
    %cst_176 = arith.constant 5.000000e-01 : f32
    %298 = vector.broadcast %cst_176 : f32 to vector<8x384xf32>
    %299 = arith.addf %297, %298 : vector<8x384xf32>
    %300 = vector.extract_strided_slice %299 {offsets = [0, 0], sizes = [8, 128], strides = [1, 1]} : vector<8x384xf32> to vector<8x128xf32>
    %301 = vector.extract_strided_slice %299 {offsets = [0, 128], sizes = [8, 128], strides = [1, 1]} : vector<8x384xf32> to vector<8x128xf32>
    %302 = vector.extract_strided_slice %299 {offsets = [0, 256], sizes = [8, 128], strides = [1, 1]} : vector<8x384xf32> to vector<8x128xf32>
    %303 = vector.extract_strided_slice %291 {offsets = [0, 384], sizes = [8, 128], strides = [1, 1]} : vector<8x512xf32> to vector<8x128xf32>
    %304 = math.tanh %303 : vector<8x128xf32>
    %305 = arith.mulf %301, %282 : vector<8x128xf32>
    %306 = arith.mulf %300, %304 : vector<8x128xf32>
    %307 = arith.addf %305, %306 : vector<8x128xf32>
    %308 = math.tanh %307 : vector<8x128xf32>
    %309 = arith.mulf %302, %308 : vector<8x128xf32>
    %c48_177 = arith.constant 48 : index
    %c0_178 = arith.constant 0 : index
    %310 = vector.load %arg18[%c48_177, %c0_178] : memref<64x128xf32, #tpu.memory_space<vmem>>, vector<8x128xf32>
    tpu.vector_store %arg18[%c48_177, %c0_178], %309 {strides = array<i32>} : memref<64x128xf32, #tpu.memory_space<vmem>>, vector<8x128xf32>,
    %c8_179 = arith.constant 8 : index
    %c0_180 = arith.constant 0 : index
    %311 = vector.load %arg19[%c8_179, %c0_180] : memref<64x128xf32, #tpu.memory_space<vmem>>, vector<8x128xf32>
    tpu.vector_store %arg19[%c8_179, %c0_180], %309 {strides = array<i32>} : memref<64x128xf32, #tpu.memory_space<vmem>>, vector<8x128xf32>,
    %c56_181 = arith.constant 56 : index
    %c0_182 = arith.constant 0 : index
    %312 = vector.load %arg17[%c56_181, %c0_182] : memref<64x512xf32, #tpu.memory_space<vmem>>, vector<8x512xf32>
    %313 = arith.truncf %309 : vector<8x128xf32> to vector<8x128xbf16>
    %c0_183 = arith.constant 0 : index
    %c0_184 = arith.constant 0 : index
    %314 = vector.load %arg6[%c0_183, %c0_184] : memref<128x512xbf16, #tpu.memory_space<vmem>>, vector<128x512xbf16>
    %cst_185 = arith.constant dense<0.000000e+00> : vector<8x512xf32>
    %315 = tpu.matmul %313, %314, %cst_185 {dimension_numbers = #tpu.dot_dimension_numbers<[1], [0], [0], [1], [0, 0, 1, 1], [], []>} : vector<8x128xbf16>, vector<128x512xbf16>, vector<8x512xf32> -> vector<8x512xf32>
    %316 = arith.addf %312, %315 : vector<8x512xf32>
    %317 = vector.extract_strided_slice %316 {offsets = [0, 0], sizes = [8, 384], strides = [1, 1]} : vector<8x512xf32> to vector<8x384xf32>
    %cst_186 = arith.constant 5.000000e-01 : f32
    %318 = vector.broadcast %cst_186 : f32 to vector<8x384xf32>
    %319 = arith.mulf %318, %317 : vector<8x384xf32>
    %320 = math.tanh %319 : vector<8x384xf32>
    %cst_187 = arith.constant 5.000000e-01 : f32
    %321 = vector.broadcast %cst_187 : f32 to vector<8x384xf32>
    %322 = arith.mulf %321, %320 : vector<8x384xf32>
    %cst_188 = arith.constant 5.000000e-01 : f32
    %323 = vector.broadcast %cst_188 : f32 to vector<8x384xf32>
    %324 = arith.addf %322, %323 : vector<8x384xf32>
    %325 = vector.extract_strided_slice %324 {offsets = [0, 0], sizes = [8, 128], strides = [1, 1]} : vector<8x384xf32> to vector<8x128xf32>
    %326 = vector.extract_strided_slice %324 {offsets = [0, 128], sizes = [8, 128], strides = [1, 1]} : vector<8x384xf32> to vector<8x128xf32>
    %327 = vector.extract_strided_slice %324 {offsets = [0, 256], sizes = [8, 128], strides = [1, 1]} : vector<8x384xf32> to vector<8x128xf32>
    %328 = vector.extract_strided_slice %316 {offsets = [0, 384], sizes = [8, 128], strides = [1, 1]} : vector<8x512xf32> to vector<8x128xf32>
    %329 = math.tanh %328 : vector<8x128xf32>
    %330 = arith.mulf %326, %307 : vector<8x128xf32>
    %331 = arith.mulf %325, %329 : vector<8x128xf32>
    %332 = arith.addf %330, %331 : vector<8x128xf32>
    %333 = math.tanh %332 : vector<8x128xf32>
    %334 = arith.mulf %327, %333 : vector<8x128xf32>
    %c56_189 = arith.constant 56 : index
    %c0_190 = arith.constant 0 : index
    %335 = vector.load %arg18[%c56_189, %c0_190] : memref<64x128xf32, #tpu.memory_space<vmem>>, vector<8x128xf32>
    tpu.vector_store %arg18[%c56_189, %c0_190], %334 {strides = array<i32>} : memref<64x128xf32, #tpu.memory_space<vmem>>, vector<8x128xf32>,
    %c0_191 = arith.constant 0 : index
    %c0_192 = arith.constant 0 : index
    %336 = vector.load %arg19[%c0_191, %c0_192] : memref<64x128xf32, #tpu.memory_space<vmem>>, vector<8x128xf32>
    tpu.vector_store %arg19[%c0_191, %c0_192], %334 {strides = array<i32>} : memref<64x128xf32, #tpu.memory_space<vmem>>, vector<8x128xf32>,
    %337 = tpu.iota {dimensions = array<i32: 1>} : vector<64x128xi32>
    %c64_i32 = arith.constant 64 : i32
    %338 = vector.broadcast %c64_i32 : i32 to vector<64x128xi32>
    %339 = arith.cmpi slt, %337, %338 : vector<64x128xi32>
    %c0_193 = arith.constant 0 : index
    %c0_194 = arith.constant 0 : index
    %340 = vector.load %arg18[%c0_193, %c0_194] : memref<64x128xf32, #tpu.memory_space<vmem>>, vector<64x128xf32>
    %c0_195 = arith.constant 0 : index
    %c0_196 = arith.constant 0 : index
    %341 = vector.load %arg19[%c0_195, %c0_196] : memref<64x128xf32, #tpu.memory_space<vmem>>, vector<64x128xf32>
    %342 = arith.select %339, %340, %341 : vector<64x128xi1>, vector<64x128xf32>
    %c0_197 = arith.constant 0 : index
    %c0_198 = arith.constant 0 : index
    %343 = vector.load %arg20[%c0_197, %c0_198] : memref<64x256xf32, #tpu.memory_space<vmem>>, vector<64x128xf32>
    tpu.vector_store %arg20[%c0_197, %c0_198], %342 {strides = array<i32>} : memref<64x256xf32, #tpu.memory_space<vmem>>, vector<64x128xf32>,
    %344 = vector.extract_strided_slice %342 {offsets = [56, 0], sizes = [8, 128], strides = [1, 1]} : vector<64x128xf32> to vector<8x128xf32>
    %c0_199 = arith.constant 0 : index
    %c128 = arith.constant 128 : index
    %345 = vector.load %arg20[%c0_199, %c128] : memref<64x256xf32, #tpu.memory_space<vmem>>, vector<8x128xf32>
    tpu.vector_store %arg20[%c0_199, %c128], %344 {strides = array<i32>} : memref<64x256xf32, #tpu.memory_space<vmem>>, vector<8x128xf32>,
    %346 = vector.extract_strided_slice %342 {offsets = [48, 0], sizes = [8, 128], strides = [1, 1]} : vector<64x128xf32> to vector<8x128xf32>
    %c8_200 = arith.constant 8 : index
    %c128_201 = arith.constant 128 : index
    %347 = vector.load %arg20[%c8_200, %c128_201] : memref<64x256xf32, #tpu.memory_space<vmem>>, vector<8x128xf32>
    tpu.vector_store %arg20[%c8_200, %c128_201], %346 {strides = array<i32>} : memref<64x256xf32, #tpu.memory_space<vmem>>, vector<8x128xf32>,
    %348 = vector.extract_strided_slice %342 {offsets = [40, 0], sizes = [8, 128], strides = [1, 1]} : vector<64x128xf32> to vector<8x128xf32>
    %c16_202 = arith.constant 16 : index
    %c128_203 = arith.constant 128 : index
    %349 = vector.load %arg20[%c16_202, %c128_203] : memref<64x256xf32, #tpu.memory_space<vmem>>, vector<8x128xf32>
    tpu.vector_store %arg20[%c16_202, %c128_203], %348 {strides = array<i32>} : memref<64x256xf32, #tpu.memory_space<vmem>>, vector<8x128xf32>,
    %350 = vector.extract_strided_slice %342 {offsets = [32, 0], sizes = [8, 128], strides = [1, 1]} : vector<64x128xf32> to vector<8x128xf32>
    %c24_204 = arith.constant 24 : index
    %c128_205 = arith.constant 128 : index
    %351 = vector.load %arg20[%c24_204, %c128_205] : memref<64x256xf32, #tpu.memory_space<vmem>>, vector<8x128xf32>
    tpu.vector_store %arg20[%c24_204, %c128_205], %350 {strides = array<i32>} : memref<64x256xf32, #tpu.memory_space<vmem>>, vector<8x128xf32>,
    %352 = vector.extract_strided_slice %342 {offsets = [24, 0], sizes = [8, 128], strides = [1, 1]} : vector<64x128xf32> to vector<8x128xf32>
    %c32_206 = arith.constant 32 : index
    %c128_207 = arith.constant 128 : index
    %353 = vector.load %arg20[%c32_206, %c128_207] : memref<64x256xf32, #tpu.memory_space<vmem>>, vector<8x128xf32>
    tpu.vector_store %arg20[%c32_206, %c128_207], %352 {strides = array<i32>} : memref<64x256xf32, #tpu.memory_space<vmem>>, vector<8x128xf32>,
    %354 = vector.extract_strided_slice %342 {offsets = [16, 0], sizes = [8, 128], strides = [1, 1]} : vector<64x128xf32> to vector<8x128xf32>
    %c40_208 = arith.constant 40 : index
    %c128_209 = arith.constant 128 : index
    %355 = vector.load %arg20[%c40_208, %c128_209] : memref<64x256xf32, #tpu.memory_space<vmem>>, vector<8x128xf32>
    tpu.vector_store %arg20[%c40_208, %c128_209], %354 {strides = array<i32>} : memref<64x256xf32, #tpu.memory_space<vmem>>, vector<8x128xf32>,
    %356 = vector.extract_strided_slice %342 {offsets = [8, 0], sizes = [8, 128], strides = [1, 1]} : vector<64x128xf32> to vector<8x128xf32>
    %c48_210 = arith.constant 48 : index
    %c128_211 = arith.constant 128 : index
    %357 = vector.load %arg20[%c48_210, %c128_211] : memref<64x256xf32, #tpu.memory_space<vmem>>, vector<8x128xf32>
    tpu.vector_store %arg20[%c48_210, %c128_211], %356 {strides = array<i32>} : memref<64x256xf32, #tpu.memory_space<vmem>>, vector<8x128xf32>,
    %358 = vector.extract_strided_slice %342 {offsets = [0, 0], sizes = [8, 128], strides = [1, 1]} : vector<64x128xf32> to vector<8x128xf32>
    %c56_212 = arith.constant 56 : index
    %c128_213 = arith.constant 128 : index
    %359 = vector.load %arg20[%c56_212, %c128_213] : memref<64x256xf32, #tpu.memory_space<vmem>>, vector<8x128xf32>
    tpu.vector_store %arg20[%c56_212, %c128_213], %358 {strides = array<i32>} : memref<64x256xf32, #tpu.memory_space<vmem>>, vector<8x128xf32>,
    %c0_214 = arith.constant 0 : index
    %c0_215 = arith.constant 0 : index
    %360 = vector.load %arg20[%c0_214, %c0_215] : memref<64x256xf32, #tpu.memory_space<vmem>>, vector<64x256xf32>
    %361 = arith.truncf %360 : vector<64x256xf32> to vector<64x256xbf16>
    %c0_216 = arith.constant 0 : index
    %c0_217 = arith.constant 0 : index
    %362 = vector.load %arg7[%c0_216, %c0_217] : memref<256x512xbf16, #tpu.memory_space<vmem>>, vector<256x512xbf16>
    %cst_218 = arith.constant dense<0.000000e+00> : vector<64x512xf32>
    %363 = tpu.matmul %361, %362, %cst_218 {dimension_numbers = #tpu.dot_dimension_numbers<[1], [0], [0], [1], [0, 0, 1, 1], [], []>} : vector<64x256xbf16>, vector<256x512xbf16>, vector<64x512xf32> -> vector<64x512xf32>
    %c0_219 = arith.constant 0 : index
    %c0_220 = arith.constant 0 : index
    %364 = vector.load %arg8[%c0_219, %c0_220] : memref<1x512xf32, #tpu.memory_space<vmem>>, vector<1x512xf32>
    %365 = vector.broadcast %364 : vector<1x512xf32> to vector<64x512xf32>
    %366 = arith.addf %363, %365 : vector<64x512xf32>
    %c0_221 = arith.constant 0 : index
    %c0_222 = arith.constant 0 : index
    %367 = vector.load %arg17[%c0_221, %c0_222] : memref<64x512xf32, #tpu.memory_space<vmem>>, vector<64x512xf32>
    tpu.vector_store %arg17[%c0_221, %c0_222], %366 {strides = array<i32>} : memref<64x512xf32, #tpu.memory_space<vmem>>, vector<64x512xf32>,
    %c0_223 = arith.constant 0 : index
    %c0_224 = arith.constant 0 : index
    %368 = vector.load %arg17[%c0_223, %c0_224] : memref<64x512xf32, #tpu.memory_space<vmem>>, vector<8x512xf32>
    %369 = arith.truncf %136 : vector<8x128xf32> to vector<8x128xbf16>
    %c0_225 = arith.constant 0 : index
    %c0_226 = arith.constant 0 : index
    %370 = vector.load %arg9[%c0_225, %c0_226] : memref<128x512xbf16, #tpu.memory_space<vmem>>, vector<128x512xbf16>
    %cst_227 = arith.constant dense<0.000000e+00> : vector<8x512xf32>
    %371 = tpu.matmul %369, %370, %cst_227 {dimension_numbers = #tpu.dot_dimension_numbers<[1], [0], [0], [1], [0, 0, 1, 1], [], []>} : vector<8x128xbf16>, vector<128x512xbf16>, vector<8x512xf32> -> vector<8x512xf32>
    %372 = arith.addf %368, %371 : vector<8x512xf32>
    %373 = vector.extract_strided_slice %372 {offsets = [0, 0], sizes = [8, 384], strides = [1, 1]} : vector<8x512xf32> to vector<8x384xf32>
    %cst_228 = arith.constant 5.000000e-01 : f32
    %374 = vector.broadcast %cst_228 : f32 to vector<8x384xf32>
    %375 = arith.mulf %374, %373 : vector<8x384xf32>
    %376 = math.tanh %375 : vector<8x384xf32>
    %cst_229 = arith.constant 5.000000e-01 : f32
    %377 = vector.broadcast %cst_229 : f32 to vector<8x384xf32>
    %378 = arith.mulf %377, %376 : vector<8x384xf32>
    %cst_230 = arith.constant 5.000000e-01 : f32
    %379 = vector.broadcast %cst_230 : f32 to vector<8x384xf32>
    %380 = arith.addf %378, %379 : vector<8x384xf32>
    %381 = vector.extract_strided_slice %380 {offsets = [0, 0], sizes = [8, 128], strides = [1, 1]} : vector<8x384xf32> to vector<8x128xf32>
    %382 = vector.extract_strided_slice %380 {offsets = [0, 128], sizes = [8, 128], strides = [1, 1]} : vector<8x384xf32> to vector<8x128xf32>
    %383 = vector.extract_strided_slice %380 {offsets = [0, 256], sizes = [8, 128], strides = [1, 1]} : vector<8x384xf32> to vector<8x128xf32>
    %384 = vector.extract_strided_slice %372 {offsets = [0, 384], sizes = [8, 128], strides = [1, 1]} : vector<8x512xf32> to vector<8x128xf32>
    %385 = math.tanh %384 : vector<8x128xf32>
    %386 = arith.mulf %382, %136 : vector<8x128xf32>
    %387 = arith.mulf %381, %385 : vector<8x128xf32>
    %388 = arith.addf %386, %387 : vector<8x128xf32>
    %389 = math.tanh %388 : vector<8x128xf32>
    %390 = arith.mulf %383, %389 : vector<8x128xf32>
    %c8_231 = arith.constant 8 : index
    %c0_232 = arith.constant 0 : index
    %391 = vector.load %arg17[%c8_231, %c0_232] : memref<64x512xf32, #tpu.memory_space<vmem>>, vector<8x512xf32>
    %392 = arith.truncf %390 : vector<8x128xf32> to vector<8x128xbf16>
    %c0_233 = arith.constant 0 : index
    %c0_234 = arith.constant 0 : index
    %393 = vector.load %arg9[%c0_233, %c0_234] : memref<128x512xbf16, #tpu.memory_space<vmem>>, vector<128x512xbf16>
    %cst_235 = arith.constant dense<0.000000e+00> : vector<8x512xf32>
    %394 = tpu.matmul %392, %393, %cst_235 {dimension_numbers = #tpu.dot_dimension_numbers<[1], [0], [0], [1], [0, 0, 1, 1], [], []>} : vector<8x128xbf16>, vector<128x512xbf16>, vector<8x512xf32> -> vector<8x512xf32>
    %395 = arith.addf %391, %394 : vector<8x512xf32>
    %396 = vector.extract_strided_slice %395 {offsets = [0, 0], sizes = [8, 384], strides = [1, 1]} : vector<8x512xf32> to vector<8x384xf32>
    %cst_236 = arith.constant 5.000000e-01 : f32
    %397 = vector.broadcast %cst_236 : f32 to vector<8x384xf32>
    %398 = arith.mulf %397, %396 : vector<8x384xf32>
    %399 = math.tanh %398 : vector<8x384xf32>
    %cst_237 = arith.constant 5.000000e-01 : f32
    %400 = vector.broadcast %cst_237 : f32 to vector<8x384xf32>
    %401 = arith.mulf %400, %399 : vector<8x384xf32>
    %cst_238 = arith.constant 5.000000e-01 : f32
    %402 = vector.broadcast %cst_238 : f32 to vector<8x384xf32>
    %403 = arith.addf %401, %402 : vector<8x384xf32>
    %404 = vector.extract_strided_slice %403 {offsets = [0, 0], sizes = [8, 128], strides = [1, 1]} : vector<8x384xf32> to vector<8x128xf32>
    %405 = vector.extract_strided_slice %403 {offsets = [0, 128], sizes = [8, 128], strides = [1, 1]} : vector<8x384xf32> to vector<8x128xf32>
    %406 = vector.extract_strided_slice %403 {offsets = [0, 256], sizes = [8, 128], strides = [1, 1]} : vector<8x384xf32> to vector<8x128xf32>
    %407 = vector.extract_strided_slice %395 {offsets = [0, 384], sizes = [8, 128], strides = [1, 1]} : vector<8x512xf32> to vector<8x128xf32>
    %408 = math.tanh %407 : vector<8x128xf32>
    %409 = arith.mulf %405, %388 : vector<8x128xf32>
    %410 = arith.mulf %404, %408 : vector<8x128xf32>
    %411 = arith.addf %409, %410 : vector<8x128xf32>
    %412 = math.tanh %411 : vector<8x128xf32>
    %413 = arith.mulf %406, %412 : vector<8x128xf32>
    %c16_239 = arith.constant 16 : index
    %c0_240 = arith.constant 0 : index
    %414 = vector.load %arg17[%c16_239, %c0_240] : memref<64x512xf32, #tpu.memory_space<vmem>>, vector<8x512xf32>
    %415 = arith.truncf %413 : vector<8x128xf32> to vector<8x128xbf16>
    %c0_241 = arith.constant 0 : index
    %c0_242 = arith.constant 0 : index
    %416 = vector.load %arg9[%c0_241, %c0_242] : memref<128x512xbf16, #tpu.memory_space<vmem>>, vector<128x512xbf16>
    %cst_243 = arith.constant dense<0.000000e+00> : vector<8x512xf32>
    %417 = tpu.matmul %415, %416, %cst_243 {dimension_numbers = #tpu.dot_dimension_numbers<[1], [0], [0], [1], [0, 0, 1, 1], [], []>} : vector<8x128xbf16>, vector<128x512xbf16>, vector<8x512xf32> -> vector<8x512xf32>
    %418 = arith.addf %414, %417 : vector<8x512xf32>
    %419 = vector.extract_strided_slice %418 {offsets = [0, 0], sizes = [8, 384], strides = [1, 1]} : vector<8x512xf32> to vector<8x384xf32>
    %cst_244 = arith.constant 5.000000e-01 : f32
    %420 = vector.broadcast %cst_244 : f32 to vector<8x384xf32>
    %421 = arith.mulf %420, %419 : vector<8x384xf32>
    %422 = math.tanh %421 : vector<8x384xf32>
    %cst_245 = arith.constant 5.000000e-01 : f32
    %423 = vector.broadcast %cst_245 : f32 to vector<8x384xf32>
    %424 = arith.mulf %423, %422 : vector<8x384xf32>
    %cst_246 = arith.constant 5.000000e-01 : f32
    %425 = vector.broadcast %cst_246 : f32 to vector<8x384xf32>
    %426 = arith.addf %424, %425 : vector<8x384xf32>
    %427 = vector.extract_strided_slice %426 {offsets = [0, 0], sizes = [8, 128], strides = [1, 1]} : vector<8x384xf32> to vector<8x128xf32>
    %428 = vector.extract_strided_slice %426 {offsets = [0, 128], sizes = [8, 128], strides = [1, 1]} : vector<8x384xf32> to vector<8x128xf32>
    %429 = vector.extract_strided_slice %426 {offsets = [0, 256], sizes = [8, 128], strides = [1, 1]} : vector<8x384xf32> to vector<8x128xf32>
    %430 = vector.extract_strided_slice %418 {offsets = [0, 384], sizes = [8, 128], strides = [1, 1]} : vector<8x512xf32> to vector<8x128xf32>
    %431 = math.tanh %430 : vector<8x128xf32>
    %432 = arith.mulf %428, %411 : vector<8x128xf32>
    %433 = arith.mulf %427, %431 : vector<8x128xf32>
    %434 = arith.addf %432, %433 : vector<8x128xf32>
    %435 = math.tanh %434 : vector<8x128xf32>
    %436 = arith.mulf %429, %435 : vector<8x128xf32>
    %c24_247 = arith.constant 24 : index
    %c0_248 = arith.constant 0 : index
    %437 = vector.load %arg17[%c24_247, %c0_248] : memref<64x512xf32, #tpu.memory_space<vmem>>, vector<8x512xf32>
    %438 = arith.truncf %436 : vector<8x128xf32> to vector<8x128xbf16>
    %c0_249 = arith.constant 0 : index
    %c0_250 = arith.constant 0 : index
    %439 = vector.load %arg9[%c0_249, %c0_250] : memref<128x512xbf16, #tpu.memory_space<vmem>>, vector<128x512xbf16>
    %cst_251 = arith.constant dense<0.000000e+00> : vector<8x512xf32>
    %440 = tpu.matmul %438, %439, %cst_251 {dimension_numbers = #tpu.dot_dimension_numbers<[1], [0], [0], [1], [0, 0, 1, 1], [], []>} : vector<8x128xbf16>, vector<128x512xbf16>, vector<8x512xf32> -> vector<8x512xf32>
    %441 = arith.addf %437, %440 : vector<8x512xf32>
    %442 = vector.extract_strided_slice %441 {offsets = [0, 0], sizes = [8, 384], strides = [1, 1]} : vector<8x512xf32> to vector<8x384xf32>
    %cst_252 = arith.constant 5.000000e-01 : f32
    %443 = vector.broadcast %cst_252 : f32 to vector<8x384xf32>
    %444 = arith.mulf %443, %442 : vector<8x384xf32>
    %445 = math.tanh %444 : vector<8x384xf32>
    %cst_253 = arith.constant 5.000000e-01 : f32
    %446 = vector.broadcast %cst_253 : f32 to vector<8x384xf32>
    %447 = arith.mulf %446, %445 : vector<8x384xf32>
    %cst_254 = arith.constant 5.000000e-01 : f32
    %448 = vector.broadcast %cst_254 : f32 to vector<8x384xf32>
    %449 = arith.addf %447, %448 : vector<8x384xf32>
    %450 = vector.extract_strided_slice %449 {offsets = [0, 0], sizes = [8, 128], strides = [1, 1]} : vector<8x384xf32> to vector<8x128xf32>
    %451 = vector.extract_strided_slice %449 {offsets = [0, 128], sizes = [8, 128], strides = [1, 1]} : vector<8x384xf32> to vector<8x128xf32>
    %452 = vector.extract_strided_slice %449 {offsets = [0, 256], sizes = [8, 128], strides = [1, 1]} : vector<8x384xf32> to vector<8x128xf32>
    %453 = vector.extract_strided_slice %441 {offsets = [0, 384], sizes = [8, 128], strides = [1, 1]} : vector<8x512xf32> to vector<8x128xf32>
    %454 = math.tanh %453 : vector<8x128xf32>
    %455 = arith.mulf %451, %434 : vector<8x128xf32>
    %456 = arith.mulf %450, %454 : vector<8x128xf32>
    %457 = arith.addf %455, %456 : vector<8x128xf32>
    %458 = math.tanh %457 : vector<8x128xf32>
    %459 = arith.mulf %452, %458 : vector<8x128xf32>
    %c32_255 = arith.constant 32 : index
    %c0_256 = arith.constant 0 : index
    %460 = vector.load %arg17[%c32_255, %c0_256] : memref<64x512xf32, #tpu.memory_space<vmem>>, vector<8x512xf32>
    %461 = arith.truncf %459 : vector<8x128xf32> to vector<8x128xbf16>
    %c0_257 = arith.constant 0 : index
    %c0_258 = arith.constant 0 : index
    %462 = vector.load %arg9[%c0_257, %c0_258] : memref<128x512xbf16, #tpu.memory_space<vmem>>, vector<128x512xbf16>
    %cst_259 = arith.constant dense<0.000000e+00> : vector<8x512xf32>
    %463 = tpu.matmul %461, %462, %cst_259 {dimension_numbers = #tpu.dot_dimension_numbers<[1], [0], [0], [1], [0, 0, 1, 1], [], []>} : vector<8x128xbf16>, vector<128x512xbf16>, vector<8x512xf32> -> vector<8x512xf32>
    %464 = arith.addf %460, %463 : vector<8x512xf32>
    %465 = vector.extract_strided_slice %464 {offsets = [0, 0], sizes = [8, 384], strides = [1, 1]} : vector<8x512xf32> to vector<8x384xf32>
    %cst_260 = arith.constant 5.000000e-01 : f32
    %466 = vector.broadcast %cst_260 : f32 to vector<8x384xf32>
    %467 = arith.mulf %466, %465 : vector<8x384xf32>
    %468 = math.tanh %467 : vector<8x384xf32>
    %cst_261 = arith.constant 5.000000e-01 : f32
    %469 = vector.broadcast %cst_261 : f32 to vector<8x384xf32>
    %470 = arith.mulf %469, %468 : vector<8x384xf32>
    %cst_262 = arith.constant 5.000000e-01 : f32
    %471 = vector.broadcast %cst_262 : f32 to vector<8x384xf32>
    %472 = arith.addf %470, %471 : vector<8x384xf32>
    %473 = vector.extract_strided_slice %472 {offsets = [0, 0], sizes = [8, 128], strides = [1, 1]} : vector<8x384xf32> to vector<8x128xf32>
    %474 = vector.extract_strided_slice %472 {offsets = [0, 128], sizes = [8, 128], strides = [1, 1]} : vector<8x384xf32> to vector<8x128xf32>
    %475 = vector.extract_strided_slice %472 {offsets = [0, 256], sizes = [8, 128], strides = [1, 1]} : vector<8x384xf32> to vector<8x128xf32>
    %476 = vector.extract_strided_slice %464 {offsets = [0, 384], sizes = [8, 128], strides = [1, 1]} : vector<8x512xf32> to vector<8x128xf32>
    %477 = math.tanh %476 : vector<8x128xf32>
    %478 = arith.mulf %474, %457 : vector<8x128xf32>
    %479 = arith.mulf %473, %477 : vector<8x128xf32>
    %480 = arith.addf %478, %479 : vector<8x128xf32>
    %481 = math.tanh %480 : vector<8x128xf32>
    %482 = arith.mulf %475, %481 : vector<8x128xf32>
    %c40_263 = arith.constant 40 : index
    %c0_264 = arith.constant 0 : index
    %483 = vector.load %arg17[%c40_263, %c0_264] : memref<64x512xf32, #tpu.memory_space<vmem>>, vector<8x512xf32>
    %484 = arith.truncf %482 : vector<8x128xf32> to vector<8x128xbf16>
    %c0_265 = arith.constant 0 : index
    %c0_266 = arith.constant 0 : index
    %485 = vector.load %arg9[%c0_265, %c0_266] : memref<128x512xbf16, #tpu.memory_space<vmem>>, vector<128x512xbf16>
    %cst_267 = arith.constant dense<0.000000e+00> : vector<8x512xf32>
    %486 = tpu.matmul %484, %485, %cst_267 {dimension_numbers = #tpu.dot_dimension_numbers<[1], [0], [0], [1], [0, 0, 1, 1], [], []>} : vector<8x128xbf16>, vector<128x512xbf16>, vector<8x512xf32> -> vector<8x512xf32>
    %487 = arith.addf %483, %486 : vector<8x512xf32>
    %488 = vector.extract_strided_slice %487 {offsets = [0, 0], sizes = [8, 384], strides = [1, 1]} : vector<8x512xf32> to vector<8x384xf32>
    %cst_268 = arith.constant 5.000000e-01 : f32
    %489 = vector.broadcast %cst_268 : f32 to vector<8x384xf32>
    %490 = arith.mulf %489, %488 : vector<8x384xf32>
    %491 = math.tanh %490 : vector<8x384xf32>
    %cst_269 = arith.constant 5.000000e-01 : f32
    %492 = vector.broadcast %cst_269 : f32 to vector<8x384xf32>
    %493 = arith.mulf %492, %491 : vector<8x384xf32>
    %cst_270 = arith.constant 5.000000e-01 : f32
    %494 = vector.broadcast %cst_270 : f32 to vector<8x384xf32>
    %495 = arith.addf %493, %494 : vector<8x384xf32>
    %496 = vector.extract_strided_slice %495 {offsets = [0, 0], sizes = [8, 128], strides = [1, 1]} : vector<8x384xf32> to vector<8x128xf32>
    %497 = vector.extract_strided_slice %495 {offsets = [0, 128], sizes = [8, 128], strides = [1, 1]} : vector<8x384xf32> to vector<8x128xf32>
    %498 = vector.extract_strided_slice %495 {offsets = [0, 256], sizes = [8, 128], strides = [1, 1]} : vector<8x384xf32> to vector<8x128xf32>
    %499 = vector.extract_strided_slice %487 {offsets = [0, 384], sizes = [8, 128], strides = [1, 1]} : vector<8x512xf32> to vector<8x128xf32>
    %500 = math.tanh %499 : vector<8x128xf32>
    %501 = arith.mulf %497, %480 : vector<8x128xf32>
    %502 = arith.mulf %496, %500 : vector<8x128xf32>
    %503 = arith.addf %501, %502 : vector<8x128xf32>
    %504 = math.tanh %503 : vector<8x128xf32>
    %505 = arith.mulf %498, %504 : vector<8x128xf32>
    %c48_271 = arith.constant 48 : index
    %c0_272 = arith.constant 0 : index
    %506 = vector.load %arg17[%c48_271, %c0_272] : memref<64x512xf32, #tpu.memory_space<vmem>>, vector<8x512xf32>
    %507 = arith.truncf %505 : vector<8x128xf32> to vector<8x128xbf16>
    %c0_273 = arith.constant 0 : index
    %c0_274 = arith.constant 0 : index
    %508 = vector.load %arg9[%c0_273, %c0_274] : memref<128x512xbf16, #tpu.memory_space<vmem>>, vector<128x512xbf16>
    %cst_275 = arith.constant dense<0.000000e+00> : vector<8x512xf32>
    %509 = tpu.matmul %507, %508, %cst_275 {dimension_numbers = #tpu.dot_dimension_numbers<[1], [0], [0], [1], [0, 0, 1, 1], [], []>} : vector<8x128xbf16>, vector<128x512xbf16>, vector<8x512xf32> -> vector<8x512xf32>
    %510 = arith.addf %506, %509 : vector<8x512xf32>
    %511 = vector.extract_strided_slice %510 {offsets = [0, 0], sizes = [8, 384], strides = [1, 1]} : vector<8x512xf32> to vector<8x384xf32>
    %cst_276 = arith.constant 5.000000e-01 : f32
    %512 = vector.broadcast %cst_276 : f32 to vector<8x384xf32>
    %513 = arith.mulf %512, %511 : vector<8x384xf32>
    %514 = math.tanh %513 : vector<8x384xf32>
    %cst_277 = arith.constant 5.000000e-01 : f32
    %515 = vector.broadcast %cst_277 : f32 to vector<8x384xf32>
    %516 = arith.mulf %515, %514 : vector<8x384xf32>
    %cst_278 = arith.constant 5.000000e-01 : f32
    %517 = vector.broadcast %cst_278 : f32 to vector<8x384xf32>
    %518 = arith.addf %516, %517 : vector<8x384xf32>
    %519 = vector.extract_strided_slice %518 {offsets = [0, 0], sizes = [8, 128], strides = [1, 1]} : vector<8x384xf32> to vector<8x128xf32>
    %520 = vector.extract_strided_slice %518 {offsets = [0, 128], sizes = [8, 128], strides = [1, 1]} : vector<8x384xf32> to vector<8x128xf32>
    %521 = vector.extract_strided_slice %518 {offsets = [0, 256], sizes = [8, 128], strides = [1, 1]} : vector<8x384xf32> to vector<8x128xf32>
    %522 = vector.extract_strided_slice %510 {offsets = [0, 384], sizes = [8, 128], strides = [1, 1]} : vector<8x512xf32> to vector<8x128xf32>
    %523 = math.tanh %522 : vector<8x128xf32>
    %524 = arith.mulf %520, %503 : vector<8x128xf32>
    %525 = arith.mulf %519, %523 : vector<8x128xf32>
    %526 = arith.addf %524, %525 : vector<8x128xf32>
    %527 = math.tanh %526 : vector<8x128xf32>
    %528 = arith.mulf %521, %527 : vector<8x128xf32>
    %c56_279 = arith.constant 56 : index
    %c0_280 = arith.constant 0 : index
    %529 = vector.load %arg17[%c56_279, %c0_280] : memref<64x512xf32, #tpu.memory_space<vmem>>, vector<8x512xf32>
    %530 = arith.truncf %528 : vector<8x128xf32> to vector<8x128xbf16>
    %c0_281 = arith.constant 0 : index
    %c0_282 = arith.constant 0 : index
    %531 = vector.load %arg9[%c0_281, %c0_282] : memref<128x512xbf16, #tpu.memory_space<vmem>>, vector<128x512xbf16>
    %cst_283 = arith.constant dense<0.000000e+00> : vector<8x512xf32>
    %532 = tpu.matmul %530, %531, %cst_283 {dimension_numbers = #tpu.dot_dimension_numbers<[1], [0], [0], [1], [0, 0, 1, 1], [], []>} : vector<8x128xbf16>, vector<128x512xbf16>, vector<8x512xf32> -> vector<8x512xf32>
    %533 = arith.addf %529, %532 : vector<8x512xf32>
    %534 = vector.extract_strided_slice %533 {offsets = [0, 0], sizes = [8, 384], strides = [1, 1]} : vector<8x512xf32> to vector<8x384xf32>
    %cst_284 = arith.constant 5.000000e-01 : f32
    %535 = vector.broadcast %cst_284 : f32 to vector<8x384xf32>
    %536 = arith.mulf %535, %534 : vector<8x384xf32>
    %537 = math.tanh %536 : vector<8x384xf32>
    %cst_285 = arith.constant 5.000000e-01 : f32
    %538 = vector.broadcast %cst_285 : f32 to vector<8x384xf32>
    %539 = arith.mulf %538, %537 : vector<8x384xf32>
    %cst_286 = arith.constant 5.000000e-01 : f32
    %540 = vector.broadcast %cst_286 : f32 to vector<8x384xf32>
    %541 = arith.addf %539, %540 : vector<8x384xf32>
    %542 = vector.extract_strided_slice %541 {offsets = [0, 0], sizes = [8, 128], strides = [1, 1]} : vector<8x384xf32> to vector<8x128xf32>
    %543 = vector.extract_strided_slice %541 {offsets = [0, 128], sizes = [8, 128], strides = [1, 1]} : vector<8x384xf32> to vector<8x128xf32>
    %544 = vector.extract_strided_slice %541 {offsets = [0, 256], sizes = [8, 128], strides = [1, 1]} : vector<8x384xf32> to vector<8x128xf32>
    %545 = vector.extract_strided_slice %533 {offsets = [0, 384], sizes = [8, 128], strides = [1, 1]} : vector<8x512xf32> to vector<8x128xf32>
    %546 = math.tanh %545 : vector<8x128xf32>
    %547 = arith.mulf %543, %526 : vector<8x128xf32>
    %548 = arith.mulf %542, %546 : vector<8x128xf32>
    %549 = arith.addf %547, %548 : vector<8x128xf32>
    %550 = math.tanh %549 : vector<8x128xf32>
    %551 = arith.mulf %544, %550 : vector<8x128xf32>
    %c0_287 = arith.constant 0 : index
    %c0_288 = arith.constant 0 : index
    %552 = vector.load %arg10[%c0_287, %c0_288] : memref<1x128xf32, #tpu.memory_space<vmem>>, vector<1x128xf32>
    %553 = vector.broadcast %552 : vector<1x128xf32> to vector<8x128xf32>
    %554 = arith.mulf %551, %553 : vector<8x128xf32>
    %c0_289 = arith.constant 0 : index
    %c0_290 = arith.constant 0 : index
    %555 = vector.load %arg11[%c0_289, %c0_290] : memref<1x128xf32, #tpu.memory_space<vmem>>, vector<1x128xf32>
    %556 = vector.broadcast %555 : vector<1x128xf32> to vector<8x128xf32>
    %557 = arith.addf %554, %556 : vector<8x128xf32>
    %c0_291 = arith.constant 0 : index
    %c0_292 = arith.constant 0 : index
    %558 = vector.load %arg12[%c0_291, %c0_292] : memref<128x64xf32, #tpu.memory_space<vmem>>, vector<128x64xf32>
    %cst_293 = arith.constant dense<0.000000e+00> : vector<8x64xf32>
    %559 = tpu.matmul %557, %558, %cst_293 {dimension_numbers = #tpu.dot_dimension_numbers<[1], [0], [0], [1], [0, 0, 1, 1], [], []>} : vector<8x128xf32>, vector<128x64xf32>, vector<8x64xf32> -> vector<8x64xf32>
    %c0_294 = arith.constant 0 : index
    %c0_295 = arith.constant 0 : index
    %560 = vector.load %arg13[%c0_294, %c0_295] : memref<1x64xf32, #tpu.memory_space<vmem>>, vector<1x64xf32>
    %561 = vector.broadcast %560 : vector<1x64xf32> to vector<8x64xf32>
    %562 = arith.addf %559, %561 : vector<8x64xf32>
    %cst_296 = arith.constant 5.000000e-01 : f32
    %563 = vector.broadcast %cst_296 : f32 to vector<8x64xf32>
    %564 = arith.mulf %563, %562 : vector<8x64xf32>
    %cst_297 = arith.constant 0.707106769 : f32
    %565 = vector.broadcast %cst_297 : f32 to vector<8x64xf32>
    %566 = arith.mulf %562, %565 : vector<8x64xf32>
    %567 = math.erf %566 : vector<8x64xf32>
    %cst_298 = arith.constant 1.000000e+00 : f32
    %568 = vector.broadcast %cst_298 : f32 to vector<8x64xf32>
    %569 = arith.addf %568, %567 : vector<8x64xf32>
    %570 = arith.mulf %564, %569 : vector<8x64xf32>
    %c0_299 = arith.constant 0 : index
    %c0_300 = arith.constant 0 : index
    %571 = vector.load %arg14[%c0_299, %c0_300] : memref<64x13xf32, #tpu.memory_space<vmem>>, vector<64x13xf32>
    %cst_301 = arith.constant dense<0.000000e+00> : vector<8x13xf32>
    %572 = tpu.matmul %570, %571, %cst_301 {dimension_numbers = #tpu.dot_dimension_numbers<[1], [0], [0], [1], [0, 0, 1, 1], [], []>} : vector<8x64xf32>, vector<64x13xf32>, vector<8x13xf32> -> vector<8x13xf32>
    %c0_302 = arith.constant 0 : index
    %c0_303 = arith.constant 0 : index
    %573 = vector.load %arg15[%c0_302, %c0_303] : memref<1x13xf32, #tpu.memory_space<vmem>>, vector<1x13xf32>
    %574 = vector.broadcast %573 : vector<1x13xf32> to vector<8x13xf32>
    %575 = arith.addf %572, %574 : vector<8x13xf32>
    %c0_304 = arith.constant 0 : index
    %c0_305 = arith.constant 0 : index
    %576 = vector.load %arg16[%c0_304, %c0_305] : memref<8x13xf32, #tpu.memory_space<vmem>>, vector<8x13xf32>
    tpu.vector_store %arg16[%c0_304, %c0_305], %575 {strides = array<i32>} : memref<8x13xf32, #tpu.memory_space<vmem>>, vector<8x13xf32>,
    return
  }
  func.func @transform_0(%arg0: i32) -> (i32, i32, i32) {
    %c0_i32 = arith.constant 0 : i32
    %c0_i32_0 = arith.constant 0 : i32
    %c0_i32_1 = arith.constant 0 : i32
    return %c0_i32, %arg0, %c0_i32_0 : i32, i32, i32
  }
  func.func @transform_1(%arg0: i32) -> (i32, i32, i32) {
    %c0_i32 = arith.constant 0 : i32
    %c0_i32_0 = arith.constant 0 : i32
    %c0_i32_1 = arith.constant 0 : i32
    return %c0_i32, %arg0, %c0_i32_0 : i32, i32, i32
  }
  func.func @transform_2(%arg0: i32) -> (i32, i32) {
    %c0_i32 = arith.constant 0 : i32
    %c0_i32_0 = arith.constant 0 : i32
    %c0_i32_1 = arith.constant 0 : i32
    return %c0_i32, %c0_i32_0 : i32, i32
  }
  func.func @transform_3(%arg0: i32) -> (i32, i32) {
    %c0_i32 = arith.constant 0 : i32
    %c0_i32_0 = arith.constant 0 : i32
    %c0_i32_1 = arith.constant 0 : i32
    return %c0_i32, %c0_i32_0 : i32, i32
  }
  func.func @transform_4(%arg0: i32) -> (i32, i32) {
    %c0_i32 = arith.constant 0 : i32
    %c0_i32_0 = arith.constant 0 : i32
    %c0_i32_1 = arith.constant 0 : i32
    return %c0_i32, %c0_i32_0 : i32, i32
  }
  func.func @transform_5(%arg0: i32) -> (i32, i32) {
    %c0_i32 = arith.constant 0 : i32
    %c0_i32_0 = arith.constant 0 : i32
    %c0_i32_1 = arith.constant 0 : i32
    return %c0_i32, %c0_i32_0 : i32, i32
  }
  func.func @transform_6(%arg0: i32) -> (i32, i32) {
    %c0_i32 = arith.constant 0 : i32
    %c0_i32_0 = arith.constant 0 : i32
    %c0_i32_1 = arith.constant 0 : i32
    return %c0_i32, %c0_i32_0 : i32, i32
  }
  func.func @transform_7(%arg0: i32) -> (i32, i32) {
    %c0_i32 = arith.constant 0 : i32
    %c0_i32_0 = arith.constant 0 : i32
    %c0_i32_1 = arith.constant 0 : i32
    return %c0_i32, %c0_i32_0 : i32, i32
  }
  func.func @transform_8(%arg0: i32) -> (i32, i32) {
    %c0_i32 = arith.constant 0 : i32
    %c0_i32_0 = arith.constant 0 : i32
    %c0_i32_1 = arith.constant 0 : i32
    return %c0_i32, %c0_i32_0 : i32, i32
  }
  func.func @transform_9(%arg0: i32) -> (i32, i32) {
    %c0_i32 = arith.constant 0 : i32
    %c0_i32_0 = arith.constant 0 : i32
    %c0_i32_1 = arith.constant 0 : i32
    return %c0_i32, %c0_i32_0 : i32, i32
  }
  func.func @transform_10(%arg0: i32) -> (i32, i32) {
    %c0_i32 = arith.constant 0 : i32
    %c0_i32_0 = arith.constant 0 : i32
    %c0_i32_1 = arith.constant 0 : i32
    return %c0_i32, %c0_i32_0 : i32, i32
  }
  func.func @transform_11(%arg0: i32) -> (i32, i32) {
    %c0_i32 = arith.constant 0 : i32
    %c0_i32_0 = arith.constant 0 : i32
    %c0_i32_1 = arith.constant 0 : i32
    return %c0_i32, %c0_i32_0 : i32, i32
  }
  func.func @transform_12(%arg0: i32) -> (i32, i32) {
    %c0_i32 = arith.constant 0 : i32
    %c0_i32_0 = arith.constant 0 : i32
    %c0_i32_1 = arith.constant 0 : i32
    return %c0_i32, %c0_i32_0 : i32, i32
  }
  func.func @transform_13(%arg0: i32) -> (i32, i32) {
    %c0_i32 = arith.constant 0 : i32
    %c0_i32_0 = arith.constant 0 : i32
    %c0_i32_1 = arith.constant 0 : i32
    return %c0_i32, %c0_i32_0 : i32, i32
  }
  func.func @transform_14(%arg0: i32) -> (i32, i32) {
    %c0_i32 = arith.constant 0 : i32
    %c0_i32_0 = arith.constant 0 : i32
    %c0_i32_1 = arith.constant 0 : i32
    return %c0_i32, %c0_i32_0 : i32, i32
  }
  func.func @transform_15(%arg0: i32) -> (i32, i32) {
    %c0_i32 = arith.constant 0 : i32
    %c0_i32_0 = arith.constant 0 : i32
    return %arg0, %c0_i32 : i32, i32
  }
}

</mosaic_0001>

<bundles_post_ra>
// kernel: bilstm_detector_forward.1
= control target key start
LH: loop header
LB: loop body
LE: loop exit
PB: predicated region body
PF: predicated region fallthrough
CT: control target
= control target key end

     0   :  { %v8363_v1 = vmov 0   ;;  %v8362_v49 = vlaneseq  ;;  %vm6172_vm1 = vmmov 0   ;;  %vm5115_vm2 = vcmask 523264   ;;  %s8346_s5 = inlined_call_operand.vmem [shape: bf16[128,512], index: 5, kind: input, shape index: {}]   ;;  %s8347_s0 = inlined_call_operand.vmem [shape: f32[8,8,1], index: 0, kind: input, shape index: {}]   ;;  %s8348_s1 = inlined_call_operand.vmem [shape: f32[8,8,1], index: 1, kind: input, shape index: {}]   ;;  %s8349_s3 = inlined_call_operand.vmem [shape: f32[1,512], index: 3, kind: input, shape index: {}]   ;;  %s8350_s2 = inlined_call_operand.vmem [shape: f32[1,512], index: 2, kind: input, shape index: {}]   ;;  %s8351_s4 = inlined_call_operand.vmem [shape: f32[1,512], index: 4, kind: input, shape index: {}]   ;;  %s8352_s6 = inlined_call_operand.vmem [shape: bf16[256,512], index: 6, kind: input, shape index: {}]   ;;  %s8353_s8 = inlined_call_operand.vmem [shape: bf16[128,512], index: 8, kind: input, shape index: {}]   ;;  %s8354_s7 = inlined_call_operand.vmem [shape: f32[1,512], index: 7, kind: input, shape index: {}]   ;;  %s8355_s11 = inlined_call_operand.vmem [shape: f32[128,64], index: 11, kind: input, shape index: {}]   ;;  %s8356_s9 = inlined_call_operand.vmem [shape: f32[1,128], index: 9, kind: input, shape index: {}]   ;;  %s8357_s10 = inlined_call_operand.vmem [shape: f32[1,128], index: 10, kind: input, shape index: {}]   ;;  %s8358_s13 = inlined_call_operand.vmem [shape: f32[64,13], index: 13, kind: input, shape index: {}]   ;;  %s8359_s12 = inlined_call_operand.vmem [shape: f32[1,64], index: 12, kind: input, shape index: {}]   ;;  %s8360_s14 = inlined_call_operand.vmem [shape: f32[1,13], index: 14, kind: input, shape index: {}]   ;;  %s8361_s15 = inlined_call_operand.vmem [shape: f32[8,13], index: 15, kind: output, shape index: {}]  }
   0x1   :  { %v6257_v0 = vld [vmem:[%s8346_s5 + $0x4] ss:$16 sps:$4 sm:$0xff]   ;;  %1077 = vmatprep.mubr.bf16.mxu0 %v8363_v1  ;;  %1118 = vmatprep.mubr.bf16.mxu1 %v8363_v1  ;;  %v6264_v2 = vld [vmem:[%s8346_s5 + $0xc] ss:$16 sps:$4 sm:$0xff]   ;;  %v6272_v3 = vld [vmem:[%s8346_s5] ss:$16 sps:$4 sm:$0xff]  }
   0x2   :  { %5687 = vset.pattern.permute.xlu1 %v8363_v1  ;;  %5686 = vset.pattern.permute.xlu0 %v8363_v1  ;;  %v6277_v4 = vld [vmem:[%s8346_s5 + $0x8] ss:$16 sps:$4 sm:$0xff]   ;;  %v6283_v5 = vld [vmem:[%s8346_s5 + $0x24] ss:$16 sps:$4 sm:$0xff]   ;;  %v6290_v6 = vld [vmem:[%s8346_s5 + $0x2c] ss:$16 sps:$4 sm:$0xff]  }
   0x3   :  { %1045 = vmatprep.subr.bf16.mxu0 %v6257_v0  ;;  %1086 = vmatprep.subr.bf16.mxu1 %v6264_v2  ;;  %v6295_v7 = vld [vmem:[%s8346_s5 + $0x20] ss:$16 sps:$4 sm:$0xff]   ;;  %v6301_v8 = vld [vmem:[%s8346_s5 + $0x28] ss:$16 sps:$4 sm:$0xff]   ;;  %v6307_v9 = vld [vmem:[%s8346_s5 + $0x44] ss:$16 sps:$4 sm:$0xff]  }
   0x4   :  { %1046 = vmatpush1.bf16.msra.mxu0 %v6272_v3  ;;  %1087 = vmatpush1.bf16.msra.mxu1 %v6277_v4  ;;  %v6312_v10 = vld [vmem:[%s8346_s5 + $0x4c] ss:$16 sps:$4 sm:$0xff]   ;;  %v6317_v11 = vld [vmem:[%s8346_s5 + $0x40] ss:$16 sps:$4 sm:$0xff]   ;;  %v6322_v12 = vld [vmem:[%s8346_s5 + $0x48] ss:$16 sps:$4 sm:$0xff]  }
   0x5   :  { %1047 = vmatprep.subr.bf16.mxu0 %v6283_v5  ;;  %1088 = vmatprep.subr.bf16.mxu1 %v6290_v6  ;;  %8398 = vst [vmem:[#allocation6_spill] sm:$0xff] %v6322_v12  ;;  %v6329_v13 = vld [vmem:[%s8346_s5 + $0x64] ss:$16 sps:$4 sm:$0xff]   ;;  %v6336_v14 = vld [vmem:[%s8346_s5 + $0x6c] ss:$16 sps:$4 sm:$0xff]   ;;  %v61_v50 = vshrl.u32 %v8362_v49, 7 }
   0x6   :  { %8399 = vst [vmem:[#allocation7_spill] sm:$0xff] %v6329_v13  ;;  %8400 = vst [vmem:[#allocation8_spill] sm:$0xff] %v6336_v14  ;;  %v6341_v15 = vld [vmem:[%s8346_s5 + $0x60] ss:$16 sps:$4 sm:$0xff]   ;;  %v6348_v16 = vld [vmem:[%s8346_s5 + $0x68] ss:$16 sps:$4 sm:$0xff]  }
   0x7   :  { %8401 = vst [vmem:[#allocation9_spill] sm:$0xff] %v6341_v15  ;;  %8402 = vst [vmem:[#allocation10_spill] sm:$0xff] %v6348_v16  ;;  %v6353_v17 = vld [vmem:[%s8346_s5 + $0x84] ss:$16 sps:$4 sm:$0xff]   ;;  %v6360_v18 = vld [vmem:[%s8346_s5 + $0x8c] ss:$16 sps:$4 sm:$0xff]  }
   0x8   :  { %1048 = vmatpush1.bf16.msra.mxu0 %v6295_v7  ;;  %1089 = vmatpush1.bf16.msra.mxu1 %v6301_v8  ;;  %8403 = vst [vmem:[#allocation11_spill] sm:$0xff] %v6353_v17  ;;  %8404 = vst [vmem:[#allocation12_spill] sm:$0xff] %v6360_v18  ;;  %v6365_v19 = vld [vmem:[%s8346_s5 + $0x80] ss:$16 sps:$4 sm:$0xff]   ;;  %v6370_v20 = vld [vmem:[%s8346_s5 + $0x88] ss:$16 sps:$4 sm:$0xff]  }
   0x9   :  { %1049 = vmatprep.subr.bf16.mxu0 %v6307_v9  ;;  %1090 = vmatprep.subr.bf16.mxu1 %v6312_v10  ;;  %8405 = vst [vmem:[#allocation13_spill] sm:$0xff] %v6365_v19  ;;  %8406 = vst [vmem:[#allocation14_spill] sm:$0xff] %v6370_v20  ;;  %v6377_v21 = vld [vmem:[%s8346_s5 + $0xa4] ss:$16 sps:$4 sm:$0xff]   ;;  %v6384_v22 = vld [vmem:[%s8346_s5 + $0xac] ss:$16 sps:$4 sm:$0xff]  }
   0xa   :  { %8407 = vst [vmem:[#allocation15_spill] sm:$0xff] %v6377_v21  ;;  %8408 = vst [vmem:[#allocation16_spill] sm:$0xff] %v6384_v22  ;;  %v6389_v23 = vld [vmem:[%s8346_s5 + $0xa0] ss:$16 sps:$4 sm:$0xff]   ;;  %v6396_v24 = vld [vmem:[%s8346_s5 + $0xa8] ss:$16 sps:$4 sm:$0xff]  }
   0xb   :  { %8409 = vst [vmem:[#allocation17_spill] sm:$0xff] %v6389_v23  ;;  %8410 = vst [vmem:[#allocation18_spill] sm:$0xff] %v6396_v24  ;;  %v6401_v25 = vld [vmem:[%s8346_s5 + $0xc4] ss:$16 sps:$4 sm:$0xff]   ;;  %v6408_v26 = vld [vmem:[%s8346_s5 + $0xcc] ss:$16 sps:$4 sm:$0xff]  }
   0xc   :  { %1050 = vmatpush1.bf16.msra.mxu0 %v6317_v11  ;;  %1091 = vmatpush1.bf16.msra.mxu1 %v6322_v12  ;;  %8411 = vst [vmem:[#allocation19_spill] sm:$0xff] %v6401_v25  ;;  %8412 = vst [vmem:[#allocation20_spill] sm:$0xff] %v6408_v26  ;;  %v5195_v27 = vld [vmem:[%s8347_s0 + $0x8] sm:$0xff]  ;;  %v51_v28 = vld [vmem:[%s8347_s0] sm:$0xff]  ;;  %v6537_v51 = vsub.s32 0, %v61_v50  ;;  %v6539_v52 = vsub.s32 1, %v61_v50 }
   0xd   :  { %1051 = vmatprep.subr.bf16.mxu0 %v6329_v13  ;;  %1092 = vmatprep.subr.bf16.mxu1 %v6336_v14  ;;  %v5196_v29 = vld [vmem:[%s8348_s1 + $0x8] sm:$0xff]  ;;  %v52_v30 = vld [vmem:[%s8348_s1] sm:$0xff]  ;;  %v5198_v36 = vld [vmem:[%s8348_s1 + $0x10] sm:$0xff]  ;;  %v6541_v53 = vsub.s32 2, %v61_v50  ;;  %v6543_v54 = vsub.s32 3, %v61_v50  ;;  %vm5189_vm3 = vcmask 105472  }
   0xe   :  { %156 = vperm.xlu1 %5687, %v5195_v27   ;;  %56 = vperm.xlu0 %5686, %v51_v28   ;;  %v6427_v31 = vld [vmem:[%s8346_s5 + $0xc0] ss:$16 sps:$4 sm:$0xff]   ;;  %v6432_v32 = vld [vmem:[%s8346_s5 + $0xc8] ss:$16 sps:$4 sm:$0xff]   ;;  %v6439_v33 = vld [vmem:[%s8346_s5 + $0xe4] ss:$16 sps:$4 sm:$0xff]  }
   0xf   :  { %8413 = vst [vmem:[#allocation21_spill] sm:$0xff] %v6427_v31  ;;  %8414 = vst [vmem:[#allocation22_spill] sm:$0xff] %v6432_v32  ;;  %v6444_v34 = vld [vmem:[%s8346_s5 + $0xec] ss:$16 sps:$4 sm:$0xff]   ;;  %v6449_v35 = vld [vmem:[%s8346_s5 + $0xe0] ss:$16 sps:$4 sm:$0xff]  }
  0x10   :  { %1052 = vmatpush1.bf16.msra.mxu0 %v6341_v15  ;;  %1093 = vmatpush1.bf16.msra.mxu1 %v6348_v16  ;;  %8415 = vst [vmem:[#allocation23_spill] sm:$0xff] %v6439_v33  ;;  %8416 = vst [vmem:[#allocation24_spill] sm:$0xff] %v6444_v34  ;;  %v5197_v37 = vld [vmem:[%s8347_s0 + $0x10] sm:$0xff]  ;;  %v6462_v38 = vld [vmem:[%s8346_s5 + $0xe8] ss:$16 sps:$4 sm:$0xff]  }
  0x11   :  { %1053 = vmatprep.subr.bf16.mxu0 %v6353_v17  ;;  %1094 = vmatprep.subr.bf16.mxu1 %v6360_v18  ;;  %8417 = vst [vmem:[#allocation25_spill] sm:$0xff] %v6449_v35  ;;  %8418 = vst [vmem:[#allocation26_spill] sm:$0xff] %v6462_v38  ;;  %v5200_v39 = vld [vmem:[%s8348_s1 + $0x18] sm:$0xff]  ;;  %v5202_v41 = vld [vmem:[%s8348_s1 + $0x20] sm:$0xff] }
  0x12   :  { %187 = vperm.xlu1 %5687, %v5196_v29   ;;  %87 = vperm.xlu0 %5686, %v52_v30   ;;  %v5199_v40 = vld [vmem:[%s8347_s0 + $0x18] sm:$0xff]  ;;  %v5201_v42 = vld [vmem:[%s8347_s0 + $0x20] sm:$0xff]  ;;  %v5204_v43 = vld [vmem:[%s8348_s1 + $0x28] sm:$0xff] }
  0x13   :  { %v5203_v44 = vld [vmem:[%s8347_s0 + $0x28] sm:$0xff]  ;;  %v5206_v45 = vld [vmem:[%s8348_s1 + $0x30] sm:$0xff]  ;;  %v5208_v47 = vld [vmem:[%s8348_s1 + $0x38] sm:$0xff] }
  0x14   :  { %1054 = vmatpush1.bf16.msra.mxu0 %v6365_v19  ;;  %1095 = vmatpush1.bf16.msra.mxu1 %v6370_v20  ;;  %v5205_v46 = vld [vmem:[%s8347_s0 + $0x30] sm:$0xff]  ;;  %v5207_v48 = vld [vmem:[%s8347_s0 + $0x38] sm:$0xff]  ;;  %v6548_v55 = vld [vmem:[%s8350_s2] sm:$0xf] }
  0x15   :  { %1055 = vmatprep.subr.bf16.mxu0 %v6377_v21  ;;  %1096 = vmatprep.subr.bf16.mxu1 %v6384_v22  ;;  %8419 = vst [vmem:[#allocation27_spill] sm:$0xff] %v6548_v55  ;;  %v6553_v56 = vld [vmem:[%s8349_s3] sm:$0xf]  ;;  %v163_v62 = vrot.slane %v6548_v55, %v6537_v51 }
  0x16   :  { %287 = vperm.xlu1 %5687, %v5198_v36   ;;  %256 = vperm.xlu0 %5686, %v5197_v37   ;;  %8420 = vst [vmem:[#allocation28_spill] sm:$0xff] %v6553_v56  ;;  %v284_v57 = vld [vmem:[%s8349_s3] sm:$0xf]  ;;  %v194_v63 = vrot.slane %v6553_v56, %v6537_v51 }
  0x17   :  { %v253_v58 = vld [vmem:[%s8350_s2] sm:$0xf]  ;;  %v302_v28 = vrot.slane %v284_v57, %v6541_v53  ;;  %v306_v29 = vrot.slane %v284_v57, %v6543_v54 }
  0x18   :  { %1056 = vmatpush1.bf16.msra.mxu0 %v6389_v23  ;;  %1097 = vmatpush1.bf16.msra.mxu1 %v6396_v24  ;;  %v6568_v61 = vld [vmem:[%s8349_s3] sm:$0xf]  ;;  %v263_v30 = vrot.slane %v253_v58, %v6537_v51  ;;  %v267_v36 = vrot.slane %v253_v58, %v6539_v52 }
  0x19   :  { %1057 = vmatprep.subr.bf16.mxu0 %v6401_v25  ;;  %1098 = vmatprep.subr.bf16.mxu1 %v6408_v26  ;;  %v6579_v27 = vld [vmem:[%s8350_s2] sm:$0xf] }
  0x1a   :  { %387 = vperm.xlu1 %5687, %v5200_v39   ;;  %356 = vperm.xlu0 %5686, %v5199_v40   ;;  %v6588_v37 = vld [vmem:[%s8349_s3] sm:$0xf]  ;;  %v271_v39 = vrot.slane %v253_v58, %v6541_v53  ;;  %v275_v40 = vrot.slane %v253_v58, %v6543_v54  ;;  %v367_v50 = vrot.slane %v6579_v27, %v6539_v52 }
  0x1b   :  { %v371_v58 = vrot.slane %v6579_v27, %v6541_v53  ;;  %v375_v49 = vrot.slane %v6579_v27, %v6543_v54  ;;  %v502_v56 = vrot.slane %v6588_v37, %v6541_v53  ;;  %v506_v55 = vrot.slane %v6588_v37, %v6543_v54 }
  0x1c   :  { %1058 = vmatpush1.bf16.msra.mxu0 %v6427_v31  ;;  %1099 = vmatpush1.bf16.msra.mxu1 %v6432_v32 }
  0x1d   :  { %1059 = vmatprep.subr.bf16.mxu0 %v6439_v33  ;;  %1100 = vmatprep.subr.bf16.mxu1 %v6444_v34 }
  0x1e   :  { %487 = vperm.xlu1 %5687, %v5202_v41   ;;  %456 = vperm.xlu0 %5686, %v5201_v42   ;;  %v394_v41 = vrot.slane %v6568_v61, %v6537_v51  ;;  %v398_v42 = vrot.slane %v6568_v61, %v6539_v52 }
  0x20   :  { %1060 = vmatpush1.bf16.msra.mxu0 %v6449_v35  ;;  %1101 = vmatpush1.bf16.msra.mxu1 %v6462_v38 }
  0x21   :  { %1348 = vmatprep.subr.bf16.mxu0 %v6257_v0  ;;  %1389 = vmatprep.subr.bf16.mxu1 %v6264_v2 }
  0x22   :  { %587 = vperm.xlu1 %5687, %v5204_v43   ;;  %556 = vperm.xlu0 %5686, %v5203_v44   ;;  %v6599_v43 = vld [vmem:[%s8350_s2] sm:$0xf] }
  0x23   :  { %1078 = vmatmul.mubr.bf16.vlgmr.msra.gmra.mrb[0].mxu0 %v8363_v1  ;;  %1119 = vmatmul.mubr.bf16.vlgmr.msra.gmra.mrb[0].mxu1 %v8363_v1 }
  0x24   :  { %1349 = vmatpush1.bf16.msra.mxu0 %v6272_v3  ;;  %1390 = vmatpush1.bf16.msra.mxu1 %v6277_v4 }
  0x25   :  { %1350 = vmatprep.subr.bf16.mxu0 %v6283_v5  ;;  %1391 = vmatprep.subr.bf16.mxu1 %v6290_v6 }
  0x26   :  { %687 = vperm.xlu1 %5687, %v5206_v45   ;;  %656 = vperm.xlu0 %5686, %v5205_v46   ;;  %v402_v46 = vrot.slane %v6568_v61, %v6541_v53 }
  0x27   :  { %1380 = vmatprep.mubr.bf16.mxu0 %v8363_v1  ;;  %1421 = vmatprep.mubr.bf16.mxu1 %v8363_v1  ;;  %v471_v1 = vrot.slane %v6599_v43, %v6541_v53 }
  0x28   :  { %1351 = vmatpush1.bf16.msra.mxu0 %v6295_v7  ;;  %1392 = vmatpush1.bf16.msra.mxu1 %v6301_v8 }
  0x29   :  { %1352 = vmatprep.subr.bf16.mxu0 %v6307_v9  ;;  %1393 = vmatprep.subr.bf16.mxu1 %v6312_v10 }
  0x2a   :  { %787 = vperm.xlu1 %5687, %v5208_v47   ;;  %756 = vperm.xlu0 %5686, %v5207_v48   ;;  %v406_v47 = vrot.slane %v6568_v61, %v6543_v54  ;;  %v363_v48 = vrot.slane %v6579_v27, %v6537_v51  ;;  %v494_v61 = vrot.slane %v6588_v37, %v6537_v51  ;;  %v6637_v27 = vld [vmem:[%s8350_s2] sm:$0xf] }
  0x2c   :  { %1353 = vmatpush1.bf16.msra.mxu0 %v6317_v11  ;;  %1394 = vmatpush1.bf16.msra.mxu1 %v6322_v12 }
  0x2d   :  { %1354 = vmatprep.subr.bf16.mxu0 %v6329_v13  ;;  %1395 = vmatprep.subr.bf16.mxu1 %v6336_v14 }
  0x30   :  { %1355 = vmatpush1.bf16.msra.mxu0 %v6341_v15  ;;  %1396 = vmatpush1.bf16.msra.mxu1 %v6348_v16 }
  0x31   :  { %1356 = vmatprep.subr.bf16.mxu0 %v6353_v17  ;;  %1397 = vmatprep.subr.bf16.mxu1 %v6360_v18 }
  0x34   :  { %1357 = vmatpush1.bf16.msra.mxu0 %v6365_v19  ;;  %1398 = vmatpush1.bf16.msra.mxu1 %v6370_v20 }
  0x35   :  { %1358 = vmatprep.subr.bf16.mxu0 %v6377_v21  ;;  %1399 = vmatprep.subr.bf16.mxu1 %v6384_v22  ;;  %v575_v22 = vrot.slane %v6637_v27, %v6543_v54 }
  0x38   :  { %1359 = vmatpush1.bf16.msra.mxu0 %v6389_v23  ;;  %1400 = vmatpush1.bf16.msra.mxu1 %v6396_v24 }
  0x39   :  { %1360 = vmatprep.subr.bf16.mxu0 %v6401_v25  ;;  %1401 = vmatprep.subr.bf16.mxu1 %v6408_v26 }
  0x3c   :  { %1361 = vmatpush1.bf16.msra.mxu0 %v6427_v31  ;;  %1402 = vmatpush1.bf16.msra.mxu1 %v6432_v32 }
  0x3d   :  { %1362 = vmatprep.subr.bf16.mxu0 %v6439_v33  ;;  %1403 = vmatprep.subr.bf16.mxu1 %v6444_v34  ;;  %v475_v34 = vrot.slane %v6599_v43, %v6543_v54 }
  0x40   :  { %1363 = vmatpush1.bf16.msra.mxu0 %v6449_v35  ;;  %1404 = vmatpush1.bf16.msra.mxu1 %v6462_v38  ;;  %v463_v38 = vrot.slane %v6599_v43, %v6537_v51  ;;  %v467_v35 = vrot.slane %v6599_v43, %v6539_v52  ;;  %v6656_v43 = vld [vmem:[%s8349_s3] sm:$0xf] }
  0x41   :  { %1651 = vmatprep.subr.bf16.mxu0 %v6257_v0  ;;  %1692 = vmatprep.subr.bf16.mxu1 %v6264_v2  ;;  %v294_v0 = vrot.slane %v284_v57, %v6537_v51  ;;  %v298_v2 = vrot.slane %v284_v57, %v6539_v52  ;;  %v6616_v57 = vld [vmem:[%s8349_s3] sm:$0xf] }
  0x42   :  { %v602_v23 = vrot.slane %v6616_v57, %v6541_v53 }
  0x8d   :  { %v6561_v59 = vpop.permute.xlu1 %156  ;;  %v6563_v60 = vpop.permute.xlu0 %56 }
  0x8e   :  { %8421 = vst [vmem:[#allocation29_spill] sm:$0xff] %v6561_v59  ;;  %v180_v31 = vmul.f32 %v163_v62, %v6561_v59  ;;  %v563_v62 = vrot.slane %v6637_v27, %v6537_v51  ;;  %v571_v59 = vrot.slane %v6637_v27, %v6541_v53 }
  0x91   :  { %v6601_v44 = vpop.permute.xlu1 %187  ;;  %v6603_v45 = vpop.permute.xlu0 %87 }
  0x92   :  { %8422 = vst [vmem:[#allocation30_spill] sm:$0xff] %v6601_v44  ;;  %v211_v26 = vmul.f32 %v194_v63, %v6601_v44  ;;  %v567_v63 = vrot.slane %v6637_v27, %v6539_v52 }
  0x94   :  { %v6668_v15 = vadd.f32 %v211_v26, %v180_v31  ;;  %v653_v26 = vld [vmem:[%s8350_s2] sm:$0xf] }
  0x95   :  { %v288_v25 = vpop.permute.xlu1 %287  ;;  %v257_v24 = vpop.permute.xlu0 %256  ;;  %v675_v27 = vrot.slane %v653_v26, %v6543_v54 }
  0x96   :  { %v311_v33 = vmul.f32 %v294_v0, %v288_v25  ;;  %v313_v21 = vmul.f32 %v302_v28, %v288_v25  ;;  %v280_v32 = vmul.f32 %v263_v30, %v257_v24  ;;  %v282_v44 = vmul.f32 %v271_v39, %v257_v24 }
  0x97   :  { %v312_v20 = vmul.f32 %v298_v2, %v288_v25  ;;  %v314_v19 = vmul.f32 %v306_v29, %v288_v25  ;;  %v281_v18 = vmul.f32 %v267_v36, %v257_v24  ;;  %v283_v28 = vmul.f32 %v275_v40, %v257_v24 }
  0x98   :  { %v6670_v14 = vadd.f32 %v311_v33, %v280_v32  ;;  %v6672_v30 = vadd.f32 %v313_v21, %v282_v44  ;;  %v698_v2 = vrot.slane %v6656_v43, %v6539_v52  ;;  %v702_v24 = vrot.slane %v6656_v43, %v6541_v53 }
  0x99   :  { %v388_v17 = vpop.permute.xlu1 %387  ;;  %v357_v16 = vpop.permute.xlu0 %356  ;;  %v706_v21 = vrot.slane %v6656_v43, %v6543_v54  ;;  %v6683_v33 = vadd.f32 %v312_v20, %v281_v18  ;;  %v6690_v44 = vadd.f32 %v314_v19, %v283_v28  ;;  %v663_v18 = vrot.slane %v653_v26, %v6537_v51 }
  0x9a   :  { %v411_v39 = vmul.f32 %v394_v41, %v388_v17  ;;  %v412_v13 = vmul.f32 %v398_v42, %v388_v17  ;;  %v413_v12 = vmul.f32 %v402_v46, %v388_v17  ;;  %v380_v25 = vmul.f32 %v363_v48, %v357_v16  ;;  %v6688_v42 = vld [vmem:[%s8349_s3] sm:$0xf] }
  0x9b   :  { %v381_v29 = vmul.f32 %v367_v50, %v357_v16  ;;  %v382_v36 = vmul.f32 %v371_v58, %v357_v16  ;;  %v414_v31 = vmul.f32 %v406_v47, %v388_v17  ;;  %v383_v32 = vmul.f32 %v375_v49, %v357_v16 }
  0x9c   :  { %v6692_v46 = vadd.f32 %v411_v39, %v380_v25  ;;  %v667_v20 = vrot.slane %v653_v26, %v6539_v52  ;;  %v671_v58 = vrot.slane %v653_v26, %v6541_v53  ;;  %v8425_v19 = vrot.slane %v6588_v37, %v6539_v52 }
  0x9d   :  { %v488_v40 = vpop.permute.xlu1 %487  ;;  %v457_v41 = vpop.permute.xlu0 %456  ;;  %v6694_v48 = vadd.f32 %v413_v12, %v382_v36  ;;  %v6696_v17 = vadd.f32 %v412_v13, %v381_v29  ;;  %v794_v13 = vrot.slane %v6688_v42, %v6537_v51  ;;  %v6707_v29 = vadd.f32 %v414_v31, %v383_v32 }
  0x9e   :  { %v511_v16 = vmul.f32 %v494_v61, %v488_v40  ;;  %v513_v49 = vmul.f32 %v502_v56, %v488_v40  ;;  %v480_v47 = vmul.f32 %v463_v38, %v457_v41  ;;  %v482_v50 = vmul.f32 %v471_v1, %v457_v41 }
  0x9f   :  { %8423 = vst [vmem:[#allocation31_spill] sm:$0xff] %v6694_v48  ;;  %8424 = vst [vmem:[#allocation32_spill] sm:$0xff] %v6696_v17  ;;  %v512_v28 = vmul.f32 %v8425_v19, %v488_v40  ;;  %v514_v12 = vmul.f32 %v506_v55, %v488_v40  ;;  %v481_v39 = vmul.f32 %v467_v35, %v457_v41 }
  0xa0   :  { %v483_v56 = vmul.f32 %v475_v34, %v457_v41  ;;  %8426 = vst [vmem:[#allocation33_spill] sm:$0xff] %v6707_v29  ;;  %v6709_v38 = vadd.f32 %v511_v16, %v480_v47  ;;  %v6711_v1 = vadd.f32 %v513_v49, %v482_v50  ;;  %v8429_v36 = vrot.slane %v6616_v57, %v6537_v51  ;;  %v753_v16 = vld [vmem:[%s8350_s2] sm:$0xf] }
  0xa1   :  { %v588_v61 = vpop.permute.xlu1 %587  ;;  %v557_v25 = vpop.permute.xlu0 %556  ;;  %v8430_v55 = vrot.slane %v6616_v57, %v6539_v52  ;;  %v798_v34 = vrot.slane %v6688_v42, %v6539_v52  ;;  %v802_v32 = vrot.slane %v6688_v42, %v6541_v53  ;;  %v8431_v49 = vrot.slane %v6616_v57, %v6543_v54 }
  0xa2   :  { %8427 = vst [vmem:[#allocation34_spill] sm:$0xff] %v6709_v38  ;;  %8428 = vst [vmem:[#allocation35_spill] sm:$0xff] %v6711_v1  ;;  %v611_v26 = vmul.f32 %v8429_v36, %v588_v61  ;;  %v613_v37 = vmul.f32 %v602_v23, %v588_v61  ;;  %v580_v40 = vmul.f32 %v563_v62, %v557_v25 }
  0xa3   :  { %v612_v35 = vmul.f32 %v8430_v55, %v588_v61  ;;  %v581_v41 = vmul.f32 %v567_v63, %v557_v25  ;;  %v582_v31 = vmul.f32 %v571_v59, %v557_v25  ;;  %v614_v47 = vmul.f32 %v8431_v49, %v588_v61 }
  0xa4   :  { %v583_v50 = vmul.f32 %v575_v22, %v557_v25  ;;  %v806_v23 = vrot.slane %v6688_v42, %v6543_v54  ;;  %v6731_v19 = vadd.f32 %v512_v28, %v481_v39  ;;  %v6733_v59 = vadd.f32 %v514_v12, %v483_v56 }
  0xa5   :  { %v688_v62 = vpop.permute.xlu1 %687  ;;  %v657_v63 = vpop.permute.xlu0 %656  ;;  %v6735_v36 = vadd.f32 %v611_v26, %v580_v40  ;;  %v6737_v55 = vadd.f32 %v613_v37, %v582_v31  ;;  %v6739_v0 = vadd.f32 %v612_v35, %v581_v41  ;;  %v8437_v57 = vrot.slane %v6656_v43, %v6537_v51 }
  0xa6   :  { %8432 = vst [vmem:[#allocation36_spill] sm:$0xff] %v6731_v19  ;;  %8433 = vst [vmem:[#allocation37_spill] sm:$0xff] %v6733_v59  ;;  %v713_v22 = vmul.f32 %v702_v24, %v688_v62  ;;  %v763_v25 = vrot.slane %v753_v16, %v6537_v51  ;;  %v767_v42 = vrot.slane %v753_v16, %v6539_v52 }
  0xa7   :  { %8434 = vst [vmem:[#allocation38_spill] sm:$0xff] %v6735_v36  ;;  %8435 = vst [vmem:[#allocation39_spill] sm:$0xff] %v6737_v55  ;;  %v711_v61 = vmul.f32 %v8437_v57, %v688_v62  ;;  %v680_v28 = vmul.f32 %v663_v18, %v657_v63  ;;  %v682_v39 = vmul.f32 %v671_v58, %v657_v63 }
  0xa8   :  { %8436 = vst [vmem:[#allocation40_spill] sm:$0xff] %v6739_v0  ;;  %v771_v12 = vrot.slane %v753_v16, %v6541_v53  ;;  %v775_v56 = vrot.slane %v753_v16, %v6543_v54  ;;  %v712_v26 = vmul.f32 %v698_v2, %v688_v62  ;;  %v714_v37 = vmul.f32 %v706_v21, %v688_v62 }
  0xa9   :  { %v681_v40 = vmul.f32 %v667_v20, %v657_v63  ;;  %v683_v35 = vmul.f32 %v675_v27, %v657_v63  ;;  %v788_v41 = vpop.permute.xlu1 %787  ;;  %v757_v31 = vpop.permute.xlu0 %756  ;;  %v6748_v49 = vadd.f32 %v614_v47, %v583_v50  ;;  %v6750_v43 = vadd.f32 %v711_v61, %v680_v28 }
  0xaa   :  { %v6752_v24 = vadd.f32 %v713_v22, %v682_v39  ;;  %v811_v57 = vmul.f32 %v794_v13, %v788_v41  ;;  %v812_v0 = vmul.f32 %v798_v34, %v788_v41  ;;  %v813_v18 = vmul.f32 %v802_v32, %v788_v41  ;;  %v53_v13 = vld [vmem:[%s8350_s2] sm:$0xf] }
  0xab   :  { %8438 = vst [vmem:[#allocation41_spill] sm:$0xff] %v6748_v49  ;;  %8439 = vst [vmem:[#allocation42_spill] sm:$0xff] %v6750_v43  ;;  %v814_v58 = vmul.f32 %v806_v23, %v788_v41  ;;  %v780_v55 = vmul.f32 %v763_v25, %v757_v31  ;;  %v781_v36 = vmul.f32 %v767_v42, %v757_v31  ;;  %v84_v34 = vld [vmem:[%s8349_s3] sm:$0xf] }
  0xac   :  { %8440 = vst [vmem:[#allocation43_spill] sm:$0xff] %v6752_v24  ;;  %v782_v59 = vmul.f32 %v771_v12, %v757_v31  ;;  %v783_v16 = vmul.f32 %v775_v56, %v757_v31  ;;  %v6754_v2 = vadd.f32 %v712_v26, %v681_v40  ;;  %v6756_v21 = vadd.f32 %v714_v37, %v683_v35  ;;  %v119_v25 = vld [vmem:[%s8351_s4] sm:$0xf] }
  0xad   :  { %v6758_v20 = vadd.f32 %v811_v57, %v780_v55  ;;  %v6762_v47 = vadd.f32 %v812_v0, %v781_v36  ;;  %v63_v32 = vrot.slane %v53_v13, %v6537_v51  ;;  %v94_v23 = vrot.slane %v84_v34, %v6537_v51 }
  0xae   :  { %8441 = vst [vmem:[#allocation44_spill] sm:$0xff] %v6754_v2  ;;  %8442 = vst [vmem:[#allocation45_spill] sm:$0xff] %v6756_v21  ;;  %v6760_v27 = vadd.f32 %v813_v18, %v782_v59  ;;  %v6764_v50 = vadd.f32 %v814_v58, %v783_v16  ;;  %v67_v62 = vrot.slane %v53_v13, %v6539_v52 }
  0xaf   :  { %8443 = vst [vmem:[#allocation46_spill] sm:$0xff] %v6758_v20  ;;  %8445 = vst [vmem:[#allocation48_spill] sm:$0xff] %v6762_v47  ;;  %v98_v63 = vrot.slane %v84_v34, %v6539_v52  ;;  %v75_v0 = vrot.slane %v53_v13, %v6543_v54  ;;  %v80_v59 = vmul.f32 %v63_v32, %v6563_v60 }
  0xb0   :  { %8444 = vst [vmem:[#allocation47_spill] sm:$0xff] %v6760_v27  ;;  %8446 = vst [vmem:[#allocation49_spill] sm:$0xff] %v6764_v50  ;;  %v106_v36 = vrot.slane %v84_v34, %v6543_v54  ;;  %v111_v55 = vmul.f32 %v94_v23, %v6603_v45  ;;  %v81_v61 = vmul.f32 %v67_v62, %v6563_v60 }
  0xb1   :  { %v112_v22 = vmul.f32 %v98_v63, %v6603_v45  ;;  %v83_v42 = vmul.f32 %v75_v0, %v6563_v60  ;;  %v124_v12 = vrot.slane %v119_v25, %v6537_v51  ;;  %v71_v56 = vrot.slane %v53_v13, %v6541_v53 }
  0xb2   :  { %v114_v28 = vmul.f32 %v106_v36, %v6603_v45  ;;  %v115_v39 = vadd.f32 %v111_v55, %v80_v59  ;;  %v102_v26 = vrot.slane %v84_v34, %v6541_v53  ;;  %v128_v40 = vrot.slane %v119_v25, %v6539_v52 }
  0xb3   :  { %v116_v37 = vadd.f32 %v112_v22, %v81_v61  ;;  %v136_v31 = vrot.slane %v119_v25, %v6543_v54  ;;  %v82_v57 = vmul.f32 %v71_v56, %v6563_v60 }
  0xb4   :  { %v141_v35 = vadd.f32 %v124_v12, %v115_v39  ;;  %v118_v41 = vadd.f32 %v114_v28, %v83_v42  ;;  %v113_v18 = vmul.f32 %v102_v26, %v6603_v45  ;;  %v132_v42 = vrot.slane %v119_v25, %v6541_v53 }
  0xb5   :  { %v142_v32 = vadd.f32 %v128_v40, %v116_v37 }
  0xb6   :  { %v144_v36 = vadd.f32 %v136_v31, %v118_v41  ;;  %v117_v22 = vadd.f32 %v113_v18, %v82_v57 }
  0xb8   :  { %v143_v45 = vadd.f32 %v132_v42, %v117_v22  ;;  %v8464_v22 = vld [vmem:[#allocation21_spill] sm:$0xff]  ;;  %v8465_v42 = vld [vmem:[#allocation22_spill] sm:$0xff] }
  0xf6   :  { %v1079_v58 = vpop.f32.mrb[0].mxu0  ;;  %v1120_v16 = vpop.f32.mrb[0].mxu1 }
  0xf7   :  { %v1127_v23 = vadd.f32 %v1079_v58, %v141_v35  ;;  %v1081_v62 = vpop.f32.mrb[1].mxu0  ;;  %v1122_v63 = vpop.f32.mrb[1].mxu1  ;;  %v1129_v39 = vadd.f32 %v1120_v16, %v143_v45  ;;  %v8468_v45 = vld [vmem:[#allocation25_spill] sm:$0xff] }
  0xf8   :  { %v1128_v13 = vadd.f32 %v1081_v62, %v142_v32  ;;  %v1083_v0 = vpop.f32.mrb[2].mxu0  ;;  %v1124_v34 = vpop.f32.mrb[2].mxu1  ;;  %v1130_v60 = vadd.f32 %v1122_v63, %v144_v36  ;;  %v8461_v36 = vld [vmem:[#allocation18_spill] sm:$0xff] }
  0xf9   :  { %v1131_v59 = vmul.f32 0.5, %v1127_v23  ;;  %v1084_v55 = vpop.f32.mrb[3].mxu0  ;;  %v1125_v61 = vpop.f32.mrb[3].mxu1  ;;  %v1133_v12 = vmul.f32 0.5, %v1129_v39  ;;  %v8453_v0 = vld [vmem:[#allocation10_spill] sm:$0xff]  ;;  %v8454_v34 = vld [vmem:[#allocation11_spill] sm:$0xff] }
  0xfa   :  { %v1132_v28 = vmul.f32 0.5, %v1128_v13  ;;  %v8448_v13 = vmov 0   ;;  %v8462_v55 = vld [vmem:[#allocation19_spill] sm:$0xff]  ;;  %v8463_v61 = vld [vmem:[#allocation20_spill] sm:$0xff]  ;;  %v8469_v39 = vld [vmem:[#allocation26_spill] sm:$0xff] }
  0xfb   :  { %5976 = vtanh.f32 %v1131_v59  ;;  %v8460_v59 = vld [vmem:[#allocation17_spill] sm:$0xff] }
  0xfc   :  { %5978 = vtanh.f32 %v1132_v28  ;;  %v8466_v28 = vld [vmem:[#allocation23_spill] sm:$0xff] }
  0xfd   :  { %5980 = vtanh.f32 %v1130_v60  ;;  %v8467_v60 = vld [vmem:[#allocation24_spill] sm:$0xff] }
  0xfe   :  { %5982 = vtanh.f32 %v1133_v12  ;;  %v8470_v12 = vld [vmem:[#allocation27_spill] sm:$0xff] }
 0x105   :  { %v5977_v56 = vpop.eup %5976 }
 0x106   :  { %v1137_v26 = vmul.f32 0.5, %v5977_v56  ;;  %v5979_v37 = vpop.eup %5978  ;;  %v171_v56 = vrot.slane %v8470_v12, %v6541_v53 }
 0x107   :  { %v1138_v35 = vmul.f32 0.5, %v5979_v37  ;;  %v5981_v41 = vpop.eup %5980 }
 0x108   :  { %v1140_v40 = vadd.f32 0.5, %v1137_v26  ;;  %v5983_v25 = vpop.eup %5982  ;;  %v8471_v26 = vld [vmem:[#allocation28_spill] sm:$0xff] }
 0x109   :  { %v1141_v31 = vadd.f32 0.5, %v1138_v35  ;;  %v1139_v32 = vmul.f32 0.5, %v5983_v25  ;;  %v202_v37 = vrot.slane %v8471_v26, %v6541_v53  ;;  %v175_v35 = vrot.slane %v8470_v12, %v6543_v54  ;;  %v8473_v25 = vld [vmem:[#allocation30_spill] sm:$0xff] }
 0x10a   :  { %v1145_v58 = vmul.f32 %v5981_v41, %v1140_v40  ;;  %v167_v40 = vrot.slane %v8470_v12, %v6539_v52  ;;  %v198_v41 = vrot.slane %v8471_v26, %v6539_v52 }
 0x10b   :  { %v1144_v57 = vmul.f32 0.0, %v1141_v31  ;;  %v1142_v23 = vadd.f32 0.5, %v1139_v32  ;;  %v206_v31 = vrot.slane %v8471_v26, %v6543_v54  ;;  %v213_v32 = vmul.f32 %v202_v37, %v8473_v25 }
 0x10d   :  { %v6795_v18 = vadd.f32 %v1145_v58, %v1144_v57  ;;  %v8472_v58 = vld [vmem:[#allocation29_spill] sm:$0xff] }
 0x10e   :  { %v182_v57 = vmul.f32 %v171_v56, %v8472_v58 }
 0x10f   :  { %5984 = vtanh.f32 %v6795_v18 }
 0x119   :  { %v5985_v62 = vpop.eup %5984 }
 0x11a   :  { %v6798_v16 = vmul.f32 %v5985_v62, %v1142_v23  ;;  %v181_v23 = vmul.f32 %v167_v40, %v8472_v58  ;;  %v183_v62 = vmul.f32 %v175_v35, %v8472_v58 }
 0x11c   :  { %8447 = vst [vmem:[#allocation50_spill] sm:$0xff] %v6798_v16  ;;  %v1155_v63 = vpack.c.bf16 %v6798_v16, %v6798_v16 }
 0x11e   :  { %1381 = vmatmul.mubr.bf16.vlgmr.msra.gmra.mrb[4].mxu0 %v1155_v63  ;;  %1422 = vmatmul.mubr.bf16.vlgmr.msra.gmra.mrb[4].mxu1 %v1155_v63  ;;  %v212_v63 = vmul.f32 %v198_v41, %v8473_v25 }
 0x11f   :  { %1652 = vmatpush1.bf16.msra.mxu0 %v6272_v3  ;;  %1693 = vmatpush1.bf16.msra.mxu1 %v6277_v4  ;;  %v8449_v3 = vld [vmem:[#allocation6_spill] sm:$0xff]  ;;  %v8450_v4 = vld [vmem:[#allocation7_spill] sm:$0xff] }
 0x120   :  { %1653 = vmatprep.subr.bf16.mxu0 %v6283_v5  ;;  %1694 = vmatprep.subr.bf16.mxu1 %v6290_v6  ;;  %v8451_v5 = vld [vmem:[#allocation8_spill] sm:$0xff]  ;;  %v8452_v6 = vld [vmem:[#allocation9_spill] sm:$0xff] }
 0x121   :  { %1683 = vmatprep.mubr.bf16.mxu0 %v8448_v13  ;;  %1724 = vmatprep.mubr.bf16.mxu1 %v8448_v13 }
 0x123   :  { %1654 = vmatpush1.bf16.msra.mxu0 %v6295_v7  ;;  %1695 = vmatpush1.bf16.msra.mxu1 %v6301_v8  ;;  %v8455_v7 = vld [vmem:[#allocation12_spill] sm:$0xff]  ;;  %v8456_v8 = vld [vmem:[#allocation13_spill] sm:$0xff] }
 0x124   :  { %1655 = vmatprep.subr.bf16.mxu0 %v6307_v9  ;;  %1696 = vmatprep.subr.bf16.mxu1 %v6312_v10  ;;  %v8457_v9 = vld [vmem:[#allocation14_spill] sm:$0xff]  ;;  %v8458_v10 = vld [vmem:[#allocation15_spill] sm:$0xff] }
 0x127   :  { %1656 = vmatpush1.bf16.msra.mxu0 %v6317_v11  ;;  %1697 = vmatpush1.bf16.msra.mxu1 %v8449_v3  ;;  %v8459_v11 = vld [vmem:[#allocation16_spill] sm:$0xff]  ;;  %v214_v3 = vmul.f32 %v206_v31, %v8473_v25 }
 0x128   :  { %1657 = vmatprep.subr.bf16.mxu0 %v8450_v4  ;;  %1698 = vmatprep.subr.bf16.mxu1 %v8451_v5  ;;  %v217_v4 = vadd.f32 %v213_v32, %v182_v57  ;;  %v216_v5 = vadd.f32 %v212_v63, %v181_v23 }
 0x12b   :  { %1658 = vmatpush1.bf16.msra.mxu0 %v8452_v6  ;;  %1699 = vmatpush1.bf16.msra.mxu1 %v8453_v0  ;;  %v218_v6 = vadd.f32 %v214_v3, %v183_v62  ;;  %v219_v0 = vld [vmem:[%s8351_s4] sm:$0xf] }
 0x12c   :  { %1659 = vmatprep.subr.bf16.mxu0 %v8454_v34  ;;  %1700 = vmatprep.subr.bf16.mxu1 %v8455_v7  ;;  %v224_v34 = vrot.slane %v219_v0, %v6537_v51  ;;  %v232_v7 = vrot.slane %v219_v0, %v6541_v53 }
 0x12f   :  { %1660 = vmatpush1.bf16.msra.mxu0 %v8456_v8  ;;  %1701 = vmatpush1.bf16.msra.mxu1 %v8457_v9  ;;  %v228_v8 = vrot.slane %v219_v0, %v6539_v52  ;;  %v236_v9 = vrot.slane %v219_v0, %v6543_v54 }
 0x130   :  { %1661 = vmatprep.subr.bf16.mxu0 %v8458_v10  ;;  %1702 = vmatprep.subr.bf16.mxu1 %v8459_v11  ;;  %v241_v10 = vadd.f32 %v224_v34, %v6668_v15  ;;  %v243_v11 = vadd.f32 %v232_v7, %v217_v4 }
 0x133   :  { %1662 = vmatpush1.bf16.msra.mxu0 %v8460_v59  ;;  %1703 = vmatpush1.bf16.msra.mxu1 %v8461_v36 }
 0x134   :  { %1663 = vmatprep.subr.bf16.mxu0 %v8462_v55  ;;  %1704 = vmatprep.subr.bf16.mxu1 %v8463_v61  ;;  %v242_v55 = vadd.f32 %v228_v8, %v216_v5  ;;  %v244_v61 = vadd.f32 %v236_v9, %v218_v6  ;;  %v6878_v8 = vld [vmem:[%s8346_s5 + $0xc] ss:$16 sps:$4 sm:$0xff]   ;;  %v6883_v9 = vld [vmem:[%s8346_s5] ss:$16 sps:$4 sm:$0xff]  }
 0x137   :  { %1664 = vmatpush1.bf16.msra.mxu0 %v8464_v22  ;;  %1705 = vmatpush1.bf16.msra.mxu1 %v8465_v42 }
 0x138   :  { %1665 = vmatprep.subr.bf16.mxu0 %v8466_v28  ;;  %1706 = vmatprep.subr.bf16.mxu1 %v8467_v60 }
 0x13b   :  { %1666 = vmatpush1.bf16.msra.mxu0 %v8468_v45  ;;  %1707 = vmatpush1.bf16.msra.mxu1 %v8469_v39 }
 0x13c   :  { %1995 = vmatprep.subr.bf16.mxu1 %v6878_v8 }
 0x1f1   :  { %v1382_v59 = vpop.f32.mrb[4].mxu0  ;;  %v1423_v36 = vpop.f32.mrb[4].mxu1 }
 0x1f2   :  { %v1430_v22 = vadd.f32 %v1382_v59, %v241_v10  ;;  %v1432_v42 = vadd.f32 %v1423_v36, %v243_v11  ;;  %v1384_v28 = vpop.f32.mrb[5].mxu0  ;;  %v1425_v60 = vpop.f32.mrb[5].mxu1  ;;  %v6888_v10 = vld [vmem:[%s8346_s5 + $0x8] ss:$16 sps:$4 sm:$0xff]   ;;  %v6897_v11 = vld [vmem:[%s8346_s5 + $0x24] ss:$16 sps:$4 sm:$0xff]  }
 0x1f3   :  { %v1431_v45 = vadd.f32 %v1384_v28, %v242_v55  ;;  %v1433_v39 = vadd.f32 %v1425_v60, %v244_v61  ;;  %v1386_v12 = vpop.f32.mrb[6].mxu0  ;;  %v1427_v56 = vpop.f32.mrb[6].mxu1  ;;  %v6902_v59 = vld [vmem:[%s8346_s5 + $0x2c] ss:$16 sps:$4 sm:$0xff]   ;;  %v6907_v36 = vld [vmem:[%s8346_s5 + $0x20] ss:$16 sps:$4 sm:$0xff]  }
 0x1f4   :  { %v1434_v26 = vmul.f32 0.5, %v1430_v22  ;;  %v1387_v37 = vpop.f32.mrb[7].mxu0  ;;  %v1428_v40 = vpop.f32.mrb[7].mxu1  ;;  %v1436_v15 = vmul.f32 0.5, %v1432_v42  ;;  %v6912_v55 = vld [vmem:[%s8346_s5 + $0x28] ss:$16 sps:$4 sm:$0xff]  }
 0x1f5   :  { %v1435_v35 = vmul.f32 0.5, %v1431_v45  ;;  %v6921_v61 = vld [vmem:[%s8346_s5 + $0x44] ss:$16 sps:$4 sm:$0xff]   ;;  %v6926_v22 = vld [vmem:[%s8346_s5 + $0x4c] ss:$16 sps:$4 sm:$0xff]  }
 0x1f6   :  { %5986 = vtanh.f32 %v1434_v26  ;;  %v6931_v42 = vld [vmem:[%s8346_s5 + $0x40] ss:$16 sps:$4 sm:$0xff]   ;;  %v6936_v28 = vld [vmem:[%s8346_s5 + $0x48] ss:$16 sps:$4 sm:$0xff]   ;;  %v6945_v60 = vld [vmem:[%s8346_s5 + $0x64] ss:$16 sps:$4 sm:$0xff]  }
 0x1f7   :  { %5988 = vtanh.f32 %v1435_v35  ;;  %v6950_v45 = vld [vmem:[%s8346_s5 + $0x6c] ss:$16 sps:$4 sm:$0xff]   ;;  %v6960_v12 = vld [vmem:[%s8346_s5 + $0x68] ss:$16 sps:$4 sm:$0xff]   ;;  %v6969_v56 = vld [vmem:[%s8346_s5 + $0x84] ss:$16 sps:$4 sm:$0xff]  }
 0x1f8   :  { %5990 = vtanh.f32 %v1433_v39  ;;  %v6955_v39 = vld [vmem:[%s8346_s5 + $0x60] ss:$16 sps:$4 sm:$0xff]   ;;  %v6974_v26 = vld [vmem:[%s8346_s5 + $0x8c] ss:$16 sps:$4 sm:$0xff]   ;;  %v6984_v40 = vld [vmem:[%s8346_s5 + $0x88] ss:$16 sps:$4 sm:$0xff]  }
 0x1f9   :  { %5992 = vtanh.f32 %v1436_v15  ;;  %v6979_v37 = vld [vmem:[%s8346_s5 + $0x80] ss:$16 sps:$4 sm:$0xff]   ;;  %v6998_v15 = vld [vmem:[%s8346_s5 + $0xa4] ss:$16 sps:$4 sm:$0xff]  }
 0x1fa   :  { %v6993_v35 = vld [vmem:[%s8346_s5 + $0xa0] ss:$16 sps:$4 sm:$0xff]  }
 0x200   :  { %v5987_v41 = vpop.eup %5986 }
 0x201   :  { %v1440_v31 = vmul.f32 0.5, %v5987_v41  ;;  %v5989_v58 = vpop.eup %5988  ;;  %v7003_v41 = vld [vmem:[%s8346_s5 + $0xa8] ss:$16 sps:$4 sm:$0xff]  }
 0x202   :  { %v1441_v25 = vmul.f32 0.5, %v5989_v58  ;;  %v5991_v32 = vpop.eup %5990  ;;  %v7013_v58 = vld [vmem:[%s8346_s5 + $0xc4] ss:$16 sps:$4 sm:$0xff]  }
 0x203   :  { %v1443_v57 = vadd.f32 0.5, %v1440_v31  ;;  %v5993_v4 = vpop.eup %5992  ;;  %v7008_v31 = vld [vmem:[%s8346_s5 + $0xac] ss:$16 sps:$4 sm:$0xff]  }
 0x204   :  { %v1444_v23 = vadd.f32 0.5, %v1441_v25  ;;  %v1442_v5 = vmul.f32 0.5, %v5993_v4  ;;  %v7027_v25 = vld [vmem:[%s8346_s5 + $0xc0] ss:$16 sps:$4 sm:$0xff]   ;;  %v7056_v4 = vld [vmem:[%s8346_s5 + $0xe8] ss:$16 sps:$4 sm:$0xff]  }
 0x205   :  { %v1448_v62 = vmul.f32 %v5991_v32, %v1443_v57  ;;  %v7019_v57 = vld [vmem:[%s8346_s5 + $0xcc] ss:$16 sps:$4 sm:$0xff]   ;;  %v7032_v32 = vld [vmem:[%s8346_s5 + $0xc8] ss:$16 sps:$4 sm:$0xff]  }
 0x206   :  { %v1447_v63 = vmul.f32 %v1444_v23, %v6795_v18  ;;  %v1445_v6 = vadd.f32 0.5, %v1442_v5  ;;  %v6873_v18 = vld [vmem:[%s8346_s5 + $0x4] ss:$16 sps:$4 sm:$0xff]   ;;  %v319_v5 = vld [vmem:[%s8351_s4] sm:$0xf] }
 0x207   :  { %1954 = vmatprep.subr.bf16.mxu0 %v6873_v18  ;;  %v7039_v23 = vld [vmem:[%s8346_s5 + $0xe4] ss:$16 sps:$4 sm:$0xff]   ;;  %v336_v16 = vrot.slane %v319_v5, %v6543_v54 }
 0x208   :  { %v6861_v3 = vadd.f32 %v1448_v62, %v1447_v63  ;;  %v7044_v62 = vld [vmem:[%s8346_s5 + $0xec] ss:$16 sps:$4 sm:$0xff]   ;;  %v7051_v63 = vld [vmem:[%s8346_s5 + $0xe0] ss:$16 sps:$4 sm:$0xff]  }
 0x209   :  { %v344_v21 = vadd.f32 %v336_v16, %v6690_v44 }
 0x20a   :  { %5994 = vtanh.f32 %v6861_v3 }
 0x214   :  { %v5995_v0 = vpop.eup %5994 }
 0x215   :  { %v6864_v34 = vmul.f32 %v5995_v0, %v1445_v6  ;;  %v324_v6 = vrot.slane %v319_v5, %v6537_v51  ;;  %v332_v0 = vrot.slane %v319_v5, %v6541_v53 }
 0x217   :  { %8474 = vst [vmem:[#allocation6_spill] sm:$0xff] %v6864_v34  ;;  %v1458_v7 = vpack.c.bf16 %v6864_v34, %v6864_v34  ;;  %v341_v34 = vadd.f32 %v324_v6, %v6670_v14  ;;  %v343_v50 = vadd.f32 %v332_v0, %v6672_v30 }
 0x219   :  { %1684 = vmatmul.mubr.bf16.vlgmr.msra.gmra.mrb[8].mxu0 %v1458_v7  ;;  %1725 = vmatmul.mubr.bf16.vlgmr.msra.gmra.mrb[8].mxu1 %v1458_v7  ;;  %v328_v7 = vrot.slane %v319_v5, %v6539_v52 }
 0x21a   :  { %1986 = vmatprep.mubr.bf16.mxu0 %v8448_v13  ;;  %2027 = vmatprep.mubr.bf16.mxu1 %v8448_v13 }
 0x21b   :  { %1955 = vmatpush1.bf16.msra.mxu0 %v6883_v9  ;;  %1996 = vmatpush1.bf16.msra.mxu1 %v6888_v10  ;;  %v342_v20 = vadd.f32 %v328_v7, %v6683_v33  ;;  %v8475_v7 = vld [vmem:[#allocation31_spill] sm:$0xff] }
 0x21c   :  { %1956 = vmatprep.subr.bf16.mxu0 %v6897_v11  ;;  %1997 = vmatprep.subr.bf16.mxu1 %v6902_v59 }
 0x21f   :  { %1957 = vmatpush1.bf16.msra.mxu0 %v6907_v36  ;;  %1998 = vmatpush1.bf16.msra.mxu1 %v6912_v55 }
 0x220   :  { %1958 = vmatprep.subr.bf16.mxu0 %v6921_v61  ;;  %1999 = vmatprep.subr.bf16.mxu1 %v6926_v22 }
 0x223   :  { %1959 = vmatpush1.bf16.msra.mxu0 %v6931_v42  ;;  %2000 = vmatpush1.bf16.msra.mxu1 %v6936_v28 }
 0x224   :  { %1960 = vmatprep.subr.bf16.mxu0 %v6945_v60  ;;  %2001 = vmatprep.subr.bf16.mxu1 %v6950_v45 }
 0x227   :  { %1961 = vmatpush1.bf16.msra.mxu0 %v6955_v39  ;;  %2002 = vmatpush1.bf16.msra.mxu1 %v6960_v12 }
 0x228   :  { %1962 = vmatprep.subr.bf16.mxu0 %v6969_v56  ;;  %2003 = vmatprep.subr.bf16.mxu1 %v6974_v26 }
 0x22b   :  { %1963 = vmatpush1.bf16.msra.mxu0 %v6979_v37  ;;  %2004 = vmatpush1.bf16.msra.mxu1 %v6984_v40 }
 0x22c   :  { %1964 = vmatprep.subr.bf16.mxu0 %v6998_v15  ;;  %2005 = vmatprep.subr.bf16.mxu1 %v7008_v31 }
 0x22f   :  { %1965 = vmatpush1.bf16.msra.mxu0 %v6993_v35  ;;  %2006 = vmatpush1.bf16.msra.mxu1 %v7003_v41 }
 0x230   :  { %1966 = vmatprep.subr.bf16.mxu0 %v7013_v58  ;;  %2007 = vmatprep.subr.bf16.mxu1 %v7019_v57 }
 0x233   :  { %1967 = vmatpush1.bf16.msra.mxu0 %v7027_v25  ;;  %2008 = vmatpush1.bf16.msra.mxu1 %v7032_v32 }
 0x234   :  { %1968 = vmatprep.subr.bf16.mxu0 %v7039_v23  ;;  %2009 = vmatprep.subr.bf16.mxu1 %v7044_v62 }
 0x237   :  { %1969 = vmatpush1.bf16.msra.mxu0 %v7051_v63  ;;  %2010 = vmatpush1.bf16.msra.mxu1 %v7056_v4 }
 0x238   :  { %2257 = vmatprep.subr.bf16.mxu0 %v6873_v18  ;;  %2298 = vmatprep.subr.bf16.mxu1 %v6878_v8 }
 0x2ec   :  { %v1685_v47 = vpop.f32.mrb[8].mxu0  ;;  %v1726_v27 = vpop.f32.mrb[8].mxu1 }
 0x2ed   :  { %v1733_v2 = vadd.f32 %v1685_v47, %v341_v34  ;;  %v1735_v24 = vadd.f32 %v1726_v27, %v343_v50  ;;  %v1687_v43 = vpop.f32.mrb[9].mxu0  ;;  %v1728_v49 = vpop.f32.mrb[9].mxu1 }
 0x2ee   :  { %v1734_v19 = vadd.f32 %v1687_v43, %v342_v20  ;;  %v1736_v1 = vadd.f32 %v1728_v49, %v344_v21  ;;  %v1689_v38 = vpop.f32.mrb[10].mxu0  ;;  %v1730_v29 = vpop.f32.mrb[10].mxu1 }
 0x2ef   :  { %v1737_v17 = vmul.f32 0.5, %v1733_v2  ;;  %v1690_v5 = vpop.f32.mrb[11].mxu0  ;;  %v1731_v48 = vpop.f32.mrb[11].mxu1  ;;  %v1739_v30 = vmul.f32 0.5, %v1735_v24  ;;  %v419_v2 = vld [vmem:[%s8351_s4] sm:$0xf] }
 0x2f0   :  { %v1738_v14 = vmul.f32 0.5, %v1734_v19  ;;  %v424_v21 = vrot.slane %v419_v2, %v6537_v51  ;;  %v432_v20 = vrot.slane %v419_v2, %v6541_v53  ;;  %v428_v16 = vrot.slane %v419_v2, %v6539_v52 }
 0x2f1   :  { %5996 = vtanh.f32 %v1737_v17 }
 0x2f2   :  { %5998 = vtanh.f32 %v1738_v14  ;;  %v441_v34 = vadd.f32 %v424_v21, %v6692_v46  ;;  %v443_v5 = vadd.f32 %v432_v20, %v8475_v7 }
 0x2f3   :  { %6000 = vtanh.f32 %v1736_v1 }
 0x2f4   :  { %6002 = vtanh.f32 %v1739_v30 }
 0x2fb   :  { %v5997_v6 = vpop.eup %5996 }
 0x2fc   :  { %v1743_v33 = vmul.f32 0.5, %v5997_v6  ;;  %v5999_v0 = vpop.eup %5998  ;;  %v8476_v6 = vld [vmem:[#allocation32_spill] sm:$0xff] }
 0x2fd   :  { %v1744_v27 = vmul.f32 0.5, %v5999_v0  ;;  %v6001_v47 = vpop.eup %6000  ;;  %v8477_v0 = vld [vmem:[#allocation33_spill] sm:$0xff] }
 0x2fe   :  { %v1746_v44 = vadd.f32 0.5, %v1743_v33  ;;  %v6003_v48 = vpop.eup %6002  ;;  %v442_v33 = vadd.f32 %v428_v16, %v8476_v6 }
 0x2ff   :  { %v1747_v50 = vadd.f32 0.5, %v1744_v27  ;;  %v1745_v17 = vmul.f32 0.5, %v6003_v48 }
 0x300   :  { %v1751_v43 = vmul.f32 %v6001_v47, %v1746_v44 }
 0x301   :  { %v1750_v38 = vmul.f32 %v1747_v50, %v6861_v3  ;;  %v1748_v19 = vadd.f32 0.5, %v1745_v17  ;;  %v436_v3 = vrot.slane %v419_v2, %v6543_v54 }
 0x303   :  { %v7076_v29 = vadd.f32 %v1751_v43, %v1750_v38  ;;  %v444_v44 = vadd.f32 %v436_v3, %v8477_v0 }
 0x305   :  { %6004 = vtanh.f32 %v7076_v29 }
 0x30f   :  { %v6005_v1 = vpop.eup %6004 }
 0x310   :  { %v7079_v49 = vmul.f32 %v6005_v1, %v1748_v19 }
 0x312   :  { %v1761_v24 = vpack.c.bf16 %v7079_v49, %v7079_v49 }
 0x314   :  { %1987 = vmatmul.mubr.bf16.vlgmr.msra.gmra.mrb[12].mxu0 %v1761_v24  ;;  %2028 = vmatmul.mubr.bf16.vlgmr.msra.gmra.mrb[12].mxu1 %v1761_v24 }
 0x315   :  { %2258 = vmatpush1.bf16.msra.mxu0 %v6883_v9  ;;  %2299 = vmatpush1.bf16.msra.mxu1 %v6888_v10 }
 0x316   :  { %2259 = vmatprep.subr.bf16.mxu0 %v6897_v11  ;;  %2300 = vmatprep.subr.bf16.mxu1 %v6902_v59 }
 0x317   :  { %2289 = vmatprep.mubr.bf16.mxu0 %v8448_v13  ;;  %2330 = vmatprep.mubr.bf16.mxu1 %v8448_v13 }
 0x319   :  { %2260 = vmatpush1.bf16.msra.mxu0 %v6907_v36  ;;  %2301 = vmatpush1.bf16.msra.mxu1 %v6912_v55 }
 0x31a   :  { %2261 = vmatprep.subr.bf16.mxu0 %v6921_v61  ;;  %2302 = vmatprep.subr.bf16.mxu1 %v6926_v22 }
 0x31d   :  { %2262 = vmatpush1.bf16.msra.mxu0 %v6931_v42  ;;  %2303 = vmatpush1.bf16.msra.mxu1 %v6936_v28 }
 0x31e   :  { %2263 = vmatprep.subr.bf16.mxu0 %v6945_v60  ;;  %2304 = vmatprep.subr.bf16.mxu1 %v6950_v45 }
 0x321   :  { %2264 = vmatpush1.bf16.msra.mxu0 %v6955_v39  ;;  %2305 = vmatpush1.bf16.msra.mxu1 %v6960_v12 }
 0x322   :  { %2265 = vmatprep.subr.bf16.mxu0 %v6969_v56  ;;  %2306 = vmatprep.subr.bf16.mxu1 %v6974_v26 }
 0x325   :  { %2266 = vmatpush1.bf16.msra.mxu0 %v6979_v37  ;;  %2307 = vmatpush1.bf16.msra.mxu1 %v6984_v40 }
 0x326   :  { %2267 = vmatprep.subr.bf16.mxu0 %v6998_v15  ;;  %2308 = vmatprep.subr.bf16.mxu1 %v7008_v31 }
 0x329   :  { %2268 = vmatpush1.bf16.msra.mxu0 %v6993_v35  ;;  %2309 = vmatpush1.bf16.msra.mxu1 %v7003_v41 }
 0x32a   :  { %2269 = vmatprep.subr.bf16.mxu0 %v7013_v58  ;;  %2310 = vmatprep.subr.bf16.mxu1 %v7019_v57 }
 0x32d   :  { %2270 = vmatpush1.bf16.msra.mxu0 %v7027_v25  ;;  %2311 = vmatpush1.bf16.msra.mxu1 %v7032_v32 }
 0x32e   :  { %2271 = vmatprep.subr.bf16.mxu0 %v7039_v23  ;;  %2312 = vmatprep.subr.bf16.mxu1 %v7044_v62 }
 0x331   :  { %2272 = vmatpush1.bf16.msra.mxu0 %v7051_v63  ;;  %2313 = vmatpush1.bf16.msra.mxu1 %v7056_v4 }
 0x332   :  { %2560 = vmatprep.subr.bf16.mxu0 %v6873_v18  ;;  %2601 = vmatprep.subr.bf16.mxu1 %v6878_v8 }
 0x3e7   :  { %v1988_v14 = vpop.f32.mrb[12].mxu0  ;;  %v2029_v30 = vpop.f32.mrb[12].mxu1 }
 0x3e8   :  { %v2036_v27 = vadd.f32 %v1988_v14, %v441_v34  ;;  %v2038_v47 = vadd.f32 %v2029_v30, %v443_v5  ;;  %v1990_v50 = vpop.f32.mrb[13].mxu0  ;;  %v2031_v43 = vpop.f32.mrb[13].mxu1 }
 0x3e9   :  { %v2037_v38 = vadd.f32 %v1990_v50, %v442_v33  ;;  %v2039_v48 = vadd.f32 %v2031_v43, %v444_v44  ;;  %v1992_v17 = vpop.f32.mrb[14].mxu0  ;;  %v2033_v19 = vpop.f32.mrb[14].mxu1 }
 0x3ea   :  { %v2040_v1 = vmul.f32 0.5, %v2036_v27  ;;  %v1993_v24 = vpop.f32.mrb[15].mxu0  ;;  %v2034_v2 = vpop.f32.mrb[15].mxu1  ;;  %v2042_v21 = vmul.f32 0.5, %v2038_v47 }
 0x3eb   :  { %v2041_v46 = vmul.f32 0.5, %v2037_v38  ;;  %v8479_v2 = vld [vmem:[#allocation35_spill] sm:$0xff] }
 0x3ec   :  { %6006 = vtanh.f32 %v2040_v1  ;;  %v8478_v1 = vld [vmem:[#allocation34_spill] sm:$0xff] }
 0x3ed   :  { %6008 = vtanh.f32 %v2041_v46 }
 0x3ee   :  { %6010 = vtanh.f32 %v2039_v48 }
 0x3ef   :  { %6012 = vtanh.f32 %v2042_v21 }
 0x3f6   :  { %v6007_v20 = vpop.eup %6006 }
 0x3f7   :  { %v2046_v16 = vmul.f32 0.5, %v6007_v20  ;;  %v6009_v7 = vpop.eup %6008  ;;  %v8480_v20 = vld [vmem:[#allocation36_spill] sm:$0xff] }
 0x3f8   :  { %v2047_v34 = vmul.f32 0.5, %v6009_v7  ;;  %v6011_v5 = vpop.eup %6010 }
 0x3f9   :  { %v2049_v3 = vadd.f32 0.5, %v2046_v16  ;;  %v6013_v0 = vpop.eup %6012  ;;  %v8481_v16 = vld [vmem:[#allocation37_spill] sm:$0xff] }
 0x3fa   :  { %v2050_v14 = vadd.f32 0.5, %v2047_v34  ;;  %v2048_v44 = vmul.f32 0.5, %v6013_v0 }
 0x3fb   :  { %v2054_v30 = vmul.f32 %v6011_v5, %v2049_v3 }
 0x3fc   :  { %v2053_v6 = vmul.f32 %v2050_v14, %v7076_v29  ;;  %v2051_v27 = vadd.f32 0.5, %v2048_v44  ;;  %v519_v29 = vld [vmem:[%s8351_s4] sm:$0xf] }
 0x3fd   :  { %v524_v38 = vrot.slane %v519_v29, %v6537_v51  ;;  %v532_v48 = vrot.slane %v519_v29, %v6541_v53  ;;  %v528_v17 = vrot.slane %v519_v29, %v6539_v52  ;;  %v536_v19 = vrot.slane %v519_v29, %v6543_v54 }
 0x3fe   :  { %v7129_v33 = vadd.f32 %v2054_v30, %v2053_v6 }
 0x3ff   :  { %v541_v24 = vadd.f32 %v524_v38, %v8478_v1  ;;  %v543_v46 = vadd.f32 %v532_v48, %v8479_v2  ;;  %v544_v7 = vadd.f32 %v536_v19, %v8481_v16 }
 0x400   :  { %6014 = vtanh.f32 %v7129_v33 }
 0x40a   :  { %v6015_v50 = vpop.eup %6014 }
 0x40b   :  { %v7132_v47 = vmul.f32 %v6015_v50, %v2051_v27 }
 0x40d   :  { %v2064_v43 = vpack.c.bf16 %v7132_v47, %v7132_v47 }
 0x40f   :  { %2290 = vmatmul.mubr.bf16.vlgmr.msra.gmra.mrb[16].mxu0 %v2064_v43  ;;  %2331 = vmatmul.mubr.bf16.vlgmr.msra.gmra.mrb[16].mxu1 %v2064_v43 }
 0x410   :  { %2561 = vmatpush1.bf16.msra.mxu0 %v6883_v9  ;;  %2602 = vmatpush1.bf16.msra.mxu1 %v6888_v10 }
 0x411   :  { %2562 = vmatprep.subr.bf16.mxu0 %v6897_v11  ;;  %2603 = vmatprep.subr.bf16.mxu1 %v6902_v59 }
 0x412   :  { %2592 = vmatprep.mubr.bf16.mxu0 %v8448_v13  ;;  %2633 = vmatprep.mubr.bf16.mxu1 %v8448_v13 }
 0x414   :  { %2563 = vmatpush1.bf16.msra.mxu0 %v6907_v36  ;;  %2604 = vmatpush1.bf16.msra.mxu1 %v6912_v55 }
 0x415   :  { %2564 = vmatprep.subr.bf16.mxu0 %v6921_v61  ;;  %2605 = vmatprep.subr.bf16.mxu1 %v6926_v22 }
 0x418   :  { %2565 = vmatpush1.bf16.msra.mxu0 %v6931_v42  ;;  %2606 = vmatpush1.bf16.msra.mxu1 %v6936_v28 }
 0x419   :  { %2566 = vmatprep.subr.bf16.mxu0 %v6945_v60  ;;  %2607 = vmatprep.subr.bf16.mxu1 %v6950_v45 }
 0x41c   :  { %2567 = vmatpush1.bf16.msra.mxu0 %v6955_v39  ;;  %2608 = vmatpush1.bf16.msra.mxu1 %v6960_v12 }
 0x41d   :  { %2568 = vmatprep.subr.bf16.mxu0 %v6969_v56  ;;  %2609 = vmatprep.subr.bf16.mxu1 %v6974_v26 }
 0x420   :  { %2569 = vmatpush1.bf16.msra.mxu0 %v6979_v37  ;;  %2610 = vmatpush1.bf16.msra.mxu1 %v6984_v40 }
 0x421   :  { %2570 = vmatprep.subr.bf16.mxu0 %v6998_v15  ;;  %2611 = vmatprep.subr.bf16.mxu1 %v7008_v31 }
 0x424   :  { %2571 = vmatpush1.bf16.msra.mxu0 %v6993_v35  ;;  %2612 = vmatpush1.bf16.msra.mxu1 %v7003_v41 }
 0x425   :  { %2572 = vmatprep.subr.bf16.mxu0 %v7013_v58  ;;  %2613 = vmatprep.subr.bf16.mxu1 %v7019_v57 }
 0x428   :  { %2573 = vmatpush1.bf16.msra.mxu0 %v7027_v25  ;;  %2614 = vmatpush1.bf16.msra.mxu1 %v7032_v32 }
 0x429   :  { %2574 = vmatprep.subr.bf16.mxu0 %v7039_v23  ;;  %2615 = vmatprep.subr.bf16.mxu1 %v7044_v62 }
 0x42c   :  { %2575 = vmatpush1.bf16.msra.mxu0 %v7051_v63  ;;  %2616 = vmatpush1.bf16.msra.mxu1 %v7056_v4 }
 0x42d   :  { %2863 = vmatprep.subr.bf16.mxu0 %v6873_v18  ;;  %2904 = vmatprep.subr.bf16.mxu1 %v6878_v8  ;;  %v542_v8 = vadd.f32 %v528_v17, %v8480_v20 }
 0x4e2   :  { %v2291_v21 = vpop.f32.mrb[16].mxu0  ;;  %v2332_v18 = vpop.f32.mrb[16].mxu1 }
 0x4e3   :  { %v2339_v3 = vadd.f32 %v2291_v21, %v541_v24  ;;  %v2341_v34 = vadd.f32 %v2332_v18, %v543_v46  ;;  %v2293_v5 = vpop.f32.mrb[17].mxu0  ;;  %v2334_v14 = vpop.f32.mrb[17].mxu1 }
 0x4e4   :  { %v2340_v30 = vadd.f32 %v2293_v5, %v542_v8  ;;  %v2342_v6 = vadd.f32 %v2334_v14, %v544_v7  ;;  %v2295_v0 = vpop.f32.mrb[18].mxu0  ;;  %v2336_v44 = vpop.f32.mrb[18].mxu1 }
 0x4e5   :  { %v2343_v27 = vmul.f32 0.5, %v2339_v3  ;;  %v2296_v50 = vpop.f32.mrb[19].mxu0  ;;  %v2337_v43 = vpop.f32.mrb[19].mxu1  ;;  %v2345_v38 = vmul.f32 0.5, %v2341_v34 }
 0x4e6   :  { %v2344_v29 = vmul.f32 0.5, %v2340_v30 }
 0x4e7   :  { %6016 = vtanh.f32 %v2343_v27 }
 0x4e8   :  { %6018 = vtanh.f32 %v2344_v29 }
 0x4e9   :  { %6020 = vtanh.f32 %v2342_v6 }
 0x4ea   :  { %6022 = vtanh.f32 %v2345_v38  ;;  %v8486_v38 = vlaneseq }
 0x4f1   :  { %v6017_v48 = vpop.eup %6016 }
 0x4f2   :  { %v2349_v17 = vmul.f32 0.5, %v6017_v48  ;;  %v6019_v1 = vpop.eup %6018  ;;  %v7237_v48 = vand.u32 127, %v8486_v38 }
 0x4f3   :  { %v2350_v24 = vmul.f32 0.5, %v6019_v1  ;;  %v6021_v2 = vpop.eup %6020 }
 0x4f4   :  { %v2352_v19 = vadd.f32 0.5, %v2349_v17  ;;  %v6023_v8 = vpop.eup %6022  ;;  %vm3274_vm0 = vcmp.lt.s32.totalorder %v7237_v48, 64  ;;  %v7624_v48 = vld [vmem:[%s8353_s8 + $0x24] ss:$16 sps:$4 sm:$0xff]  }
 0x4f5   :  { %v2353_v46 = vadd.f32 0.5, %v2350_v24  ;;  %v2351_v16 = vmul.f32 0.5, %v6023_v8 }
 0x4f6   :  { %v2357_v21 = vmul.f32 %v6021_v2, %v2352_v19 }
 0x4f7   :  { %v2356_v18 = vmul.f32 %v2353_v46, %v7129_v33  ;;  %v2354_v7 = vadd.f32 0.5, %v2351_v16 }
 0x4f9   :  { %v7182_v20 = vadd.f32 %v2357_v21, %v2356_v18 }
 0x4fb   :  { %6024 = vtanh.f32 %v7182_v20 }
 0x505   :  { %v6025_v3 = vpop.eup %6024 }
 0x506   :  { %v7185_v34 = vmul.f32 %v6025_v3, %v2354_v7  ;;  %v5784_v3 = vld [vmem:[%s8346_s5] ss:$16 sps:$4 sm:$0xff]  }
 0x508   :  { %v2367_v5 = vpack.c.bf16 %v7185_v34, %v7185_v34  ;;  %v3295_v24 = vsel %vm3274_vm0, %v7185_v34, %v7132_v47  ;;  %v3294_v18 = vsel %vm3274_vm0, %v7132_v47, %v7185_v34  ;;  %v5789_v47 = vld [vmem:[%s8346_s5 + $0xc] ss:$16 sps:$4 sm:$0xff]   ;;  %v5787_v34 = vld [vmem:[%s8346_s5 + $0x8] ss:$16 sps:$4 sm:$0xff]  }
 0x50a   :  { %2593 = vmatmul.mubr.bf16.vlgmr.msra.gmra.mrb[20].mxu0 %v2367_v5  ;;  %2634 = vmatmul.mubr.bf16.vlgmr.msra.gmra.mrb[20].mxu1 %v2367_v5  ;;  %v5792_v5 = vld [vmem:[%s8346_s5 + $0x24] ss:$16 sps:$4 sm:$0xff]  }
 0x50b   :  { %2864 = vmatpush1.bf16.msra.mxu0 %v6883_v9  ;;  %2905 = vmatpush1.bf16.msra.mxu1 %v6888_v10  ;;  %v619_v9 = vld [vmem:[%s8351_s4] sm:$0xf] }
 0x50c   :  { %2865 = vmatprep.subr.bf16.mxu0 %v6897_v11  ;;  %2906 = vmatprep.subr.bf16.mxu1 %v6902_v59  ;;  %v624_v10 = vrot.slane %v619_v9, %v6537_v51  ;;  %v632_v11 = vrot.slane %v619_v9, %v6541_v53  ;;  %v628_v59 = vrot.slane %v619_v9, %v6539_v52 }
 0x50d   :  { %2895 = vmatprep.mubr.bf16.mxu0 %v8448_v13  ;;  %2936 = vmatprep.mubr.bf16.mxu1 %v8448_v13 }
 0x50f   :  { %2866 = vmatpush1.bf16.msra.mxu0 %v6907_v36  ;;  %2907 = vmatpush1.bf16.msra.mxu1 %v6912_v55  ;;  %v636_v36 = vrot.slane %v619_v9, %v6543_v54  ;;  %v8482_v55 = vld [vmem:[#allocation38_spill] sm:$0xff]  ;;  %v5795_v9 = vld [vmem:[%s8346_s5 + $0x2c] ss:$16 sps:$4 sm:$0xff]  }
 0x510   :  { %2867 = vmatprep.subr.bf16.mxu0 %v6921_v61  ;;  %2908 = vmatprep.subr.bf16.mxu1 %v6926_v22  ;;  %v641_v61 = vadd.f32 %v624_v10, %v8482_v55  ;;  %v8483_v22 = vld [vmem:[#allocation39_spill] sm:$0xff]  ;;  %v5790_v10 = vld [vmem:[%s8346_s5 + $0x20] ss:$16 sps:$4 sm:$0xff]  }
 0x511   :  { %v5796_v55 = vld [vmem:[%s8346_s5 + $0x40] ss:$16 sps:$4 sm:$0xff]  }
 0x513   :  { %2868 = vmatpush1.bf16.msra.mxu0 %v6931_v42  ;;  %2909 = vmatpush1.bf16.msra.mxu1 %v6936_v28  ;;  %v643_v42 = vadd.f32 %v632_v11, %v8483_v22  ;;  %v5793_v11 = vld [vmem:[%s8346_s5 + $0x28] ss:$16 sps:$4 sm:$0xff]   ;;  %v5804_v22 = vld [vmem:[%s8346_s5 + $0x64] ss:$16 sps:$4 sm:$0xff]  }
 0x514   :  { %2869 = vmatprep.subr.bf16.mxu0 %v6945_v60  ;;  %2910 = vmatprep.subr.bf16.mxu1 %v6950_v45  ;;  %v8484_v45 = vld [vmem:[#allocation40_spill] sm:$0xff] }
 0x517   :  { %2870 = vmatpush1.bf16.msra.mxu0 %v6955_v39  ;;  %2911 = vmatpush1.bf16.msra.mxu1 %v6960_v12  ;;  %v642_v39 = vadd.f32 %v628_v59, %v8484_v45  ;;  %v8485_v12 = vld [vmem:[#allocation41_spill] sm:$0xff]  ;;  %v5798_v59 = vld [vmem:[%s8346_s5 + $0x44] ss:$16 sps:$4 sm:$0xff]  }
 0x518   :  { %2871 = vmatprep.subr.bf16.mxu0 %v6969_v56  ;;  %2912 = vmatprep.subr.bf16.mxu1 %v6974_v26  ;;  %v644_v56 = vadd.f32 %v636_v36, %v8485_v12  ;;  %v5801_v36 = vld [vmem:[%s8346_s5 + $0x4c] ss:$16 sps:$4 sm:$0xff]   ;;  %v5810_v45 = vld [vmem:[%s8346_s5 + $0x84] ss:$16 sps:$4 sm:$0xff]   ;;  %v5808_v12 = vld [vmem:[%s8346_s5 + $0x80] ss:$16 sps:$4 sm:$0xff]  }
 0x51b   :  { %2872 = vmatpush1.bf16.msra.mxu0 %v6979_v37  ;;  %2913 = vmatpush1.bf16.msra.mxu1 %v6984_v40 }
 0x51c   :  { %2873 = vmatprep.subr.bf16.mxu0 %v6998_v15  ;;  %2914 = vmatprep.subr.bf16.mxu1 %v7008_v31 }
 0x51f   :  { %2874 = vmatpush1.bf16.msra.mxu0 %v6993_v35  ;;  %2915 = vmatpush1.bf16.msra.mxu1 %v7003_v41 }
 0x520   :  { %2875 = vmatprep.subr.bf16.mxu0 %v7013_v58  ;;  %2916 = vmatprep.subr.bf16.mxu1 %v7019_v57 }
 0x523   :  { %2876 = vmatpush1.bf16.msra.mxu0 %v7027_v25  ;;  %2917 = vmatpush1.bf16.msra.mxu1 %v7032_v32 }
 0x524   :  { %2877 = vmatprep.subr.bf16.mxu0 %v7039_v23  ;;  %2918 = vmatprep.subr.bf16.mxu1 %v7044_v62 }
 0x527   :  { %2878 = vmatpush1.bf16.msra.mxu0 %v7051_v63  ;;  %2919 = vmatpush1.bf16.msra.mxu1 %v7056_v4 }
 0x528   :  { %3207 = vmatprep.subr.bf16.mxu1 %v5789_v47 }
 0x5dd   :  { %v2594_v28 = vpop.f32.mrb[20].mxu0  ;;  %v2635_v60 = vpop.f32.mrb[20].mxu1 }
 0x5de   :  { %v2642_v26 = vadd.f32 %v2594_v28, %v641_v61  ;;  %v2644_v37 = vadd.f32 %v2635_v60, %v643_v42  ;;  %v2596_v40 = vpop.f32.mrb[21].mxu0  ;;  %v2637_v35 = vpop.f32.mrb[21].mxu1  ;;  %v5799_v61 = vld [vmem:[%s8346_s5 + $0x48] ss:$16 sps:$4 sm:$0xff]   ;;  %v5807_v42 = vld [vmem:[%s8346_s5 + $0x6c] ss:$16 sps:$4 sm:$0xff]  }
 0x5df   :  { %v2643_v15 = vadd.f32 %v2596_v40, %v642_v39  ;;  %v2645_v41 = vadd.f32 %v2637_v35, %v644_v56  ;;  %v2598_v31 = vpop.f32.mrb[22].mxu0  ;;  %v2639_v58 = vpop.f32.mrb[22].mxu1  ;;  %v5802_v28 = vld [vmem:[%s8346_s5 + $0x60] ss:$16 sps:$4 sm:$0xff]   ;;  %v5805_v60 = vld [vmem:[%s8346_s5 + $0x68] ss:$16 sps:$4 sm:$0xff]  }
 0x5e0   :  { %v2646_v57 = vmul.f32 0.5, %v2642_v26  ;;  %v2599_v25 = vpop.f32.mrb[23].mxu0  ;;  %v2640_v32 = vpop.f32.mrb[23].mxu1  ;;  %v2648_v62 = vmul.f32 0.5, %v2644_v37  ;;  %v5813_v39 = vld [vmem:[%s8346_s5 + $0x8c] ss:$16 sps:$4 sm:$0xff]  }
 0x5e1   :  { %v2647_v23 = vmul.f32 0.5, %v2643_v15  ;;  %v5811_v56 = vld [vmem:[%s8346_s5 + $0x88] ss:$16 sps:$4 sm:$0xff]   ;;  %v5814_v26 = vld [vmem:[%s8346_s5 + $0xa0] ss:$16 sps:$4 sm:$0xff]  }
 0x5e2   :  { %6026 = vtanh.f32 %v2646_v57  ;;  %v5816_v37 = vld [vmem:[%s8346_s5 + $0xa4] ss:$16 sps:$4 sm:$0xff]   ;;  %v5817_v40 = vld [vmem:[%s8346_s5 + $0xa8] ss:$16 sps:$4 sm:$0xff]   ;;  %v5819_v35 = vld [vmem:[%s8346_s5 + $0xac] ss:$16 sps:$4 sm:$0xff]  }
 0x5e3   :  { %6028 = vtanh.f32 %v2647_v23  ;;  %v5822_v15 = vld [vmem:[%s8346_s5 + $0xc4] ss:$16 sps:$4 sm:$0xff]   ;;  %v5820_v31 = vld [vmem:[%s8346_s5 + $0xc0] ss:$16 sps:$4 sm:$0xff]   ;;  %v5823_v58 = vld [vmem:[%s8346_s5 + $0xc8] ss:$16 sps:$4 sm:$0xff]  }
 0x5e4   :  { %6030 = vtanh.f32 %v2645_v41  ;;  %v5825_v41 = vld [vmem:[%s8346_s5 + $0xcc] ss:$16 sps:$4 sm:$0xff]   ;;  %v5828_v57 = vld [vmem:[%s8346_s5 + $0xe4] ss:$16 sps:$4 sm:$0xff]   ;;  %v5826_v32 = vld [vmem:[%s8346_s5 + $0xe0] ss:$16 sps:$4 sm:$0xff]  }
 0x5e5   :  { %6032 = vtanh.f32 %v2648_v62  ;;  %v5831_v25 = vld [vmem:[%s8346_s5 + $0xec] ss:$16 sps:$4 sm:$0xff]   ;;  %v5829_v23 = vld [vmem:[%s8346_s5 + $0xe8] ss:$16 sps:$4 sm:$0xff]   ;;  %v5834_v62 = vld [vmem:[%s8352_s6 + $0x4] ss:$16 sps:$4 sm:$0xff]  }
 0x5ec   :  { %v6027_v63 = vpop.eup %6026 }
 0x5ed   :  { %v2652_v4 = vmul.f32 0.5, %v6027_v63  ;;  %v6029_v33 = vpop.eup %6028  ;;  %v5837_v63 = vld [vmem:[%s8352_s6 + $0xc] ss:$16 sps:$4 sm:$0xff]  }
 0x5ee   :  { %v2653_v30 = vmul.f32 0.5, %v6029_v33  ;;  %v6031_v6 = vpop.eup %6030 }
 0x5ef   :  { %v2655_v14 = vadd.f32 0.5, %v2652_v4  ;;  %v6033_v43 = vpop.eup %6032  ;;  %v719_v4 = vld [vmem:[%s8351_s4] sm:$0xf] }
 0x5f0   :  { %v2656_v0 = vadd.f32 0.5, %v2653_v30  ;;  %v2654_v29 = vmul.f32 0.5, %v6033_v43  ;;  %v724_v33 = vrot.slane %v719_v4, %v6537_v51  ;;  %v728_v30 = vrot.slane %v719_v4, %v6539_v52 }
 0x5f1   :  { %v2660_v44 = vmul.f32 %v6031_v6, %v2655_v14  ;;  %v732_v14 = vrot.slane %v719_v4, %v6541_v53  ;;  %v736_v6 = vrot.slane %v719_v4, %v6543_v54  ;;  %v5852_v4 = vld [vmem:[%s8352_s6 + $0x64] ss:$16 sps:$4 sm:$0xff]  }
 0x5f2   :  { %v2659_v27 = vmul.f32 %v2656_v0, %v7182_v20  ;;  %v2657_v17 = vadd.f32 0.5, %v2654_v29  ;;  %v8487_v0 = vld [vmem:[#allocation42_spill] sm:$0xff] }
 0x5f4   :  { %v7233_v50 = vadd.f32 %v2660_v44, %v2659_v27  ;;  %v741_v44 = vadd.f32 %v724_v33, %v8487_v0  ;;  %v8488_v27 = vld [vmem:[#allocation43_spill] sm:$0xff] }
 0x5f5   :  { %v743_v43 = vadd.f32 %v732_v14, %v8488_v27  ;;  %v5855_v33 = vld [vmem:[%s8352_s6 + $0x6c] ss:$16 sps:$4 sm:$0xff]   ;;  %v5850_v14 = vld [vmem:[%s8352_s6 + $0x60] ss:$16 sps:$4 sm:$0xff]   ;;  %v5859_v27 = vld [vmem:[%s8352_s6 + $0x88] ss:$16 sps:$4 sm:$0xff]  }
 0x5f6   :  { %6034 = vtanh.f32 %v7233_v50  ;;  %v5861_v0 = vld [vmem:[%s8352_s6 + $0x8c] ss:$16 sps:$4 sm:$0xff]  }
 0x600   :  { %v6035_v1 = vpop.eup %6034 }
 0x601   :  { %v2663_v19 = vmul.f32 %v6035_v1, %v2657_v17  ;;  %v8489_v17 = vld [vmem:[#allocation44_spill] sm:$0xff] }
 0x602   :  { %v742_v1 = vadd.f32 %v728_v30, %v8489_v17  ;;  %v5853_v30 = vld [vmem:[%s8352_s6 + $0x68] ss:$16 sps:$4 sm:$0xff]  }
 0x603   :  { %v2670_v2 = vpack.c.bf16 %v2663_v19, %v2663_v19  ;;  %v3296_v46 = vsel %vm3274_vm0, %v2663_v19, %v7079_v49  ;;  %v3293_v21 = vsel %vm3274_vm0, %v7079_v49, %v2663_v19  ;;  %v5786_v49 = vld [vmem:[%s8346_s5 + $0x4] ss:$16 sps:$4 sm:$0xff]   ;;  %v8490_v19 = vld [vmem:[#allocation45_spill] sm:$0xff] }
 0x604   :  { %v7254_v20 = vpack.c.bf16 %v3295_v24, %v3296_v46  ;;  %v7256_v8 = vpack.c.bf16 %v3294_v18, %v3293_v21  ;;  %v7258_v16 = vpack.c.bf16 %v3293_v21, %v3294_v18  ;;  %v7260_v7 = vpack.c.bf16 %v3296_v46, %v3295_v24  ;;  %3166 = vmatprep.subr.bf16.mxu0 %v5786_v49  ;;  %v5865_v17 = vld [vmem:[%s8352_s6 + $0xa8] ss:$16 sps:$4 sm:$0xff]  }
 0x605   :  { %2896 = vmatmul.mubr.bf16.vlgmr.msra.gmra.mrb[24].mxu0 %v2670_v2  ;;  %2937 = vmatmul.mubr.bf16.vlgmr.msra.gmra.mrb[24].mxu1 %v2670_v2  ;;  %v744_v24 = vadd.f32 %v736_v6, %v8490_v19  ;;  %v5858_v6 = vld [vmem:[%s8352_s6 + $0x84] ss:$16 sps:$4 sm:$0xff]   ;;  %v5873_v19 = vld [vmem:[%s8352_s6 + $0xcc] ss:$16 sps:$4 sm:$0xff]  }
 0x606   :  { %3198 = vmatprep.mubr.bf16.mxu0 %v8448_v13  ;;  %3239 = vmatprep.mubr.bf16.mxu1 %v8448_v13 }
 0x607   :  { %3167 = vmatpush1.bf16.msra.mxu0 %v5784_v3  ;;  %3208 = vmatpush1.bf16.msra.mxu1 %v5787_v34 }
 0x608   :  { %3168 = vmatprep.subr.bf16.mxu0 %v5792_v5  ;;  %3209 = vmatprep.subr.bf16.mxu1 %v5795_v9 }
 0x60b   :  { %3169 = vmatpush1.bf16.msra.mxu0 %v5790_v10  ;;  %3210 = vmatpush1.bf16.msra.mxu1 %v5793_v11 }
 0x60c   :  { %3170 = vmatprep.subr.bf16.mxu0 %v5798_v59  ;;  %3211 = vmatprep.subr.bf16.mxu1 %v5801_v36 }
 0x60f   :  { %3171 = vmatpush1.bf16.msra.mxu0 %v5796_v55  ;;  %3212 = vmatpush1.bf16.msra.mxu1 %v5799_v61 }
 0x610   :  { %3172 = vmatprep.subr.bf16.mxu0 %v5804_v22  ;;  %3213 = vmatprep.subr.bf16.mxu1 %v5807_v42 }
 0x613   :  { %3173 = vmatpush1.bf16.msra.mxu0 %v5802_v28  ;;  %3214 = vmatpush1.bf16.msra.mxu1 %v5805_v60 }
 0x614   :  { %3174 = vmatprep.subr.bf16.mxu0 %v5810_v45  ;;  %3215 = vmatprep.subr.bf16.mxu1 %v5813_v39 }
 0x617   :  { %3175 = vmatpush1.bf16.msra.mxu0 %v5808_v12  ;;  %3216 = vmatpush1.bf16.msra.mxu1 %v5811_v56 }
 0x618   :  { %3176 = vmatprep.subr.bf16.mxu0 %v5816_v37  ;;  %3217 = vmatprep.subr.bf16.mxu1 %v5819_v35 }
 0x61b   :  { %3177 = vmatpush1.bf16.msra.mxu0 %v5814_v26  ;;  %3218 = vmatpush1.bf16.msra.mxu1 %v5817_v40 }
 0x61c   :  { %3178 = vmatprep.subr.bf16.mxu0 %v5822_v15  ;;  %3219 = vmatprep.subr.bf16.mxu1 %v5825_v41  ;;  %v5832_v15 = vld [vmem:[%s8352_s6] ss:$16 sps:$4 sm:$0xff]   ;;  %v5835_v41 = vld [vmem:[%s8352_s6 + $0x8] ss:$16 sps:$4 sm:$0xff]  }
 0x61f   :  { %3179 = vmatpush1.bf16.msra.mxu0 %v5820_v31  ;;  %3220 = vmatpush1.bf16.msra.mxu1 %v5823_v58  ;;  %v5840_v31 = vld [vmem:[%s8352_s6 + $0x24] ss:$16 sps:$4 sm:$0xff]   ;;  %v5843_v58 = vld [vmem:[%s8352_s6 + $0x2c] ss:$16 sps:$4 sm:$0xff]  }
 0x620   :  { %3180 = vmatprep.subr.bf16.mxu0 %v5828_v57  ;;  %3221 = vmatprep.subr.bf16.mxu1 %v5831_v25  ;;  %v5838_v57 = vld [vmem:[%s8352_s6 + $0x20] ss:$16 sps:$4 sm:$0xff]   ;;  %v5841_v25 = vld [vmem:[%s8352_s6 + $0x28] ss:$16 sps:$4 sm:$0xff]  }
 0x623   :  { %3181 = vmatpush1.bf16.msra.mxu0 %v5826_v32  ;;  %3222 = vmatpush1.bf16.msra.mxu1 %v5829_v23  ;;  %v5846_v32 = vld [vmem:[%s8352_s6 + $0x44] ss:$16 sps:$4 sm:$0xff]   ;;  %v5849_v23 = vld [vmem:[%s8352_s6 + $0x4c] ss:$16 sps:$4 sm:$0xff]  }
 0x624   :  { %3745 = vmatprep.subr.bf16.mxu0 %v5834_v62  ;;  %3818 = vmatprep.subr.bf16.mxu1 %v5837_v63  ;;  %v5844_v62 = vld [vmem:[%s8352_s6 + $0x40] ss:$16 sps:$4 sm:$0xff]   ;;  %v5847_v63 = vld [vmem:[%s8352_s6 + $0x48] ss:$16 sps:$4 sm:$0xff]  }
 0x6d8   :  { %v2897_v29 = vpop.f32.mrb[24].mxu0  ;;  %v2938_v38 = vpop.f32.mrb[24].mxu1 }
 0x6d9   :  { %v2945_v2 = vadd.f32 %v2897_v29, %v741_v44  ;;  %v2947_v46 = vadd.f32 %v2938_v38, %v743_v43  ;;  %v2899_v21 = vpop.f32.mrb[25].mxu0  ;;  %v2940_v18 = vpop.f32.mrb[25].mxu1  ;;  %v5856_v44 = vld [vmem:[%s8352_s6 + $0x80] ss:$16 sps:$4 sm:$0xff]   ;;  %v5864_v43 = vld [vmem:[%s8352_s6 + $0xa4] ss:$16 sps:$4 sm:$0xff]  }
 0x6da   :  { %v2946_v49 = vadd.f32 %v2899_v21, %v742_v1  ;;  %v2948_v47 = vadd.f32 %v2940_v18, %v744_v24  ;;  %v2901_v3 = vpop.f32.mrb[26].mxu0  ;;  %v2942_v34 = vpop.f32.mrb[26].mxu1  ;;  %v5867_v29 = vld [vmem:[%s8352_s6 + $0xac] ss:$16 sps:$4 sm:$0xff]   ;;  %v5862_v38 = vld [vmem:[%s8352_s6 + $0xa0] ss:$16 sps:$4 sm:$0xff]  }
 0x6db   :  { %v2949_v5 = vmul.f32 0.5, %v2945_v2  ;;  %v2902_v9 = vpop.f32.mrb[27].mxu0  ;;  %v2943_v10 = vpop.f32.mrb[27].mxu1  ;;  %v2951_v59 = vmul.f32 0.5, %v2947_v46  ;;  %v5870_v1 = vld [vmem:[%s8352_s6 + $0xc4] ss:$16 sps:$4 sm:$0xff]  }
 0x6dc   :  { %v2950_v11 = vmul.f32 0.5, %v2946_v49  ;;  %v5868_v24 = vld [vmem:[%s8352_s6 + $0xc0] ss:$16 sps:$4 sm:$0xff]   ;;  %v5871_v2 = vld [vmem:[%s8352_s6 + $0xc8] ss:$16 sps:$4 sm:$0xff]  }
 0x6dd   :  { %6036 = vtanh.f32 %v2949_v5  ;;  %v5876_v46 = vld [vmem:[%s8352_s6 + $0xe4] ss:$16 sps:$4 sm:$0xff]   ;;  %v5879_v21 = vld [vmem:[%s8352_s6 + $0xec] ss:$16 sps:$4 sm:$0xff]   ;;  %v5874_v18 = vld [vmem:[%s8352_s6 + $0xe0] ss:$16 sps:$4 sm:$0xff]  }
 0x6de   :  { %6038 = vtanh.f32 %v2950_v11  ;;  %v5877_v49 = vld [vmem:[%s8352_s6 + $0xe8] ss:$16 sps:$4 sm:$0xff]   ;;  %v5885_v3 = vld [vmem:[%s8352_s6 + $0x10c] ss:$16 sps:$4 sm:$0xff]   ;;  %v5880_v34 = vld [vmem:[%s8352_s6 + $0x100] ss:$16 sps:$4 sm:$0xff]  }
 0x6df   :  { %6040 = vtanh.f32 %v2948_v47  ;;  %v5882_v47 = vld [vmem:[%s8352_s6 + $0x104] ss:$16 sps:$4 sm:$0xff]   ;;  %v5883_v5 = vld [vmem:[%s8352_s6 + $0x108] ss:$16 sps:$4 sm:$0xff]   ;;  %v5891_v10 = vld [vmem:[%s8352_s6 + $0x12c] ss:$16 sps:$4 sm:$0xff]  }
 0x6e0   :  { %6042 = vtanh.f32 %v2951_v59  ;;  %v5888_v9 = vld [vmem:[%s8352_s6 + $0x124] ss:$16 sps:$4 sm:$0xff]   ;;  %v5886_v11 = vld [vmem:[%s8352_s6 + $0x120] ss:$16 sps:$4 sm:$0xff]   ;;  %v5889_v59 = vld [vmem:[%s8352_s6 + $0x128] ss:$16 sps:$4 sm:$0xff]  }
 0x6e7   :  { %v6037_v36 = vpop.eup %6036 }
 0x6e8   :  { %v2955_v55 = vmul.f32 0.5, %v6037_v36  ;;  %v6039_v61 = vpop.eup %6038  ;;  %v5894_v36 = vld [vmem:[%s8352_s6 + $0x144] ss:$16 sps:$4 sm:$0xff]  }
 0x6e9   :  { %v2956_v42 = vmul.f32 0.5, %v6039_v61  ;;  %v6041_v28 = vpop.eup %6040  ;;  %v5892_v61 = vld [vmem:[%s8352_s6 + $0x140] ss:$16 sps:$4 sm:$0xff]  }
 0x6ea   :  { %v2958_v22 = vadd.f32 0.5, %v2955_v55  ;;  %v6043_v56 = vpop.eup %6042  ;;  %v5897_v55 = vld [vmem:[%s8352_s6 + $0x14c] ss:$16 sps:$4 sm:$0xff]  }
 0x6eb   :  { %v2959_v60 = vadd.f32 0.5, %v2956_v42  ;;  %v2957_v26 = vmul.f32 0.5, %v6043_v56  ;;  %v5900_v42 = vld [vmem:[%s8352_s6 + $0x164] ss:$16 sps:$4 sm:$0xff]   ;;  %v5909_v56 = vld [vmem:[%s8352_s6 + $0x18c] ss:$16 sps:$4 sm:$0xff]  }
 0x6ec   :  { %v2963_v45 = vmul.f32 %v6041_v28, %v2958_v22  ;;  %v5895_v22 = vld [vmem:[%s8352_s6 + $0x148] ss:$16 sps:$4 sm:$0xff]   ;;  %v5903_v28 = vld [vmem:[%s8352_s6 + $0x16c] ss:$16 sps:$4 sm:$0xff]  }
 0x6ed   :  { %v2962_v39 = vmul.f32 %v2959_v60, %v7233_v50  ;;  %v2960_v37 = vadd.f32 0.5, %v2957_v26  ;;  %v5898_v60 = vld [vmem:[%s8352_s6 + $0x160] ss:$16 sps:$4 sm:$0xff]  }
 0x6ee   :  { %v5904_v26 = vld [vmem:[%s8352_s6 + $0x180] ss:$16 sps:$4 sm:$0xff]  }
 0x6ef   :  { %v7378_v12 = vadd.f32 %v2963_v45, %v2962_v39  ;;  %v5901_v45 = vld [vmem:[%s8352_s6 + $0x168] ss:$16 sps:$4 sm:$0xff]   ;;  %v5906_v39 = vld [vmem:[%s8352_s6 + $0x184] ss:$16 sps:$4 sm:$0xff]  }
 0x6f1   :  { %6044 = vtanh.f32 %v7378_v12 }
 0x6fb   :  { %v6045_v40 = vpop.eup %6044 }
 0x6fc   :  { %v7381_v35 = vmul.f32 %v6045_v40, %v2960_v37  ;;  %v5907_v37 = vld [vmem:[%s8352_s6 + $0x188] ss:$16 sps:$4 sm:$0xff]   ;;  %v5912_v40 = vld [vmem:[%s8352_s6 + $0x1a4] ss:$16 sps:$4 sm:$0xff]  }
 0x6fe   :  { %v2973_v50 = vpack.c.bf16 %v7381_v35, %v7381_v35 }
 0x700   :  { %3199 = vmatmul.mubr.bf16.vlgmr.msra.gmra.mrb[28].mxu0 %v2973_v50  ;;  %3240 = vmatmul.mubr.bf16.vlgmr.msra.gmra.mrb[28].mxu1 %v2973_v50  ;;  %v5913_v50 = vld [vmem:[%s8352_s6 + $0x1a8] ss:$16 sps:$4 sm:$0xff]  }
 0x701   :  { %3746 = vmatpush1.bf16.msra.mxu0 %v5832_v15  ;;  %3819 = vmatpush1.bf16.msra.mxu1 %v5835_v41  ;;  %v5915_v15 = vld [vmem:[%s8352_s6 + $0x1ac] ss:$16 sps:$4 sm:$0xff]   ;;  %v5910_v41 = vld [vmem:[%s8352_s6 + $0x1a0] ss:$16 sps:$4 sm:$0xff]  }
 0x702   :  { %3747 = vmatprep.subr.bf16.mxu0 %v5840_v31  ;;  %3820 = vmatprep.subr.bf16.mxu1 %v5843_v58  ;;  %v5918_v31 = vld [vmem:[%s8352_s6 + $0x1c4] ss:$16 sps:$4 sm:$0xff]   ;;  %v5921_v58 = vld [vmem:[%s8352_s6 + $0x1cc] ss:$16 sps:$4 sm:$0xff]  }
 0x705   :  { %3748 = vmatpush1.bf16.msra.mxu0 %v5838_v57  ;;  %3821 = vmatpush1.bf16.msra.mxu1 %v5841_v25  ;;  %v5916_v57 = vld [vmem:[%s8352_s6 + $0x1c0] ss:$16 sps:$4 sm:$0xff]   ;;  %v5919_v25 = vld [vmem:[%s8352_s6 + $0x1c8] ss:$16 sps:$4 sm:$0xff]  }
 0x706   :  { %3749 = vmatprep.subr.bf16.mxu0 %v5846_v32  ;;  %3822 = vmatprep.subr.bf16.mxu1 %v5849_v23  ;;  %v5924_v32 = vld [vmem:[%s8352_s6 + $0x1e4] ss:$16 sps:$4 sm:$0xff]   ;;  %v5927_v23 = vld [vmem:[%s8352_s6 + $0x1ec] ss:$16 sps:$4 sm:$0xff]  }
 0x709   :  { %3750 = vmatpush1.bf16.msra.mxu0 %v5844_v62  ;;  %3823 = vmatpush1.bf16.msra.mxu1 %v5847_v63  ;;  %v5922_v62 = vld [vmem:[%s8352_s6 + $0x1e0] ss:$16 sps:$4 sm:$0xff]   ;;  %v5925_v63 = vld [vmem:[%s8352_s6 + $0x1e8] ss:$16 sps:$4 sm:$0xff]  }
 0x70a   :  { %3751 = vmatprep.subr.bf16.mxu0 %v5852_v4  ;;  %3824 = vmatprep.subr.bf16.mxu1 %v5855_v33  ;;  %v7574_v4 = vld [vmem:[%s8353_s8 + $0x4] ss:$16 sps:$4 sm:$0xff]   ;;  %v7580_v33 = vld [vmem:[%s8353_s8 + $0xc] ss:$16 sps:$4 sm:$0xff]  }
 0x70d   :  { %3752 = vmatpush1.bf16.msra.mxu0 %v5850_v14  ;;  %3825 = vmatpush1.bf16.msra.mxu1 %v5853_v30  ;;  %v819_v14 = vld [vmem:[%s8351_s4] sm:$0xf] }
 0x70e   :  { %3753 = vmatprep.subr.bf16.mxu0 %v5858_v6  ;;  %3826 = vmatprep.subr.bf16.mxu1 %v5861_v0  ;;  %v824_v30 = vrot.slane %v819_v14, %v6537_v51  ;;  %v832_v6 = vrot.slane %v819_v14, %v6541_v53  ;;  %v828_v0 = vrot.slane %v819_v14, %v6539_v52 }
 0x711   :  { %3754 = vmatpush1.bf16.msra.mxu0 %v5856_v44  ;;  %3827 = vmatpush1.bf16.msra.mxu1 %v5859_v27  ;;  %v836_v44 = vrot.slane %v819_v14, %v6543_v54  ;;  %v8491_v27 = vld [vmem:[#allocation46_spill] sm:$0xff] }
 0x712   :  { %3755 = vmatprep.subr.bf16.mxu0 %v5864_v43  ;;  %3828 = vmatprep.subr.bf16.mxu1 %v5867_v29  ;;  %v841_v43 = vadd.f32 %v824_v30, %v8491_v27  ;;  %v8492_v29 = vld [vmem:[#allocation47_spill] sm:$0xff]  ;;  %v7612_v14 = vld [vmem:[%s8353_s8] ss:$16 sps:$4 sm:$0xff]  }
 0x713   :  { %v7643_v27 = vld [vmem:[%s8353_s8 + $0x28] ss:$16 sps:$4 sm:$0xff]  }
 0x715   :  { %3756 = vmatpush1.bf16.msra.mxu0 %v5862_v38  ;;  %3829 = vmatpush1.bf16.msra.mxu1 %v5865_v17  ;;  %v843_v38 = vadd.f32 %v832_v6, %v8492_v29  ;;  %v7661_v29 = vld [vmem:[%s8353_s8 + $0x40] ss:$16 sps:$4 sm:$0xff]  }
 0x716   :  { %3757 = vmatprep.subr.bf16.mxu0 %v5870_v1  ;;  %3830 = vmatprep.subr.bf16.mxu1 %v5873_v19  ;;  %v8493_v19 = vld [vmem:[#allocation48_spill] sm:$0xff] }
 0x719   :  { %3758 = vmatpush1.bf16.msra.mxu0 %v5868_v24  ;;  %3831 = vmatpush1.bf16.msra.mxu1 %v5871_v2  ;;  %v842_v24 = vadd.f32 %v828_v0, %v8493_v19  ;;  %v8494_v2 = vld [vmem:[#allocation49_spill] sm:$0xff]  ;;  %v7688_v19 = vld [vmem:[%s8353_s8 + $0x60] ss:$16 sps:$4 sm:$0xff]  }
 0x71a   :  { %3759 = vmatprep.subr.bf16.mxu0 %v5876_v46  ;;  %3832 = vmatprep.subr.bf16.mxu1 %v5879_v21  ;;  %v844_v46 = vadd.f32 %v836_v44, %v8494_v2  ;;  %v7619_v0 = vld [vmem:[%s8353_s8 + $0x8] ss:$16 sps:$4 sm:$0xff]   ;;  %v7636_v44 = vld [vmem:[%s8353_s8 + $0x20] ss:$16 sps:$4 sm:$0xff]  }
 0x71b   :  { %v7713_v2 = vld [vmem:[%s8353_s8 + $0x80] ss:$16 sps:$4 sm:$0xff]  }
 0x71d   :  { %3760 = vmatpush1.bf16.msra.mxu0 %v5874_v18  ;;  %3833 = vmatpush1.bf16.msra.mxu1 %v5877_v49 }
 0x71e   :  { %3761 = vmatprep.subr.bf16.mxu0 %v5882_v47  ;;  %3834 = vmatprep.subr.bf16.mxu1 %v5885_v3 }
 0x721   :  { %3762 = vmatpush1.bf16.msra.mxu0 %v5880_v34  ;;  %3835 = vmatpush1.bf16.msra.mxu1 %v5883_v5 }
 0x722   :  { %3763 = vmatprep.subr.bf16.mxu0 %v5888_v9  ;;  %3836 = vmatprep.subr.bf16.mxu1 %v5891_v10 }
 0x725   :  { %3764 = vmatpush1.bf16.msra.mxu0 %v5886_v11  ;;  %3837 = vmatpush1.bf16.msra.mxu1 %v5889_v59 }
 0x726   :  { %3765 = vmatprep.subr.bf16.mxu0 %v5894_v36  ;;  %3838 = vmatprep.subr.bf16.mxu1 %v5897_v55 }
 0x729   :  { %3766 = vmatpush1.bf16.msra.mxu0 %v5892_v61  ;;  %3839 = vmatpush1.bf16.msra.mxu1 %v5895_v22 }
 0x72a   :  { %3767 = vmatprep.subr.bf16.mxu0 %v5900_v42  ;;  %3840 = vmatprep.subr.bf16.mxu1 %v5903_v28 }
 0x72d   :  { %3768 = vmatpush1.bf16.msra.mxu0 %v5898_v60  ;;  %3841 = vmatpush1.bf16.msra.mxu1 %v5901_v45 }
 0x72e   :  { %3769 = vmatprep.subr.bf16.mxu0 %v5906_v39  ;;  %3842 = vmatprep.subr.bf16.mxu1 %v5909_v56 }
 0x731   :  { %3770 = vmatpush1.bf16.msra.mxu0 %v5904_v26  ;;  %3843 = vmatpush1.bf16.msra.mxu1 %v5907_v37 }
 0x732   :  { %3771 = vmatprep.subr.bf16.mxu0 %v5912_v40  ;;  %3844 = vmatprep.subr.bf16.mxu1 %v5915_v15 }
 0x735   :  { %3772 = vmatpush1.bf16.msra.mxu0 %v5910_v41  ;;  %3845 = vmatpush1.bf16.msra.mxu1 %v5913_v50 }
 0x736   :  { %3773 = vmatprep.subr.bf16.mxu0 %v5918_v31  ;;  %3846 = vmatprep.subr.bf16.mxu1 %v5921_v58  ;;  %v8495_v58 = vld [vmem:[#allocation6_spill] sm:$0xff] }
 0x739   :  { %3774 = vmatpush1.bf16.msra.mxu0 %v5916_v57  ;;  %3847 = vmatpush1.bf16.msra.mxu1 %v5919_v25  ;;  %v3297_v57 = vsel %vm3274_vm0, %v7381_v35, %v8495_v58  ;;  %v8496_v25 = vld [vmem:[#allocation50_spill] sm:$0xff] }
 0x73a   :  { %3775 = vmatprep.subr.bf16.mxu0 %v5924_v32  ;;  %3848 = vmatprep.subr.bf16.mxu1 %v5927_v23  ;;  %v3292_v23 = vsel %vm3274_vm0, %v8495_v58, %v7381_v35  ;;  %v7629_v35 = vld [vmem:[%s8353_s8 + $0x2c] ss:$16 sps:$4 sm:$0xff]  }
 0x73d   :  { %3776 = vmatpush1.bf16.msra.mxu0 %v5922_v62  ;;  %3849 = vmatpush1.bf16.msra.mxu1 %v5925_v63 }
 0x73e   :  { %4119 = vmatprep.subr.bf16.mxu0 %v7574_v4  ;;  %4160 = vmatprep.subr.bf16.mxu1 %v7580_v33 }
 0x7d3   :  { %v3200_v17 = vpop.f32.mrb[28].mxu0  ;;  %v3241_v1 = vpop.f32.mrb[28].mxu1 }
 0x7d4   :  { %v3248_v21 = vadd.f32 %v3200_v17, %v841_v43  ;;  %v3250_v18 = vadd.f32 %v3241_v1, %v843_v38  ;;  %v3202_v49 = vpop.f32.mrb[29].mxu0  ;;  %v3243_v47 = vpop.f32.mrb[29].mxu1  ;;  %v7648_v43 = vld [vmem:[%s8353_s8 + $0x44] ss:$16 sps:$4 sm:$0xff]   ;;  %v7668_v38 = vld [vmem:[%s8353_s8 + $0x48] ss:$16 sps:$4 sm:$0xff]  }
 0x7d5   :  { %v3249_v3 = vadd.f32 %v3202_v49, %v842_v24  ;;  %v3251_v34 = vadd.f32 %v3243_v47, %v844_v46  ;;  %v3204_v5 = vpop.f32.mrb[30].mxu0  ;;  %v3245_v9 = vpop.f32.mrb[30].mxu1  ;;  %v7674_v17 = vld [vmem:[%s8353_s8 + $0x64] ss:$16 sps:$4 sm:$0xff]   ;;  %v7679_v1 = vld [vmem:[%s8353_s8 + $0x6c] ss:$16 sps:$4 sm:$0xff]  }
 0x7d6   :  { %v3252_v10 = vmul.f32 0.5, %v3248_v21  ;;  %v3205_v11 = vpop.f32.mrb[31].mxu0  ;;  %v3246_v59 = vpop.f32.mrb[31].mxu1  ;;  %v3254_v55 = vmul.f32 0.5, %v3250_v18  ;;  %v7695_v24 = vld [vmem:[%s8353_s8 + $0x68] ss:$16 sps:$4 sm:$0xff]  }
 0x7d7   :  { %v3253_v36 = vmul.f32 0.5, %v3249_v3  ;;  %v7720_v46 = vld [vmem:[%s8353_s8 + $0x88] ss:$16 sps:$4 sm:$0xff]   ;;  %v7726_v21 = vld [vmem:[%s8353_s8 + $0xa4] ss:$16 sps:$4 sm:$0xff]  }
 0x7d8   :  { %6046 = vtanh.f32 %v3252_v10  ;;  %v7731_v18 = vld [vmem:[%s8353_s8 + $0xac] ss:$16 sps:$4 sm:$0xff]   ;;  %v7739_v49 = vld [vmem:[%s8353_s8 + $0xa0] ss:$16 sps:$4 sm:$0xff]   ;;  %v7745_v47 = vld [vmem:[%s8353_s8 + $0xa8] ss:$16 sps:$4 sm:$0xff]  }
 0x7d9   :  { %6048 = vtanh.f32 %v3253_v36  ;;  %v7757_v3 = vld [vmem:[%s8353_s8 + $0xcc] ss:$16 sps:$4 sm:$0xff]   ;;  %v7770_v5 = vld [vmem:[%s8353_s8 + $0xc8] ss:$16 sps:$4 sm:$0xff]   ;;  %v7775_v9 = vld [vmem:[%s8353_s8 + $0xe4] ss:$16 sps:$4 sm:$0xff]  }
 0x7da   :  { %6050 = vtanh.f32 %v3251_v34  ;;  %v7763_v34 = vld [vmem:[%s8353_s8 + $0xc0] ss:$16 sps:$4 sm:$0xff]   ;;  %v7781_v10 = vld [vmem:[%s8353_s8 + $0xec] ss:$16 sps:$4 sm:$0xff]   ;;  %v7797_v59 = vld [vmem:[%s8353_s8 + $0xe8] ss:$16 sps:$4 sm:$0xff]  }
 0x7db   :  { %6052 = vtanh.f32 %v3254_v55  ;;  %v7789_v11 = vld [vmem:[%s8353_s8 + $0xe0] ss:$16 sps:$4 sm:$0xff]  }
 0x7dc   :  { %v3403_v36 = vld [vmem:[%s8354_s7] sm:$0xf] }
 0x7e2   :  { %v6047_v61 = vpop.eup %6046 }
 0x7e3   :  { %v3258_v22 = vmul.f32 0.5, %v6047_v61  ;;  %v6049_v42 = vpop.eup %6048 }
 0x7e4   :  { %v3259_v60 = vmul.f32 0.5, %v6049_v42  ;;  %v6051_v45 = vpop.eup %6050  ;;  %v3416_v42 = vrot.slane %v3403_v36, %v6541_v53 }
 0x7e5   :  { %v3261_v28 = vadd.f32 0.5, %v3258_v22  ;;  %v6053_v40 = vpop.eup %6052  ;;  %v3408_v22 = vrot.slane %v3403_v36, %v6537_v51 }
 0x7e6   :  { %v3262_v39 = vadd.f32 0.5, %v3259_v60  ;;  %v3260_v15 = vmul.f32 0.5, %v6053_v40 }
 0x7e7   :  { %v3266_v56 = vmul.f32 %v6051_v45, %v3261_v28  ;;  %v3412_v45 = vrot.slane %v3403_v36, %v6539_v52 }
 0x7e8   :  { %v3265_v26 = vmul.f32 %v3262_v39, %v7378_v12  ;;  %v3263_v41 = vadd.f32 0.5, %v3260_v15  ;;  %v3420_v39 = vrot.slane %v3403_v36, %v6543_v54 }
 0x7ea   :  { %v3267_v37 = vadd.f32 %v3266_v56, %v3265_v26 }
 0x7ec   :  { %6054 = vtanh.f32 %v3267_v37 }
 0x7f6   :  { %v6055_v50 = vpop.eup %6054 }
 0x7f7   :  { %v3269_v31 = vmul.f32 %v6055_v50, %v3263_v41 }
 0x7f9   :  { %v3298_v32 = vsel %vm3274_vm0, %v3269_v31, %v8496_v25  ;;  %v3291_v12 = vsel %vm3274_vm0, %v8496_v25, %v3269_v31 }
 0x7fa   :  { %v3332_v62 = vpack.c.bf16 %v3297_v57, %v3298_v32  ;;  %v3331_v63 = vpack.c.bf16 %v3292_v23, %v3291_v12  ;;  %v3338_v30 = vpack.c.bf16 %v3291_v12, %v3292_v23  ;;  %v7614_v6 = vpack.c.bf16 %v3298_v32, %v3297_v57 }
 0x7fc   :  { %3777 = vmatprep.mubr.bf16.mxu0 %v3332_v62  ;;  %3850 = vmatprep.mubr.bf16.mxu1 %v3332_v62 }
 0x7fd   :  { %3778 = vmatmul.mubr.bf16.vlgmr.msra.gmra.mrb[32].mxu0 %v3331_v63  ;;  %3851 = vmatmul.mubr.bf16.vlgmr.msra.gmra.mrb[32].mxu1 %v3331_v63 }
 0x7fe   :  { %4120 = vmatpush1.bf16.msra.mxu0 %v7612_v14  ;;  %3787 = vmatprep.mubr.bf16.mxu0 %v7254_v20 }
 0x7ff   :  { %3860 = vmatprep.mubr.bf16.mxu1 %v7254_v20  ;;  %4161 = vmatpush1.bf16.msra.mxu1 %v7619_v0  ;;  %v7655_v20 = vld [vmem:[%s8353_s8 + $0x4c] ss:$16 sps:$4 sm:$0xff]  }
 0x800   :  { %4121 = vmatprep.subr.bf16.mxu0 %v7624_v48  ;;  %4162 = vmatprep.subr.bf16.mxu1 %v7629_v35 }
 0x802   :  { %4122 = vmatpush1.bf16.msra.mxu0 %v7636_v44 }
 0x803   :  { %4163 = vmatpush1.bf16.msra.mxu1 %v7643_v27  ;;  %4123 = vmatprep.subr.bf16.mxu0 %v7648_v43 }
 0x804   :  { %4164 = vmatprep.subr.bf16.mxu1 %v7655_v20 }
 0x805   :  { %3788 = vmatmul.mubr.bf16.gmra.mrb[36].mxu0 %v7256_v8  ;;  %3861 = vmatmul.mubr.bf16.gmra.mrb[36].mxu1 %v7256_v8  ;;  %v7700_v8 = vld [vmem:[%s8353_s8 + $0x84] ss:$16 sps:$4 sm:$0xff]  }
 0x806   :  { %4124 = vmatpush1.bf16.msra.mxu0 %v7661_v29  ;;  %3797 = vmatprep.mubr.bf16.mxu0 %v7258_v16 }
 0x807   :  { %3870 = vmatprep.mubr.bf16.mxu1 %v7258_v16  ;;  %4165 = vmatpush1.bf16.msra.mxu1 %v7668_v38  ;;  %v7707_v16 = vld [vmem:[%s8353_s8 + $0x8c] ss:$16 sps:$4 sm:$0xff]  }
 0x808   :  { %4125 = vmatprep.subr.bf16.mxu0 %v7674_v17  ;;  %4166 = vmatprep.subr.bf16.mxu1 %v7679_v1 }
 0x80a   :  { %4126 = vmatpush1.bf16.msra.mxu0 %v7688_v19 }
 0x80b   :  { %4167 = vmatpush1.bf16.msra.mxu1 %v7695_v24  ;;  %4127 = vmatprep.subr.bf16.mxu0 %v7700_v8 }
 0x80c   :  { %4168 = vmatprep.subr.bf16.mxu1 %v7707_v16 }
 0x80d   :  { %3798 = vmatmul.mubr.bf16.gmra.mrb[40].mxu0 %v7260_v7  ;;  %3871 = vmatmul.mubr.bf16.gmra.mrb[40].mxu1 %v7260_v7  ;;  %v7750_v7 = vld [vmem:[%s8353_s8 + $0xc4] ss:$16 sps:$4 sm:$0xff]  }
 0x80e   :  { %4128 = vmatpush1.bf16.msra.mxu0 %v7713_v2  ;;  %3807 = vmatprep.mubr.bf16.mxu0 %v3338_v30 }
 0x80f   :  { %3880 = vmatprep.mubr.bf16.mxu1 %v3338_v30  ;;  %4169 = vmatpush1.bf16.msra.mxu1 %v7720_v46 }
 0x810   :  { %4129 = vmatprep.subr.bf16.mxu0 %v7726_v21  ;;  %4170 = vmatprep.subr.bf16.mxu1 %v7731_v18 }
 0x812   :  { %4130 = vmatpush1.bf16.msra.mxu0 %v7739_v49 }
 0x813   :  { %4171 = vmatpush1.bf16.msra.mxu1 %v7745_v47  ;;  %4131 = vmatprep.subr.bf16.mxu0 %v7750_v7 }
 0x814   :  { %4172 = vmatprep.subr.bf16.mxu1 %v7757_v3 }
 0x815   :  { %3808 = vmatmul.mubr.bf16.gmra.mrb[44].mxu0 %v7614_v6  ;;  %3881 = vmatmul.mubr.bf16.gmra.mrb[44].mxu1 %v7614_v6 }
 0x816   :  { %4132 = vmatpush1.bf16.msra.mxu0 %v7763_v34  ;;  %4151 = vmatprep.mubr.bf16.mxu0 %v8448_v13 }
 0x817   :  { %4173 = vmatpush1.bf16.msra.mxu1 %v7770_v5  ;;  %4133 = vmatprep.subr.bf16.mxu0 %v7775_v9 }
 0x818   :  { %4174 = vmatprep.subr.bf16.mxu1 %v7781_v10  ;;  %4192 = vmatprep.mubr.bf16.mxu1 %v8448_v13 }
 0x81a   :  { %4134 = vmatpush1.bf16.msra.mxu0 %v7789_v11 }
 0x81b   :  { %4175 = vmatpush1.bf16.msra.mxu1 %v7797_v59  ;;  %4228 = vmatprep.subr.bf16.mxu0 %v7574_v4 }
 0x81c   :  { %4269 = vmatprep.subr.bf16.mxu1 %v7580_v33 }
 0x81d   :  { %4152 = vmatmul.mubr.bf16.vlgmr.msra.gmra.mrb[48].mxu0 %v8448_v13 }
 0x81e   :  { %4193 = vmatmul.mubr.bf16.vlgmr.msra.gmra.mrb[48].mxu1 %v8448_v13  ;;  %4229 = vmatpush1.bf16.msra.mxu0 %v7612_v14 }
 0x81f   :  { %4270 = vmatpush1.bf16.msra.mxu1 %v7619_v0  ;;  %4230 = vmatprep.subr.bf16.mxu0 %v7624_v48 }
 0x820   :  { %4271 = vmatprep.subr.bf16.mxu1 %v7629_v35  ;;  %4260 = vmatprep.mubr.bf16.mxu0 %v8448_v13 }
 0x821   :  { %4301 = vmatprep.mubr.bf16.mxu1 %v8448_v13 }
 0x822   :  { %4231 = vmatpush1.bf16.msra.mxu0 %v7636_v44 }
 0x823   :  { %4272 = vmatpush1.bf16.msra.mxu1 %v7643_v27  ;;  %4232 = vmatprep.subr.bf16.mxu0 %v7648_v43 }
 0x824   :  { %4273 = vmatprep.subr.bf16.mxu1 %v7655_v20 }
 0x826   :  { %4233 = vmatpush1.bf16.msra.mxu0 %v7661_v29 }
 0x827   :  { %4274 = vmatpush1.bf16.msra.mxu1 %v7668_v38  ;;  %4234 = vmatprep.subr.bf16.mxu0 %v7674_v17 }
 0x828   :  { %4275 = vmatprep.subr.bf16.mxu1 %v7679_v1 }
 0x82a   :  { %4235 = vmatpush1.bf16.msra.mxu0 %v7688_v19 }
 0x82b   :  { %4276 = vmatpush1.bf16.msra.mxu1 %v7695_v24  ;;  %4236 = vmatprep.subr.bf16.mxu0 %v7700_v8 }
 0x82c   :  { %4277 = vmatprep.subr.bf16.mxu1 %v7707_v16 }
 0x82e   :  { %4237 = vmatpush1.bf16.msra.mxu0 %v7713_v2 }
 0x82f   :  { %4278 = vmatpush1.bf16.msra.mxu1 %v7720_v46  ;;  %4238 = vmatprep.subr.bf16.mxu0 %v7726_v21 }
 0x830   :  { %4279 = vmatprep.subr.bf16.mxu1 %v7731_v18 }
 0x832   :  { %4239 = vmatpush1.bf16.msra.mxu0 %v7739_v49 }
 0x833   :  { %4280 = vmatpush1.bf16.msra.mxu1 %v7745_v47  ;;  %4240 = vmatprep.subr.bf16.mxu0 %v7750_v7 }
 0x834   :  { %4281 = vmatprep.subr.bf16.mxu1 %v7757_v3 }
 0x836   :  { %4241 = vmatpush1.bf16.msra.mxu0 %v7763_v34 }
 0x837   :  { %4282 = vmatpush1.bf16.msra.mxu1 %v7770_v5  ;;  %4242 = vmatprep.subr.bf16.mxu0 %v7775_v9 }
 0x838   :  { %4283 = vmatprep.subr.bf16.mxu1 %v7781_v10 }
 0x83a   :  { %4243 = vmatpush1.bf16.msra.mxu0 %v7789_v11 }
 0x83b   :  { %4284 = vmatpush1.bf16.msra.mxu1 %v7797_v59  ;;  %4337 = vmatprep.subr.bf16.mxu0 %v7574_v4 }
 0x83c   :  { %4378 = vmatprep.subr.bf16.mxu1 %v7580_v33 }
 0x8d0   :  { %v7844_v55 = vpop.f32.mrb[32].mxu0  ;;  %v7846_v61 = vpop.f32.mrb[32].mxu1 }
 0x8d1   :  { %v3781_v28 = vpop.f32.mrb[33].mxu0  ;;  %v7850_v60 = vpop.f32.mrb[33].mxu1 }
 0x8d2   :  { %v3783_v56 = vpop.f32.mrb[34].mxu0  ;;  %v3856_v26 = vpop.f32.mrb[34].mxu1 }
 0x8d3   :  { %v7854_v37 = vadd.f32 %v3783_v56, %v3408_v22  ;;  %v7856_v40 = vadd.f32 %v3856_v26, %v3416_v42  ;;  %v3785_v15 = vpop.f32.mrb[35].mxu0  ;;  %v3858_v41 = vpop.f32.mrb[35].mxu1 }
 0x8d4   :  { %v7858_v50 = vadd.f32 %v3785_v15, %v3412_v45  ;;  %v7860_v51 = vadd.f32 %v3858_v41, %v3420_v39 }
 0x8d8   :  { %v3789_v53 = vpop.f32.mrb[36].mxu0  ;;  %v3862_v31 = vpop.f32.mrb[36].mxu1 }
 0x8d9   :  { %v7862_v58 = vadd.f32 %v3789_v53, %v3408_v22  ;;  %v7864_v57 = vadd.f32 %v3862_v31, %v3416_v42  ;;  %v3791_v52 = vpop.f32.mrb[37].mxu0  ;;  %v3864_v54 = vpop.f32.mrb[37].mxu1 }
 0x8da   :  { %v7866_v25 = vadd.f32 %v3791_v52, %v3412_v45  ;;  %v7868_v32 = vadd.f32 %v3864_v54, %v3420_v39  ;;  %v3793_v12 = vpop.f32.mrb[38].mxu0  ;;  %v3866_v23 = vpop.f32.mrb[38].mxu1 }
 0x8db   :  { %8497 = vst [vmem:[#allocation7_spill] sm:$0xff] %v7864_v57  ;;  %v7870_v62 = vadd.f32 %v3793_v12, %v3408_v22  ;;  %v7872_v63 = vadd.f32 %v3866_v23, %v3416_v42  ;;  %v3795_v30 = vpop.f32.mrb[39].mxu0  ;;  %v3868_v6 = vpop.f32.mrb[39].mxu1 }
 0x8dc   :  { %8498 = vst [vmem:[#allocation8_spill] sm:$0xff] %v7866_v25  ;;  %8499 = vst [vmem:[#allocation9_spill] sm:$0xff] %v7868_v32  ;;  %v7874_v36 = vadd.f32 %v3795_v30, %v3412_v45  ;;  %v7876_v56 = vadd.f32 %v3868_v6, %v3420_v39 }
 0x8dd   :  { %8500 = vst [vmem:[#allocation10_spill] sm:$0xff] %v7870_v62  ;;  %8501 = vst [vmem:[#allocation11_spill] sm:$0xff] %v7872_v63 }
 0x8de   :  { %8502 = vst [vmem:[#allocation12_spill] sm:$0xff] %v7874_v36  ;;  %8503 = vst [vmem:[#allocation13_spill] sm:$0xff] %v7876_v56 }
 0x8e0   :  { %v3799_v26 = vpop.f32.mrb[40].mxu0  ;;  %v3872_v15 = vpop.f32.mrb[40].mxu1 }
 0x8e1   :  { %v7878_v41 = vadd.f32 %v3799_v26, %v3408_v22  ;;  %v7880_v53 = vadd.f32 %v3872_v15, %v3416_v42  ;;  %v3801_v31 = vpop.f32.mrb[41].mxu0  ;;  %v3874_v52 = vpop.f32.mrb[41].mxu1 }
 0x8e2   :  { %v7882_v54 = vadd.f32 %v3801_v31, %v3412_v45  ;;  %v7884_v12 = vadd.f32 %v3874_v52, %v3420_v39  ;;  %v3803_v23 = vpop.f32.mrb[42].mxu0  ;;  %v3876_v63 = vpop.f32.mrb[42].mxu1 }
 0x8e3   :  { %8504 = vst [vmem:[#allocation14_spill] sm:$0xff] %v7878_v41  ;;  %8505 = vst [vmem:[#allocation15_spill] sm:$0xff] %v7880_v53  ;;  %v7886_v62 = vadd.f32 %v3803_v23, %v3408_v22  ;;  %v7888_v30 = vadd.f32 %v3876_v63, %v3416_v42  ;;  %v3805_v6 = vpop.f32.mrb[43].mxu0  ;;  %v3878_v56 = vpop.f32.mrb[43].mxu1 }
 0x8e4   :  { %8506 = vst [vmem:[#allocation16_spill] sm:$0xff] %v7882_v54  ;;  %8507 = vst [vmem:[#allocation17_spill] sm:$0xff] %v7884_v12  ;;  %v7890_v36 = vadd.f32 %v3805_v6, %v3412_v45  ;;  %v7892_v26 = vadd.f32 %v3878_v56, %v3420_v39 }
 0x8e5   :  { %8508 = vst [vmem:[#allocation18_spill] sm:$0xff] %v7886_v62  ;;  %8509 = vst [vmem:[#allocation19_spill] sm:$0xff] %v7888_v30 }
 0x8e6   :  { %8510 = vst [vmem:[#allocation20_spill] sm:$0xff] %v7890_v36  ;;  %8511 = vst [vmem:[#allocation21_spill] sm:$0xff] %v7892_v26 }
 0x8e8   :  { %v3809_v15 = vpop.f32.mrb[44].mxu0  ;;  %v3882_v53 = vpop.f32.mrb[44].mxu1 }
 0x8e9   :  { %v7894_v41 = vadd.f32 %v3809_v15, %v3408_v22  ;;  %v7896_v31 = vadd.f32 %v3882_v53, %v3416_v42  ;;  %v3811_v52 = vpop.f32.mrb[45].mxu0  ;;  %v3884_v12 = vpop.f32.mrb[45].mxu1  ;;  %v3780_v53 = vadd.f32 %v7844_v55, %v3408_v22 }
 0x8ea   :  { %v7898_v54 = vadd.f32 %v3811_v52, %v3412_v45  ;;  %v7900_v23 = vadd.f32 %v3884_v12, %v3420_v39  ;;  %v3813_v63 = vpop.f32.mrb[46].mxu0  ;;  %v3886_v30 = vpop.f32.mrb[46].mxu1  ;;  %v3782_v52 = vadd.f32 %v3781_v28, %v3412_v45  ;;  %v3855_v12 = vadd.f32 %v7850_v60, %v3420_v39 }
 0x8eb   :  { %8512 = vst [vmem:[#allocation22_spill] sm:$0xff] %v7894_v41  ;;  %8513 = vst [vmem:[#allocation23_spill] sm:$0xff] %v7896_v31  ;;  %v7902_v62 = vadd.f32 %v3813_v63, %v3408_v22  ;;  %v7904_v6 = vadd.f32 %v3886_v30, %v3416_v42  ;;  %v3815_v56 = vpop.f32.mrb[47].mxu0  ;;  %v3888_v26 = vpop.f32.mrb[47].mxu1  ;;  %v3853_v31 = vadd.f32 %v7846_v61, %v3416_v42 }
 0x8ec   :  { %8514 = vst [vmem:[#allocation24_spill] sm:$0xff] %v7898_v54  ;;  %8515 = vst [vmem:[#allocation25_spill] sm:$0xff] %v7900_v23  ;;  %v7906_v36 = vadd.f32 %v3815_v56, %v3412_v45  ;;  %v7908_v15 = vadd.f32 %v3888_v26, %v3420_v39 }
 0x8ed   :  { %8516 = vst [vmem:[#allocation26_spill] sm:$0xff] %v7902_v62  ;;  %8517 = vst [vmem:[#allocation27_spill] sm:$0xff] %v7904_v6 }
 0x8ee   :  { %8518 = vst [vmem:[#allocation28_spill] sm:$0xff] %v7906_v36  ;;  %8519 = vst [vmem:[#allocation29_spill] sm:$0xff] %v7908_v15 }
 0x8f0   :  { %v4153_v54 = vpop.f32.mrb[48].mxu0 }
 0x8f1   :  { %v4201_v23 = vadd.f32 %v4153_v54, %v3780_v53  ;;  %v4194_v41 = vpop.f32.mrb[48].mxu1  ;;  %v4155_v63 = vpop.f32.mrb[49].mxu0 }
 0x8f2   :  { %v4203_v62 = vadd.f32 %v4194_v41, %v3853_v31  ;;  %v4202_v30 = vadd.f32 %v4155_v63, %v3782_v52  ;;  %v4196_v6 = vpop.f32.mrb[49].mxu1  ;;  %v4157_v32 = vpop.f32.mrb[50].mxu0 }
 0x8f3   :  { %v4205_v25 = vmul.f32 0.5, %v4201_v23  ;;  %v4204_v56 = vadd.f32 %v4196_v6, %v3855_v12  ;;  %v4158_v36 = vpop.f32.mrb[51].mxu0  ;;  %v4198_v26 = vpop.f32.mrb[50].mxu1 }
 0x8f4   :  { %v4206_v15 = vmul.f32 0.5, %v4202_v30  ;;  %v4199_v57 = vpop.f32.mrb[51].mxu1  ;;  %v4207_v55 = vmul.f32 0.5, %v4203_v62 }
 0x8f5   :  { %6056 = vtanh.f32 %v4205_v25 }
 0x8f6   :  { %6058 = vtanh.f32 %v4206_v15 }
 0x8f7   :  { %6060 = vtanh.f32 %v4204_v56 }
 0x8f8   :  { %6062 = vtanh.f32 %v4207_v55 }
 0x8ff   :  { %v6057_v61 = vpop.eup %6056 }
 0x900   :  { %v4211_v22 = vmul.f32 0.5, %v6057_v61  ;;  %v6059_v42 = vpop.eup %6058 }
 0x901   :  { %v4212_v60 = vmul.f32 0.5, %v6059_v42  ;;  %v6061_v45 = vpop.eup %6060 }
 0x902   :  { %v4214_v28 = vadd.f32 0.5, %v4211_v22  ;;  %v6063_v36 = vpop.eup %6062 }
 0x903   :  { %v4215_v39 = vadd.f32 0.5, %v4212_v60  ;;  %v4213_v57 = vmul.f32 0.5, %v6063_v36 }
 0x904   :  { %v4219_v41 = vmul.f32 %v6061_v45, %v4214_v28 }
 0x905   :  { %v4218_v32 = vmul.f32 0.0, %v4215_v39  ;;  %v4216_v25 = vadd.f32 0.5, %v4213_v57 }
 0x907   :  { %v7913_v54 = vadd.f32 %v4219_v41, %v4218_v32 }
 0x909   :  { %6064 = vtanh.f32 %v7913_v54 }
 0x913   :  { %v6065_v31 = vpop.eup %6064 }
 0x914   :  { %v4222_v23 = vmul.f32 %v6065_v31, %v4216_v25 }
 0x916   :  { %v4227_v62 = vpack.c.bf16 %v4222_v23, %v4222_v23 }
 0x918   :  { %4261 = vmatmul.mubr.bf16.vlgmr.msra.gmra.mrb[52].mxu0 %v4227_v62  ;;  %4302 = vmatmul.mubr.bf16.vlgmr.msra.gmra.mrb[52].mxu1 %v4227_v62 }
 0x919   :  { %4338 = vmatpush1.bf16.msra.mxu0 %v7612_v14  ;;  %4379 = vmatpush1.bf16.msra.mxu1 %v7619_v0 }
 0x91a   :  { %4339 = vmatprep.subr.bf16.mxu0 %v7624_v48  ;;  %4380 = vmatprep.subr.bf16.mxu1 %v7629_v35 }
 0x91b   :  { %4369 = vmatprep.mubr.bf16.mxu0 %v8448_v13  ;;  %4410 = vmatprep.mubr.bf16.mxu1 %v8448_v13 }
 0x91d   :  { %4340 = vmatpush1.bf16.msra.mxu0 %v7636_v44  ;;  %4381 = vmatpush1.bf16.msra.mxu1 %v7643_v27 }
 0x91e   :  { %4341 = vmatprep.subr.bf16.mxu0 %v7648_v43  ;;  %4382 = vmatprep.subr.bf16.mxu1 %v7655_v20 }
 0x921   :  { %4342 = vmatpush1.bf16.msra.mxu0 %v7661_v29  ;;  %4383 = vmatpush1.bf16.msra.mxu1 %v7668_v38 }
 0x922   :  { %4343 = vmatprep.subr.bf16.mxu0 %v7674_v17  ;;  %4384 = vmatprep.subr.bf16.mxu1 %v7679_v1 }
 0x925   :  { %4344 = vmatpush1.bf16.msra.mxu0 %v7688_v19  ;;  %4385 = vmatpush1.bf16.msra.mxu1 %v7695_v24 }
 0x926   :  { %4345 = vmatprep.subr.bf16.mxu0 %v7700_v8  ;;  %4386 = vmatprep.subr.bf16.mxu1 %v7707_v16 }
 0x929   :  { %4346 = vmatpush1.bf16.msra.mxu0 %v7713_v2  ;;  %4387 = vmatpush1.bf16.msra.mxu1 %v7720_v46 }
 0x92a   :  { %4347 = vmatprep.subr.bf16.mxu0 %v7726_v21  ;;  %4388 = vmatprep.subr.bf16.mxu1 %v7731_v18 }
 0x92d   :  { %4348 = vmatpush1.bf16.msra.mxu0 %v7739_v49  ;;  %4389 = vmatpush1.bf16.msra.mxu1 %v7745_v47 }
 0x92e   :  { %4349 = vmatprep.subr.bf16.mxu0 %v7750_v7  ;;  %4390 = vmatprep.subr.bf16.mxu1 %v7757_v3 }
 0x931   :  { %4350 = vmatpush1.bf16.msra.mxu0 %v7763_v34  ;;  %4391 = vmatpush1.bf16.msra.mxu1 %v7770_v5 }
 0x932   :  { %4351 = vmatprep.subr.bf16.mxu0 %v7775_v9  ;;  %4392 = vmatprep.subr.bf16.mxu1 %v7781_v10 }
 0x935   :  { %4352 = vmatpush1.bf16.msra.mxu0 %v7789_v11  ;;  %4393 = vmatpush1.bf16.msra.mxu1 %v7797_v59 }
 0x936   :  { %4446 = vmatprep.subr.bf16.mxu0 %v7574_v4  ;;  %4487 = vmatprep.subr.bf16.mxu1 %v7580_v33 }
 0x9eb   :  { %v4262_v6 = vpop.f32.mrb[52].mxu0  ;;  %v4303_v15 = vpop.f32.mrb[52].mxu1 }
 0x9ec   :  { %v4310_v53 = vadd.f32 %v4262_v6, %v7854_v37  ;;  %v4312_v52 = vadd.f32 %v4303_v15, %v7856_v40  ;;  %v4264_v12 = vpop.f32.mrb[53].mxu0  ;;  %v4305_v63 = vpop.f32.mrb[53].mxu1 }
 0x9ed   :  { %v4311_v30 = vadd.f32 %v4264_v12, %v7858_v50  ;;  %v4313_v56 = vadd.f32 %v4305_v63, %v7860_v51  ;;  %v4266_v26 = vpop.f32.mrb[54].mxu0  ;;  %v4307_v55 = vpop.f32.mrb[54].mxu1  ;;  %v8520_v12 = vld [vmem:[#allocation7_spill] sm:$0xff] }
 0x9ee   :  { %v4314_v61 = vmul.f32 0.5, %v4310_v53  ;;  %v4267_v22 = vpop.f32.mrb[55].mxu0  ;;  %v4308_v42 = vpop.f32.mrb[55].mxu1  ;;  %v4316_v60 = vmul.f32 0.5, %v4312_v52  ;;  %v8521_v26 = vld [vmem:[#allocation8_spill] sm:$0xff] }
 0x9ef   :  { %v4315_v28 = vmul.f32 0.5, %v4311_v30 }
 0x9f0   :  { %6066 = vtanh.f32 %v4314_v61  ;;  %v8522_v61 = vld [vmem:[#allocation9_spill] sm:$0xff] }
 0x9f1   :  { %6068 = vtanh.f32 %v4315_v28 }
 0x9f2   :  { %6070 = vtanh.f32 %v4313_v56 }
 0x9f3   :  { %6072 = vtanh.f32 %v4316_v60 }
 0x9fa   :  { %v6067_v45 = vpop.eup %6066 }
 0x9fb   :  { %v4320_v37 = vmul.f32 0.5, %v6067_v45  ;;  %v6069_v39 = vpop.eup %6068 }
 0x9fc   :  { %v4321_v41 = vmul.f32 0.5, %v6069_v39  ;;  %v6071_v32 = vpop.eup %6070 }
 0x9fd   :  { %v4323_v40 = vadd.f32 0.5, %v4320_v37  ;;  %v6073_v25 = vpop.eup %6072 }
 0x9fe   :  { %v4324_v50 = vadd.f32 0.5, %v4321_v41  ;;  %v4322_v31 = vmul.f32 0.5, %v6073_v25 }
 0x9ff   :  { %v4328_v36 = vmul.f32 %v6071_v32, %v4323_v40 }
 0xa00   :  { %v4327_v51 = vmul.f32 %v4324_v50, %v7913_v54  ;;  %v4325_v23 = vadd.f32 0.5, %v4322_v31 }
 0xa02   :  { %v7955_v57 = vadd.f32 %v4328_v36, %v4327_v51 }
 0xa04   :  { %6074 = vtanh.f32 %v7955_v57 }
 0xa0e   :  { %v6075_v62 = vpop.eup %6074 }
 0xa0f   :  { %v4331_v6 = vmul.f32 %v6075_v62, %v4325_v23 }
 0xa11   :  { %v4336_v15 = vpack.c.bf16 %v4331_v6, %v4331_v6 }
 0xa13   :  { %4370 = vmatmul.mubr.bf16.vlgmr.msra.gmra.mrb[56].mxu0 %v4336_v15  ;;  %4411 = vmatmul.mubr.bf16.vlgmr.msra.gmra.mrb[56].mxu1 %v4336_v15 }
 0xa14   :  { %4447 = vmatpush1.bf16.msra.mxu0 %v7612_v14  ;;  %4488 = vmatpush1.bf16.msra.mxu1 %v7619_v0 }
 0xa15   :  { %4448 = vmatprep.subr.bf16.mxu0 %v7624_v48  ;;  %4489 = vmatprep.subr.bf16.mxu1 %v7629_v35 }
 0xa16   :  { %4478 = vmatprep.mubr.bf16.mxu0 %v8448_v13  ;;  %4519 = vmatprep.mubr.bf16.mxu1 %v8448_v13 }
 0xa18   :  { %4449 = vmatpush1.bf16.msra.mxu0 %v7636_v44  ;;  %4490 = vmatpush1.bf16.msra.mxu1 %v7643_v27 }
 0xa19   :  { %4450 = vmatprep.subr.bf16.mxu0 %v7648_v43  ;;  %4491 = vmatprep.subr.bf16.mxu1 %v7655_v20 }
 0xa1c   :  { %4451 = vmatpush1.bf16.msra.mxu0 %v7661_v29  ;;  %4492 = vmatpush1.bf16.msra.mxu1 %v7668_v38 }
 0xa1d   :  { %4452 = vmatprep.subr.bf16.mxu0 %v7674_v17  ;;  %4493 = vmatprep.subr.bf16.mxu1 %v7679_v1 }
 0xa20   :  { %4453 = vmatpush1.bf16.msra.mxu0 %v7688_v19  ;;  %4494 = vmatpush1.bf16.msra.mxu1 %v7695_v24 }
 0xa21   :  { %4454 = vmatprep.subr.bf16.mxu0 %v7700_v8  ;;  %4495 = vmatprep.subr.bf16.mxu1 %v7707_v16 }
 0xa24   :  { %4455 = vmatpush1.bf16.msra.mxu0 %v7713_v2  ;;  %4496 = vmatpush1.bf16.msra.mxu1 %v7720_v46 }
 0xa25   :  { %4456 = vmatprep.subr.bf16.mxu0 %v7726_v21  ;;  %4497 = vmatprep.subr.bf16.mxu1 %v7731_v18 }
 0xa28   :  { %4457 = vmatpush1.bf16.msra.mxu0 %v7739_v49  ;;  %4498 = vmatpush1.bf16.msra.mxu1 %v7745_v47 }
 0xa29   :  { %4458 = vmatprep.subr.bf16.mxu0 %v7750_v7  ;;  %4499 = vmatprep.subr.bf16.mxu1 %v7757_v3 }
 0xa2c   :  { %4459 = vmatpush1.bf16.msra.mxu0 %v7763_v34  ;;  %4500 = vmatpush1.bf16.msra.mxu1 %v7770_v5 }
 0xa2d   :  { %4460 = vmatprep.subr.bf16.mxu0 %v7775_v9  ;;  %4501 = vmatprep.subr.bf16.mxu1 %v7781_v10 }
 0xa30   :  { %4461 = vmatpush1.bf16.msra.mxu0 %v7789_v11  ;;  %4502 = vmatpush1.bf16.msra.mxu1 %v7797_v59 }
 0xa31   :  { %4555 = vmatprep.subr.bf16.mxu0 %v7574_v4  ;;  %4596 = vmatprep.subr.bf16.mxu1 %v7580_v33 }
 0xae6   :  { %v4371_v54 = vpop.f32.mrb[56].mxu0  ;;  %v4412_v53 = vpop.f32.mrb[56].mxu1 }
 0xae7   :  { %v4419_v52 = vadd.f32 %v4371_v54, %v7862_v58  ;;  %v4421_v63 = vadd.f32 %v4412_v53, %v8520_v12  ;;  %v4373_v30 = vpop.f32.mrb[57].mxu0  ;;  %v4414_v56 = vpop.f32.mrb[57].mxu1 }
 0xae8   :  { %v4420_v55 = vadd.f32 %v4373_v30, %v8521_v26  ;;  %v4422_v22 = vadd.f32 %v4414_v56, %v8522_v61  ;;  %v4375_v42 = vpop.f32.mrb[58].mxu0  ;;  %v4416_v28 = vpop.f32.mrb[58].mxu1  ;;  %v8523_v30 = vld [vmem:[#allocation10_spill] sm:$0xff]  ;;  %v8524_v26 = vld [vmem:[#allocation11_spill] sm:$0xff] }
 0xae9   :  { %v4423_v60 = vmul.f32 0.5, %v4419_v52  ;;  %v4376_v45 = vpop.f32.mrb[59].mxu0  ;;  %v4417_v37 = vpop.f32.mrb[59].mxu1  ;;  %v4425_v40 = vmul.f32 0.5, %v4421_v63  ;;  %v8525_v42 = vld [vmem:[#allocation12_spill] sm:$0xff] }
 0xaea   :  { %v4424_v39 = vmul.f32 0.5, %v4420_v55 }
 0xaeb   :  { %6076 = vtanh.f32 %v4423_v60  ;;  %v8526_v60 = vld [vmem:[#allocation13_spill] sm:$0xff] }
 0xaec   :  { %6078 = vtanh.f32 %v4424_v39 }
 0xaed   :  { %6080 = vtanh.f32 %v4422_v22 }
 0xaee   :  { %6082 = vtanh.f32 %v4425_v40 }
 0xaf5   :  { %v6077_v41 = vpop.eup %6076 }
 0xaf6   :  { %v4429_v58 = vmul.f32 0.5, %v6077_v41  ;;  %v6079_v32 = vpop.eup %6078 }
 0xaf7   :  { %v4430_v36 = vmul.f32 0.5, %v6079_v32  ;;  %v6081_v51 = vpop.eup %6080 }
 0xaf8   :  { %v4432_v50 = vadd.f32 0.5, %v4429_v58  ;;  %v6083_v6 = vpop.eup %6082 }
 0xaf9   :  { %v4433_v25 = vadd.f32 0.5, %v4430_v36  ;;  %v4431_v15 = vmul.f32 0.5, %v6083_v6 }
 0xafa   :  { %v4437_v31 = vmul.f32 %v6081_v51, %v4432_v50 }
 0xafb   :  { %v4436_v23 = vmul.f32 %v4433_v25, %v7955_v57  ;;  %v4434_v54 = vadd.f32 0.5, %v4431_v15 }
 0xafd   :  { %v7997_v62 = vadd.f32 %v4437_v31, %v4436_v23 }
 0xaff   :  { %6084 = vtanh.f32 %v7997_v62 }
 0xb09   :  { %v6085_v53 = vpop.eup %6084 }
 0xb0a   :  { %v4440_v52 = vmul.f32 %v6085_v53, %v4434_v54 }
 0xb0c   :  { %v4445_v12 = vpack.c.bf16 %v4440_v52, %v4440_v52 }
 0xb0e   :  { %4479 = vmatmul.mubr.bf16.vlgmr.msra.gmra.mrb[60].mxu0 %v4445_v12  ;;  %4520 = vmatmul.mubr.bf16.vlgmr.msra.gmra.mrb[60].mxu1 %v4445_v12 }
 0xb0f   :  { %4556 = vmatpush1.bf16.msra.mxu0 %v7612_v14  ;;  %4597 = vmatpush1.bf16.msra.mxu1 %v7619_v0 }
 0xb10   :  { %4557 = vmatprep.subr.bf16.mxu0 %v7624_v48  ;;  %4598 = vmatprep.subr.bf16.mxu1 %v7629_v35 }
 0xb11   :  { %4587 = vmatprep.mubr.bf16.mxu0 %v8448_v13  ;;  %4628 = vmatprep.mubr.bf16.mxu1 %v8448_v13 }
 0xb13   :  { %4558 = vmatpush1.bf16.msra.mxu0 %v7636_v44  ;;  %4599 = vmatpush1.bf16.msra.mxu1 %v7643_v27 }
 0xb14   :  { %4559 = vmatprep.subr.bf16.mxu0 %v7648_v43  ;;  %4600 = vmatprep.subr.bf16.mxu1 %v7655_v20 }
 0xb17   :  { %4560 = vmatpush1.bf16.msra.mxu0 %v7661_v29  ;;  %4601 = vmatpush1.bf16.msra.mxu1 %v7668_v38 }
 0xb18   :  { %4561 = vmatprep.subr.bf16.mxu0 %v7674_v17  ;;  %4602 = vmatprep.subr.bf16.mxu1 %v7679_v1 }
 0xb1b   :  { %4562 = vmatpush1.bf16.msra.mxu0 %v7688_v19  ;;  %4603 = vmatpush1.bf16.msra.mxu1 %v7695_v24 }
 0xb1c   :  { %4563 = vmatprep.subr.bf16.mxu0 %v7700_v8  ;;  %4604 = vmatprep.subr.bf16.mxu1 %v7707_v16 }
 0xb1f   :  { %4564 = vmatpush1.bf16.msra.mxu0 %v7713_v2  ;;  %4605 = vmatpush1.bf16.msra.mxu1 %v7720_v46 }
 0xb20   :  { %4565 = vmatprep.subr.bf16.mxu0 %v7726_v21  ;;  %4606 = vmatprep.subr.bf16.mxu1 %v7731_v18 }
 0xb23   :  { %4566 = vmatpush1.bf16.msra.mxu0 %v7739_v49  ;;  %4607 = vmatpush1.bf16.msra.mxu1 %v7745_v47 }
 0xb24   :  { %4567 = vmatprep.subr.bf16.mxu0 %v7750_v7  ;;  %4608 = vmatprep.subr.bf16.mxu1 %v7757_v3 }
 0xb27   :  { %4568 = vmatpush1.bf16.msra.mxu0 %v7763_v34  ;;  %4609 = vmatpush1.bf16.msra.mxu1 %v7770_v5 }
 0xb28   :  { %4569 = vmatprep.subr.bf16.mxu0 %v7775_v9  ;;  %4610 = vmatprep.subr.bf16.mxu1 %v7781_v10 }
 0xb2b   :  { %4570 = vmatpush1.bf16.msra.mxu0 %v7789_v11  ;;  %4611 = vmatpush1.bf16.msra.mxu1 %v7797_v59 }
 0xb2c   :  { %4664 = vmatprep.subr.bf16.mxu0 %v7574_v4  ;;  %4705 = vmatprep.subr.bf16.mxu1 %v7580_v33 }
 0xbe1   :  { %v4480_v57 = vpop.f32.mrb[60].mxu0  ;;  %v4521_v63 = vpop.f32.mrb[60].mxu1 }
 0xbe2   :  { %v4528_v56 = vadd.f32 %v4480_v57, %v8523_v30  ;;  %v4530_v55 = vadd.f32 %v4521_v63, %v8524_v26  ;;  %v4482_v61 = vpop.f32.mrb[61].mxu0  ;;  %v4523_v22 = vpop.f32.mrb[61].mxu1  ;;  %v8527_v26 = vld [vmem:[#allocation14_spill] sm:$0xff] }
 0xbe3   :  { %v4529_v28 = vadd.f32 %v4482_v61, %v8525_v42  ;;  %v4531_v45 = vadd.f32 %v4523_v22, %v8526_v60  ;;  %v4484_v37 = vpop.f32.mrb[62].mxu0  ;;  %v4525_v39 = vpop.f32.mrb[62].mxu1  ;;  %v8528_v61 = vld [vmem:[#allocation15_spill] sm:$0xff]  ;;  %v8529_v60 = vld [vmem:[#allocation16_spill] sm:$0xff] }
 0xbe4   :  { %v4532_v40 = vmul.f32 0.5, %v4528_v56  ;;  %v4485_v41 = vpop.f32.mrb[63].mxu0  ;;  %v4526_v58 = vpop.f32.mrb[63].mxu1  ;;  %v4534_v33 = vmul.f32 0.5, %v4530_v55  ;;  %v8530_v37 = vld [vmem:[#allocation17_spill] sm:$0xff] }
 0xbe5   :  { %v4533_v4 = vmul.f32 0.5, %v4529_v28 }
 0xbe6   :  { %6086 = vtanh.f32 %v4532_v40 }
 0xbe7   :  { %6088 = vtanh.f32 %v4533_v4 }
 0xbe8   :  { %6090 = vtanh.f32 %v4531_v45 }
 0xbe9   :  { %6092 = vtanh.f32 %v4534_v33 }
 0xbf0   :  { %v6087_v32 = vpop.eup %6086 }
 0xbf1   :  { %v4538_v50 = vmul.f32 0.5, %v6087_v32  ;;  %v6089_v36 = vpop.eup %6088 }
 0xbf2   :  { %v4539_v25 = vmul.f32 0.5, %v6089_v36  ;;  %v6091_v31 = vpop.eup %6090 }
 0xbf3   :  { %v4541_v51 = vadd.f32 0.5, %v4538_v50  ;;  %v6093_v53 = vpop.eup %6092 }
 0xbf4   :  { %v4542_v23 = vadd.f32 0.5, %v4539_v25  ;;  %v4540_v52 = vmul.f32 0.5, %v6093_v53 }
 0xbf5   :  { %v4546_v6 = vmul.f32 %v6091_v31, %v4541_v51 }
 0xbf6   :  { %v4545_v15 = vmul.f32 %v4542_v23, %v7997_v62  ;;  %v4543_v12 = vadd.f32 0.5, %v4540_v52 }
 0xbf8   :  { %v8039_v54 = vadd.f32 %v4546_v6, %v4545_v15 }
 0xbfa   :  { %6094 = vtanh.f32 %v8039_v54 }
 0xc04   :  { %v6095_v57 = vpop.eup %6094 }
 0xc05   :  { %v4549_v63 = vmul.f32 %v6095_v57, %v4543_v12 }
 0xc07   :  { %v4554_v30 = vpack.c.bf16 %v4549_v63, %v4549_v63 }
 0xc09   :  { %4588 = vmatmul.mubr.bf16.vlgmr.msra.gmra.mrb[64].mxu0 %v4554_v30  ;;  %4629 = vmatmul.mubr.bf16.vlgmr.msra.gmra.mrb[64].mxu1 %v4554_v30 }
 0xc0a   :  { %4665 = vmatpush1.bf16.msra.mxu0 %v7612_v14  ;;  %4706 = vmatpush1.bf16.msra.mxu1 %v7619_v0  ;;  %v8077_v14 = vld [vmem:[%s8353_s8 + $0x4] ss:$16 sps:$4 sm:$0xff]   ;;  %v8083_v0 = vld [vmem:[%s8353_s8 + $0xc] ss:$16 sps:$4 sm:$0xff]  }
 0xc0b   :  { %4666 = vmatprep.subr.bf16.mxu0 %v7624_v48  ;;  %4707 = vmatprep.subr.bf16.mxu1 %v7629_v35 }
 0xc0c   :  { %4696 = vmatprep.mubr.bf16.mxu0 %v8448_v13  ;;  %4737 = vmatprep.mubr.bf16.mxu1 %v8448_v13 }
 0xc0e   :  { %4667 = vmatpush1.bf16.msra.mxu0 %v7636_v44  ;;  %4708 = vmatpush1.bf16.msra.mxu1 %v7643_v27 }
 0xc0f   :  { %4668 = vmatprep.subr.bf16.mxu0 %v7648_v43  ;;  %4709 = vmatprep.subr.bf16.mxu1 %v7655_v20 }
 0xc12   :  { %4669 = vmatpush1.bf16.msra.mxu0 %v7661_v29  ;;  %4710 = vmatpush1.bf16.msra.mxu1 %v7668_v38 }
 0xc13   :  { %4670 = vmatprep.subr.bf16.mxu0 %v7674_v17  ;;  %4711 = vmatprep.subr.bf16.mxu1 %v7679_v1 }
 0xc16   :  { %4671 = vmatpush1.bf16.msra.mxu0 %v7688_v19  ;;  %4712 = vmatpush1.bf16.msra.mxu1 %v7695_v24 }
 0xc17   :  { %4672 = vmatprep.subr.bf16.mxu0 %v7700_v8  ;;  %4713 = vmatprep.subr.bf16.mxu1 %v7707_v16 }
 0xc1a   :  { %4673 = vmatpush1.bf16.msra.mxu0 %v7713_v2  ;;  %4714 = vmatpush1.bf16.msra.mxu1 %v7720_v46 }
 0xc1b   :  { %4674 = vmatprep.subr.bf16.mxu0 %v7726_v21  ;;  %4715 = vmatprep.subr.bf16.mxu1 %v7731_v18 }
 0xc1e   :  { %4675 = vmatpush1.bf16.msra.mxu0 %v7739_v49  ;;  %4716 = vmatpush1.bf16.msra.mxu1 %v7745_v47 }
 0xc1f   :  { %4676 = vmatprep.subr.bf16.mxu0 %v7750_v7  ;;  %4717 = vmatprep.subr.bf16.mxu1 %v7757_v3 }
 0xc22   :  { %4677 = vmatpush1.bf16.msra.mxu0 %v7763_v34  ;;  %4718 = vmatpush1.bf16.msra.mxu1 %v7770_v5 }
 0xc23   :  { %4678 = vmatprep.subr.bf16.mxu0 %v7775_v9  ;;  %4719 = vmatprep.subr.bf16.mxu1 %v7781_v10 }
 0xc26   :  { %4679 = vmatpush1.bf16.msra.mxu0 %v7789_v11  ;;  %4720 = vmatpush1.bf16.msra.mxu1 %v7797_v59 }
 0xc27   :  { %4773 = vmatprep.subr.bf16.mxu0 %v8077_v14  ;;  %4814 = vmatprep.subr.bf16.mxu1 %v8083_v0 }
 0xcdc   :  { %v4589_v62 = vpop.f32.mrb[64].mxu0  ;;  %v4630_v56 = vpop.f32.mrb[64].mxu1 }
 0xcdd   :  { %v4637_v55 = vadd.f32 %v4589_v62, %v8527_v26  ;;  %v4639_v22 = vadd.f32 %v4630_v56, %v8528_v61  ;;  %v4591_v42 = vpop.f32.mrb[65].mxu0  ;;  %v4632_v28 = vpop.f32.mrb[65].mxu1 }
 0xcde   :  { %v4638_v45 = vadd.f32 %v4591_v42, %v8529_v60  ;;  %v4640_v39 = vadd.f32 %v4632_v28, %v8530_v37  ;;  %v4593_v40 = vpop.f32.mrb[66].mxu0  ;;  %v4634_v41 = vpop.f32.mrb[66].mxu1  ;;  %v6143_v37 = vld [vmem:[%s8353_s8 + $0x2c] ss:$16 sps:$4 sm:$0xff]  }
 0xcdf   :  { %v4641_v58 = vmul.f32 0.5, %v4637_v55  ;;  %v4594_v4 = vpop.f32.mrb[67].mxu0  ;;  %v4635_v33 = vpop.f32.mrb[67].mxu1  ;;  %v4643_v50 = vmul.f32 0.5, %v4639_v22  ;;  %v8097_v55 = vld [vmem:[%s8353_s8] ss:$16 sps:$4 sm:$0xff]  }
 0xce0   :  { %v4642_v32 = vmul.f32 0.5, %v4638_v45  ;;  %v6142_v45 = vld [vmem:[%s8353_s8 + $0x24] ss:$16 sps:$4 sm:$0xff]   ;;  %v6145_v40 = vld [vmem:[%s8353_s8 + $0x28] ss:$16 sps:$4 sm:$0xff]  }
 0xce1   :  { %6096 = vtanh.f32 %v4641_v58  ;;  %v6146_v41 = vld [vmem:[%s8353_s8 + $0x44] ss:$16 sps:$4 sm:$0xff]   ;;  %v6147_v58 = vld [vmem:[%s8353_s8 + $0x4c] ss:$16 sps:$4 sm:$0xff]   ;;  %v6149_v4 = vld [vmem:[%s8353_s8 + $0x48] ss:$16 sps:$4 sm:$0xff]  }
 0xce2   :  { %6098 = vtanh.f32 %v4642_v32  ;;  %v6150_v33 = vld [vmem:[%s8353_s8 + $0x64] ss:$16 sps:$4 sm:$0xff]   ;;  %v6151_v32 = vld [vmem:[%s8353_s8 + $0x6c] ss:$16 sps:$4 sm:$0xff]  }
 0xce3   :  { %6100 = vtanh.f32 %v4640_v39  ;;  %v6144_v39 = vld [vmem:[%s8353_s8 + $0x20] ss:$16 sps:$4 sm:$0xff]  }
 0xce4   :  { %6102 = vtanh.f32 %v4643_v50  ;;  %v6152_v50 = vld [vmem:[%s8353_s8 + $0x60] ss:$16 sps:$4 sm:$0xff]  }
 0xceb   :  { %v6097_v36 = vpop.eup %6096 }
 0xcec   :  { %v4647_v51 = vmul.f32 0.5, %v6097_v36  ;;  %v6099_v25 = vpop.eup %6098  ;;  %v6153_v36 = vld [vmem:[%s8353_s8 + $0x68] ss:$16 sps:$4 sm:$0xff]  }
 0xced   :  { %v4648_v23 = vmul.f32 0.5, %v6099_v25  ;;  %v6101_v6 = vpop.eup %6100  ;;  %v6155_v25 = vld [vmem:[%s8353_s8 + $0x8c] ss:$16 sps:$4 sm:$0xff]  }
 0xcee   :  { %v4650_v31 = vadd.f32 0.5, %v4647_v51  ;;  %v6103_v57 = vpop.eup %6102  ;;  %v6154_v51 = vld [vmem:[%s8353_s8 + $0x84] ss:$16 sps:$4 sm:$0xff]  }
 0xcef   :  { %v4651_v15 = vadd.f32 0.5, %v4648_v23  ;;  %v4649_v63 = vmul.f32 0.5, %v6103_v57  ;;  %v6157_v23 = vld [vmem:[%s8353_s8 + $0x88] ss:$16 sps:$4 sm:$0xff]   ;;  %v6163_v57 = vld [vmem:[%s8353_s8 + $0xcc] ss:$16 sps:$4 sm:$0xff]  }
 0xcf0   :  { %v4655_v53 = vmul.f32 %v6101_v6, %v4650_v31  ;;  %v6156_v31 = vld [vmem:[%s8353_s8 + $0x80] ss:$16 sps:$4 sm:$0xff]   ;;  %v6158_v6 = vld [vmem:[%s8353_s8 + $0xa4] ss:$16 sps:$4 sm:$0xff]  }
 0xcf1   :  { %v4654_v52 = vmul.f32 %v4651_v15, %v8039_v54  ;;  %v4652_v30 = vadd.f32 0.5, %v4649_v63  ;;  %v8103_v54 = vld [vmem:[%s8353_s8 + $0x8] ss:$16 sps:$4 sm:$0xff]   ;;  %v6159_v15 = vld [vmem:[%s8353_s8 + $0xac] ss:$16 sps:$4 sm:$0xff]  }
 0xcf2   :  { %v6164_v63 = vld [vmem:[%s8353_s8 + $0xc0] ss:$16 sps:$4 sm:$0xff]  }
 0xcf3   :  { %v8091_v12 = vadd.f32 %v4655_v53, %v4654_v52  ;;  %v6160_v53 = vld [vmem:[%s8353_s8 + $0xa0] ss:$16 sps:$4 sm:$0xff]   ;;  %v6161_v52 = vld [vmem:[%s8353_s8 + $0xa8] ss:$16 sps:$4 sm:$0xff]  }
 0xcf5   :  { %6104 = vtanh.f32 %v8091_v12 }
 0xcff   :  { %v6105_v62 = vpop.eup %6104 }
 0xd00   :  { %v4658_v56 = vmul.f32 %v6105_v62, %v4652_v30  ;;  %v6165_v30 = vld [vmem:[%s8353_s8 + $0xc8] ss:$16 sps:$4 sm:$0xff]   ;;  %v6166_v62 = vld [vmem:[%s8353_s8 + $0xe4] ss:$16 sps:$4 sm:$0xff]  }
 0xd02   :  { %v4663_v26 = vpack.c.bf16 %v4658_v56, %v4658_v56  ;;  %v6167_v56 = vld [vmem:[%s8353_s8 + $0xec] ss:$16 sps:$4 sm:$0xff]  }
 0xd04   :  { %4697 = vmatmul.mubr.bf16.vlgmr.msra.gmra.mrb[68].mxu0 %v4663_v26  ;;  %4738 = vmatmul.mubr.bf16.vlgmr.msra.gmra.mrb[68].mxu1 %v4663_v26  ;;  %v6168_v26 = vld [vmem:[%s8353_s8 + $0xe0] ss:$16 sps:$4 sm:$0xff]  }
 0xd05   :  { %4774 = vmatpush1.bf16.msra.mxu0 %v8097_v55  ;;  %4815 = vmatpush1.bf16.msra.mxu1 %v8103_v54 }
 0xd06   :  { %4775 = vmatprep.subr.bf16.mxu0 %v7624_v48  ;;  %4816 = vmatprep.subr.bf16.mxu1 %v7629_v35 }
 0xd07   :  { %4805 = vmatprep.mubr.bf16.mxu0 %v8448_v13  ;;  %4846 = vmatprep.mubr.bf16.mxu1 %v8448_v13 }
 0xd09   :  { %4776 = vmatpush1.bf16.msra.mxu0 %v7636_v44  ;;  %4817 = vmatpush1.bf16.msra.mxu1 %v7643_v27  ;;  %v8531_v44 = vld [vmem:[#allocation18_spill] sm:$0xff] }
 0xd0a   :  { %4777 = vmatprep.subr.bf16.mxu0 %v7648_v43  ;;  %4818 = vmatprep.subr.bf16.mxu1 %v7655_v20  ;;  %v8532_v43 = vld [vmem:[#allocation19_spill] sm:$0xff] }
 0xd0d   :  { %4778 = vmatpush1.bf16.msra.mxu0 %v7661_v29  ;;  %4819 = vmatpush1.bf16.msra.mxu1 %v7668_v38 }
 0xd0e   :  { %4779 = vmatprep.subr.bf16.mxu0 %v7674_v17  ;;  %4820 = vmatprep.subr.bf16.mxu1 %v7679_v1  ;;  %v8533_v17 = vld [vmem:[#allocation20_spill] sm:$0xff] }
 0xd11   :  { %4780 = vmatpush1.bf16.msra.mxu0 %v7688_v19  ;;  %4821 = vmatpush1.bf16.msra.mxu1 %v7695_v24  ;;  %v8534_v19 = vld [vmem:[#allocation21_spill] sm:$0xff] }
 0xd12   :  { %4781 = vmatprep.subr.bf16.mxu0 %v7700_v8  ;;  %4822 = vmatprep.subr.bf16.mxu1 %v7707_v16 }
 0xd15   :  { %4782 = vmatpush1.bf16.msra.mxu0 %v7713_v2  ;;  %4823 = vmatpush1.bf16.msra.mxu1 %v7720_v46 }
 0xd16   :  { %4783 = vmatprep.subr.bf16.mxu0 %v7726_v21  ;;  %4824 = vmatprep.subr.bf16.mxu1 %v7731_v18 }
 0xd19   :  { %4784 = vmatpush1.bf16.msra.mxu0 %v7739_v49  ;;  %4825 = vmatpush1.bf16.msra.mxu1 %v7745_v47 }
 0xd1a   :  { %4785 = vmatprep.subr.bf16.mxu0 %v7750_v7  ;;  %4826 = vmatprep.subr.bf16.mxu1 %v7757_v3 }
 0xd1d   :  { %4786 = vmatpush1.bf16.msra.mxu0 %v7763_v34  ;;  %4827 = vmatpush1.bf16.msra.mxu1 %v7770_v5 }
 0xd1e   :  { %4787 = vmatprep.subr.bf16.mxu0 %v7775_v9  ;;  %4828 = vmatprep.subr.bf16.mxu1 %v7781_v10 }
 0xd21   :  { %4788 = vmatpush1.bf16.msra.mxu0 %v7789_v11  ;;  %4829 = vmatpush1.bf16.msra.mxu1 %v7797_v59 }
 0xd22   :  { %4882 = vmatprep.subr.bf16.mxu0 %v8077_v14  ;;  %4923 = vmatprep.subr.bf16.mxu1 %v8083_v0 }
 0xdd7   :  { %v4698_v48 = vpop.f32.mrb[68].mxu0  ;;  %v4739_v35 = vpop.f32.mrb[68].mxu1 }
 0xdd8   :  { %v4746_v27 = vadd.f32 %v4698_v48, %v8531_v44  ;;  %v4748_v20 = vadd.f32 %v4739_v35, %v8532_v43  ;;  %v4700_v29 = vpop.f32.mrb[69].mxu0  ;;  %v4741_v38 = vpop.f32.mrb[69].mxu1  ;;  %v8535_v35 = vld [vmem:[#allocation22_spill] sm:$0xff] }
 0xdd9   :  { %v4747_v1 = vadd.f32 %v4700_v29, %v8533_v17  ;;  %v4749_v24 = vadd.f32 %v4741_v38, %v8534_v19  ;;  %v4702_v8 = vpop.f32.mrb[70].mxu0  ;;  %v4743_v16 = vpop.f32.mrb[70].mxu1  ;;  %v8537_v38 = vld [vmem:[#allocation24_spill] sm:$0xff] }
 0xdda   :  { %v4750_v2 = vmul.f32 0.5, %v4746_v27  ;;  %v4703_v46 = vpop.f32.mrb[71].mxu0  ;;  %v4744_v21 = vpop.f32.mrb[71].mxu1  ;;  %v4752_v49 = vmul.f32 0.5, %v4748_v20  ;;  %v8536_v27 = vld [vmem:[#allocation23_spill] sm:$0xff] }
 0xddb   :  { %v4751_v18 = vmul.f32 0.5, %v4747_v1  ;;  %v8538_v1 = vld [vmem:[#allocation25_spill] sm:$0xff] }
 0xddc   :  { %6106 = vtanh.f32 %v4750_v2 }
 0xddd   :  { %6108 = vtanh.f32 %v4751_v18 }
 0xdde   :  { %6110 = vtanh.f32 %v4749_v24 }
 0xddf   :  { %6112 = vtanh.f32 %v4752_v49 }
 0xde6   :  { %v6107_v47 = vpop.eup %6106 }
 0xde7   :  { %v4756_v7 = vmul.f32 0.5, %v6107_v47  ;;  %v6109_v3 = vpop.eup %6108 }
 0xde8   :  { %v4757_v5 = vmul.f32 0.5, %v6109_v3  ;;  %v6111_v9 = vpop.eup %6110 }
 0xde9   :  { %v4759_v34 = vadd.f32 0.5, %v4756_v7  ;;  %v6113_v0 = vpop.eup %6112 }
 0xdea   :  { %v4760_v10 = vadd.f32 0.5, %v4757_v5  ;;  %v4758_v61 = vmul.f32 0.5, %v6113_v0 }
 0xdeb   :  { %v4764_v11 = vmul.f32 %v6111_v9, %v4759_v34 }
 0xdec   :  { %v4763_v59 = vmul.f32 %v4760_v10, %v8091_v12  ;;  %v4761_v22 = vadd.f32 0.5, %v4758_v61  ;;  %v6162_v12 = vld [vmem:[%s8353_s8 + $0xc4] ss:$16 sps:$4 sm:$0xff]  }
 0xdee   :  { %v8143_v14 = vadd.f32 %v4764_v11, %v4763_v59 }
 0xdf0   :  { %6114 = vtanh.f32 %v8143_v14 }
 0xdfa   :  { %v6115_v42 = vpop.eup %6114 }
 0xdfb   :  { %v4767_v28 = vmul.f32 %v6115_v42, %v4761_v22 }
 0xdfd   :  { %v4772_v60 = vpack.c.bf16 %v4767_v28, %v4767_v28 }
 0xdff   :  { %4806 = vmatmul.mubr.bf16.vlgmr.msra.gmra.mrb[72].mxu0 %v4772_v60  ;;  %4847 = vmatmul.mubr.bf16.vlgmr.msra.gmra.mrb[72].mxu1 %v4772_v60 }
 0xe00   :  { %4883 = vmatpush1.bf16.msra.mxu0 %v8097_v55  ;;  %4924 = vmatpush1.bf16.msra.mxu1 %v8103_v54  ;;  %v6169_v55 = vld [vmem:[%s8353_s8 + $0xe8] ss:$16 sps:$4 sm:$0xff]  }
 0xe01   :  { %4884 = vmatprep.subr.bf16.mxu0 %v6142_v45  ;;  %4925 = vmatprep.subr.bf16.mxu1 %v6143_v37  ;;  %v5002_v45 = vld [vmem:[%s8355_s11] sm:$0xff] }
 0xe02   :  { %4914 = vmatprep.mubr.bf16.mxu0 %v8448_v13  ;;  %4955 = vmatprep.mubr.bf16.mxu1 %v8448_v13  ;;  %v6148_v13 = vld [vmem:[%s8353_s8 + $0x40] ss:$16 sps:$4 sm:$0xff]  }
 0xe04   :  { %4885 = vmatpush1.bf16.msra.mxu0 %v6144_v39  ;;  %4926 = vmatpush1.bf16.msra.mxu1 %v6145_v40  ;;  %v6171_v39 = vmov 0.0|0.0   ;;  %v5004_v40 = vld [vmem:[%s8355_s11 + $0x10] sm:$0xff] }
 0xe05   :  { %4886 = vmatprep.subr.bf16.mxu0 %v6146_v41  ;;  %4927 = vmatprep.subr.bf16.mxu1 %v6147_v58  ;;  %v5005_v41 = vld [vmem:[%s8355_s11 + $0x18] sm:$0xff] }
 0xe06   :  { %v5650_v58 = vpack.c.bf16 %v5005_v41, %v5004_v40  ;;  %v5102_v40 = vld [vmem:[%s8358_s13 + $0x10] sm:$0xff]  ;;  %v5103_v41 = vld [vmem:[%s8358_s13 + $0x18] sm:$0xff] }
 0xe08   :  { %4887 = vmatpush1.bf16.msra.mxu0 %v6148_v13  ;;  %4928 = vmatpush1.bf16.msra.mxu1 %v6149_v4  ;;  %v5006_v13 = vld [vmem:[%s8355_s11 + $0x20] sm:$0xff]  ;;  %v5007_v4 = vld [vmem:[%s8355_s11 + $0x28] sm:$0xff] }
 0xe09   :  { %4888 = vmatprep.subr.bf16.mxu0 %v6150_v33  ;;  %4929 = vmatprep.subr.bf16.mxu1 %v6151_v32  ;;  %v5653_v33 = vpack.c.bf16 %v5007_v4, %v5006_v13  ;;  %v5008_v32 = vld [vmem:[%s8355_s11 + $0x30] sm:$0xff]  ;;  %v5104_v13 = vld [vmem:[%s8358_s13 + $0x20] sm:$0xff]  ;;  %v5105_v4 = vld [vmem:[%s8358_s13 + $0x28] sm:$0xff] }
 0xe0c   :  { %4889 = vmatpush1.bf16.msra.mxu0 %v6152_v50  ;;  %4930 = vmatpush1.bf16.msra.mxu1 %v6153_v36  ;;  %v5009_v50 = vld [vmem:[%s8355_s11 + $0x38] sm:$0xff] }
 0xe0d   :  { %4890 = vmatprep.subr.bf16.mxu0 %v6154_v51  ;;  %4931 = vmatprep.subr.bf16.mxu1 %v6155_v25  ;;  %v5656_v36 = vpack.c.bf16 %v5009_v50, %v5008_v32  ;;  %v5010_v51 = vld [vmem:[%s8355_s11 + $0x40] sm:$0xff]  ;;  %v5011_v25 = vld [vmem:[%s8355_s11 + $0x48] sm:$0xff]  ;;  %v5106_v32 = vld [vmem:[%s8358_s13 + $0x30] sm:$0xff] }
 0xe0e   :  { %v5107_v50 = vld [vmem:[%s8358_s13 + $0x38] sm:$0xff] }
 0xe10   :  { %4891 = vmatpush1.bf16.msra.mxu0 %v6156_v31  ;;  %4932 = vmatpush1.bf16.msra.mxu1 %v6157_v23  ;;  %v5659_v31 = vpack.c.bf16 %v5011_v25, %v5010_v51  ;;  %v5012_v23 = vld [vmem:[%s8355_s11 + $0x50] sm:$0xff]  ;;  %v5563_v51 = vld [vmem:[%s8359_s12] ss:$0 sm:$0xff] }
 0xe11   :  { %4892 = vmatprep.subr.bf16.mxu0 %v6158_v6  ;;  %4933 = vmatprep.subr.bf16.mxu1 %v6159_v15  ;;  %v5013_v6 = vld [vmem:[%s8355_s11 + $0x58] sm:$0xff]  ;;  %v6173_v15 = vmov 0.0  }
 0xe14   :  { %4893 = vmatpush1.bf16.msra.mxu0 %v6160_v53  ;;  %4934 = vmatpush1.bf16.msra.mxu1 %v6161_v52  ;;  %v5662_v53 = vpack.c.bf16 %v5013_v6, %v5012_v23  ;;  %v5014_v52 = vld [vmem:[%s8355_s11 + $0x60] sm:$0xff] }
 0xe15   :  { %4894 = vmatprep.subr.bf16.mxu0 %v6162_v12  ;;  %4935 = vmatprep.subr.bf16.mxu1 %v6163_v57  ;;  %v5015_v12 = vld [vmem:[%s8355_s11 + $0x68] sm:$0xff] }
 0xe16   :  { %v5665_v57 = vpack.c.bf16 %v5015_v12, %v5014_v52  ;;  %v5564_v12 = vld [vmem:[%s8360_s14] ss:$0 sm:$0xff] }
 0xe18   :  { %4895 = vmatpush1.bf16.msra.mxu0 %v6164_v63  ;;  %4936 = vmatpush1.bf16.msra.mxu1 %v6165_v30  ;;  %v5016_v63 = vld [vmem:[%s8355_s11 + $0x70] sm:$0xff]  ;;  %v5017_v30 = vld [vmem:[%s8355_s11 + $0x78] sm:$0xff] }
 0xe19   :  { %4896 = vmatprep.subr.bf16.mxu0 %v6166_v62  ;;  %4937 = vmatprep.subr.bf16.mxu1 %v6167_v56  ;;  %v5668_v62 = vpack.c.bf16 %v5017_v30, %v5016_v63 }
 0xe1c   :  { %4897 = vmatpush1.bf16.msra.mxu0 %v6168_v26  ;;  %4938 = vmatpush1.bf16.msra.mxu1 %v6169_v55  ;;  %v8539_v55 = vld [vmem:[#allocation26_spill] sm:$0xff] }
 0xe1d   :  { %5646 = vmatprep.subr.bf16.mxu0 %v6171_v39  ;;  %5670 = vmatprep.subr.bf16.mxu1 %v6171_v39 }
 0xed2   :  { %v4807_v54 = vpop.f32.mrb[72].mxu0  ;;  %v4848_v48 = vpop.f32.mrb[72].mxu1 }
 0xed3   :  { %v4855_v44 = vadd.f32 %v4807_v54, %v8535_v35  ;;  %v4857_v43 = vadd.f32 %v4848_v48, %v8536_v27  ;;  %v4809_v20 = vpop.f32.mrb[73].mxu0  ;;  %v4850_v29 = vpop.f32.mrb[73].mxu1  ;;  %v8540_v48 = vld [vmem:[#allocation27_spill] sm:$0xff] }
 0xed4   :  { %v4856_v17 = vadd.f32 %v4809_v20, %v8537_v38  ;;  %v4858_v19 = vadd.f32 %v4850_v29, %v8538_v1  ;;  %v4811_v24 = vpop.f32.mrb[74].mxu0  ;;  %v4852_v8 = vpop.f32.mrb[74].mxu1  ;;  %v8542_v29 = vld [vmem:[#allocation29_spill] sm:$0xff] }
 0xed5   :  { %v4859_v16 = vmul.f32 0.5, %v4855_v44  ;;  %v4812_v2 = vpop.f32.mrb[75].mxu0  ;;  %v4853_v46 = vpop.f32.mrb[75].mxu1  ;;  %v4861_v18 = vmul.f32 0.5, %v4857_v43  ;;  %v8541_v43 = vld [vmem:[#allocation28_spill] sm:$0xff] }
 0xed6   :  { %v4860_v21 = vmul.f32 0.5, %v4856_v17 }
 0xed7   :  { %6116 = vtanh.f32 %v4859_v16 }
 0xed8   :  { %6118 = vtanh.f32 %v4860_v21 }
 0xed9   :  { %6120 = vtanh.f32 %v4858_v19 }
 0xeda   :  { %6122 = vtanh.f32 %v4861_v18 }
 0xee1   :  { %v6117_v49 = vpop.eup %6116 }
 0xee2   :  { %v4865_v47 = vmul.f32 0.5, %v6117_v49  ;;  %v6119_v7 = vpop.eup %6118 }
 0xee3   :  { %v4866_v34 = vmul.f32 0.5, %v6119_v7  ;;  %v6121_v5 = vpop.eup %6120 }
 0xee4   :  { %v4868_v3 = vadd.f32 0.5, %v4865_v47  ;;  %v6123_v0 = vpop.eup %6122 }
 0xee5   :  { %v4869_v9 = vadd.f32 0.5, %v4866_v34  ;;  %v4867_v61 = vmul.f32 0.5, %v6123_v0 }
 0xee6   :  { %v4873_v10 = vmul.f32 %v6121_v5, %v4868_v3 }
 0xee7   :  { %v4872_v11 = vmul.f32 %v4869_v9, %v8143_v14  ;;  %v4870_v22 = vadd.f32 0.5, %v4867_v61  ;;  %v5003_v14 = vld [vmem:[%s8355_s11 + $0x8] sm:$0xff] }
 0xee8   :  { %v5647_v37 = vpack.c.bf16 %v5003_v14, %v5002_v45  ;;  %v5101_v14 = vld [vmem:[%s8358_s13 + $0x8] sm:$0xff] }
 0xee9   :  { %v8239_v59 = vadd.f32 %v4873_v10, %v4872_v11 }
 0xeeb   :  { %6124 = vtanh.f32 %v8239_v59 }
 0xef5   :  { %v6125_v42 = vpop.eup %6124 }
 0xef6   :  { %v4876_v28 = vmul.f32 %v6125_v42, %v4870_v22  ;;  %v5561_v22 = vld [vmem:[%s8356_s9] ss:$0 sm:$0xff] }
 0xef8   :  { %v4881_v60 = vpack.c.bf16 %v4876_v28, %v4876_v28  ;;  %v5562_v28 = vld [vmem:[%s8357_s10] ss:$0 sm:$0xff] }
 0xefa   :  { %4915 = vmatmul.mubr.bf16.vlgmr.msra.gmra.mrb[76].mxu0 %v4881_v60  ;;  %4956 = vmatmul.mubr.bf16.vlgmr.msra.gmra.mrb[76].mxu1 %v4881_v60 }
 0xefb   :  { %5648 = vmatpush3.bf16.msra.mxu0 %v5647_v37  ;;  %5624 = vmatprep.mubr.msk.f32.mxu0 %vm6172_vm1, %v6173_v15 }
 0xefc   :  { %5649 = vmatprep.subr.bf16.mxu0 %v6171_v39  ;;  %5643 = vmatprep.mubr.msk.f32.mxu1 %vm6172_vm1, %v6173_v15 }
 0xeff   :  { %5651 = vmatpush3.bf16.msra.mxu0 %v5650_v58  ;;  %v5674_v58 = vpack.c.bf16 %v5103_v41, %v5102_v40 }
 0xf00   :  { %5652 = vmatprep.subr.bf16.mxu0 %v6171_v39 }
 0xf03   :  { %5654 = vmatpush3.bf16.msra.mxu0 %v5653_v33  ;;  %v5677_v33 = vpack.c.bf16 %v5105_v4, %v5104_v13 }
 0xf04   :  { %5655 = vmatprep.subr.bf16.mxu0 %v6171_v39 }
 0xf07   :  { %5657 = vmatpush3.bf16.msra.mxu0 %v5656_v36  ;;  %v5680_v36 = vpack.c.bf16 %v5107_v50, %v5106_v32 }
 0xf08   :  { %5658 = vmatprep.subr.bf16.mxu0 %v6171_v39 }
 0xf0b   :  { %5660 = vmatpush3.bf16.msra.mxu0 %v5659_v31 }
 0xf0c   :  { %5661 = vmatprep.subr.bf16.mxu0 %v6171_v39 }
 0xf0f   :  { %5663 = vmatpush3.bf16.msra.mxu0 %v5662_v53 }
 0xf10   :  { %5664 = vmatprep.subr.bf16.mxu0 %v6171_v39 }
 0xf13   :  { %5666 = vmatpush3.bf16.msra.mxu0 %v5665_v57 }
 0xf14   :  { %5667 = vmatprep.subr.bf16.mxu0 %v6171_v39 }
 0xf17   :  { %5669 = vmatpush3.bf16.msra.mxu0 %v5668_v62 }
 0xfcd   :  { %v4916_v56 = vpop.f32.mrb[76].mxu0  ;;  %v4957_v26 = vpop.f32.mrb[76].mxu1 }
 0xfce   :  { %v4964_v54 = vadd.f32 %v4916_v56, %v8539_v55  ;;  %v4966_v35 = vadd.f32 %v4957_v26, %v8540_v48  ;;  %v4918_v44 = vpop.f32.mrb[77].mxu0  ;;  %v4959_v27 = vpop.f32.mrb[77].mxu1 }
 0xfcf   :  { %v4965_v20 = vadd.f32 %v4918_v44, %v8541_v43  ;;  %v4967_v38 = vadd.f32 %v4959_v27, %v8542_v29  ;;  %v4920_v17 = vpop.f32.mrb[78].mxu0  ;;  %v4961_v1 = vpop.f32.mrb[78].mxu1 }
 0xfd0   :  { %v4968_v19 = vmul.f32 0.5, %v4964_v54  ;;  %v4921_v24 = vpop.f32.mrb[79].mxu0  ;;  %v4962_v8 = vpop.f32.mrb[79].mxu1  ;;  %v4970_v2 = vmul.f32 0.5, %v4966_v35 }
 0xfd1   :  { %v4969_v16 = vmul.f32 0.5, %v4965_v20 }
 0xfd2   :  { %6126 = vtanh.f32 %v4968_v19 }
 0xfd3   :  { %6128 = vtanh.f32 %v4969_v16 }
 0xfd4   :  { %6130 = vtanh.f32 %v4967_v38 }
 0xfd5   :  { %6132 = vtanh.f32 %v4970_v2 }
 0xfdc   :  { %v6127_v46 = vpop.eup %6126 }
 0xfdd   :  { %v4974_v21 = vmul.f32 0.5, %v6127_v46  ;;  %v6129_v18 = vpop.eup %6128 }
 0xfde   :  { %v4975_v47 = vmul.f32 0.5, %v6129_v18  ;;  %v6131_v7 = vpop.eup %6130 }
 0xfdf   :  { %v4977_v49 = vadd.f32 0.5, %v4974_v21  ;;  %v6133_v10 = vpop.eup %6132 }
 0xfe0   :  { %v4978_v3 = vadd.f32 0.5, %v4975_v47  ;;  %v4976_v11 = vmul.f32 0.5, %v6133_v10 }
 0xfe1   :  { %v4982_v34 = vmul.f32 %v6131_v7, %v4977_v49 }
 0xfe2   :  { %v4981_v5 = vmul.f32 %v4978_v3, %v8239_v59  ;;  %v4979_v0 = vadd.f32 0.5, %v4976_v11  ;;  %v5100_v59 = vld [vmem:[%s8358_s13] sm:$0xff] }
 0xfe3   :  { %v5671_v37 = vpack.c.bf16 %v5101_v14, %v5100_v59 }
 0xfe4   :  { %v4983_v9 = vadd.f32 %v4982_v34, %v4981_v5 }
 0xfe5   :  { %5672 = vmatpush3.bf16.msra.mxu1 %v5671_v37 }
 0xfe6   :  { %6134 = vtanh.f32 %v4983_v9  ;;  %5673 = vmatprep.subr.bf16.mxu1 %v6171_v39 }
 0xfe9   :  { %5675 = vmatpush3.bf16.msra.mxu1 %v5674_v58 }
 0xfea   :  { %5676 = vmatprep.subr.bf16.mxu1 %v6171_v39 }
 0xfed   :  { %5678 = vmatpush3.bf16.msra.mxu1 %v5677_v33 }
 0xfee   :  { %5679 = vmatprep.subr.bf16.mxu1 %v6171_v39 }
 0xff0   :  { %v6135_v61 = vpop.eup %6134 }
 0xff1   :  { %v4985_v42 = vmul.f32 %v6135_v61, %v4979_v0  ;;  %5681 = vmatpush3.bf16.msra.mxu1 %v5680_v36 }
 0xff3   :  { %v4993_v60 = vmul.f32 %v5561_v22, %v4985_v42 }
 0xff5   :  { %v5001_v45 = vadd.f32 %v5562_v28, %v4993_v60 }
 0xff7   :  { %5625 = vmatmul.mubr.f32.vlgmr.msra.gmra.mrb[80].mxu0 %v5001_v45 }
0x10ca   :  { %v5091_v25 = vpop.f32.mrb[80].mxu0 }
0x10cb   :  { %v5092_v31 = vadd.f32 %v5563_v51, %v5091_v25  ;;  %v5626_v23 = vpop.f32.mrb[81].mxu0 }
0x10cd   :  { %v5096_v6 = vmul.f32 0.70710677, %v5092_v31  ;;  %v5095_v15 = vmul.f32 0.5, %v5092_v31 }
0x10cf   :  { %6136 = verf.f32 %v5096_v6 }
0x10d9   :  { %v6137_v39 = vpop.eup %6136 }
0x10da   :  { %v5098_v53 = vadd.f32 1.0, %v6137_v39 }
0x10dc   :  { %v5099_v52 = vmul.f32 %v5098_v53, %v5095_v15 }
0x10de   :  { %5644 = vmatmul.mubr.msk.f32.vlgmr.msra.gmra.mrb[80].mxu1 %vm5115_vm2, %v5099_v52 }
0x11b1   :  { %v5185_v57 = vpop.f32.mrb[80].mxu1 }
0x11b2   :  { %v5186_v63 = vadd.f32 %v5564_v12, %v5185_v57  ;;  %v5645_v30 = vpop.f32.mrb[81].mxu1 }
0x11b4   :  { %5190 = vst.msk [vmem:[%s8361_s15] sm:$0xff] %vm5189_vm3, %v5186_v63 }

</bundles_post_ra>
